<compile_context>
chip_gen: v7x
topology: tpu7x:2x2x1
jax: 0.10.0
libtpu: 0.0.40
codegen_flags: <defaults>
</compile_context>

<pallas_src>
import numpy as np
import jax
import jax.numpy as jnp
from jax.experimental import pallas as pl
from jax.experimental.pallas import tpu as pltpu


# ---------------------------------------------------------------------------
# Pallas kernel: hoisted projections + T-step (attention -> LSTM cell) loop
# + batched post-loop fc_out.  Single invocation covers the whole batch.
# ---------------------------------------------------------------------------
def decoder_kernel(vit_ref, cap_ref, wp_ref, bp_ref, w1f_ref, w1h_ref, b1_ref,
                   w2_ref, wihc_ref, wihx_ref, whh_ref, blstm_ref,
                   wouth_ref, woutx_ref, bout_ref,
                   out_ref, attn_ref,
                   h_scr, ctx_scr, attn_scr):
    B, P, Dv = vit_ref.shape
    T, _, E = cap_ref.shape
    H = whh_ref.shape[0]
    A = w1f_ref.shape[1]
    f32 = jnp.float32
    bf16 = jnp.bfloat16

    # ---- hoisted: patch_feats = linear_patch(vit_out) as one 2-D MXU matmul ----
    vit2d = vit_ref[...].reshape(B * P, Dv)                         # bf16
    feats2d = (jnp.dot(vit2d, wp_ref[...], preferred_element_type=f32)
               + bp_ref[...])                                       # (B*P, E) f32
    feats = feats2d.reshape(B, P, E)                                # f32 (context path)

    # ---- hoisted: feats half of attn_fc1, with b1 folded in ----
    feat_energy = (jnp.dot(feats2d.astype(bf16), w1f_ref[...],
                           preferred_element_type=f32)
                   + b1_ref[...]).reshape(B, P, A)                  # (B, P, A) f32

    # ---- hoisted: caption half of the LSTM input projection, all timesteps ----
    # cap_ref is already (T, B, E): no in-kernel transpose.  cap_proj stays a
    # value (no scratch round trip) and is sliced with static offsets below.
    cap2d = cap_ref[...].reshape(T * B, E)                          # bf16
    cap_proj = jnp.dot(cap2d, wihc_ref[...],
                       preferred_element_type=f32)                  # (T*B, 4H) f32

    # Hoist loop-invariant values / broadcasts once (JAX does not CSE them).
    w1h = w1h_ref[...]                                              # bf16 (H, A)
    wihx = wihx_ref[...]                                            # bf16 (E, 4H)
    whh = whh_ref[...]                                              # bf16 (H, 4H)
    w2b = jnp.broadcast_to(w2_ref[...].reshape(1, 1, A), (B, P, A))  # f32
    blstm = jnp.broadcast_to(blstm_ref[...], (B, 4 * H))            # bih + bhh, f32

    h = jnp.zeros((B, H), f32)   # module uses zeros at t=0 (requires E == H)
    c = jnp.zeros((B, H), f32)

    # Static Python loop: T is known at trace time, so every slice and scratch
    # index is static (no dynamic-slice lowering on the recurrent critical path).
    for t in range(T):
        h_bf = h.astype(bf16)

        # ---- attention: only the hidden-state-dependent half per step ----
        h_energy = jnp.dot(h_bf, w1h, preferred_element_type=f32)       # (B, A)
        energy = jnp.tanh(feat_energy + h_energy[:, None, :])           # (B, P, A) f32
        scores = jnp.sum(energy * w2b, axis=-1)                         # (B, P)
        # attn_fc2 bias is a per-patch constant -> cancelled by softmax: dropped.
        scores = scores - jnp.max(scores, axis=-1, keepdims=True)
        es = jnp.exp(scores)
        weights = es * pl.reciprocal(jnp.sum(es, axis=-1, keepdims=True),
                                     approx=True)                       # (B, P) f32
        # context = weights @ feats  (MXU batched dot instead of VPU+XLU reduce)
        context = jnp.einsum('bqp,bpe->bqe', weights[:, None, :], feats,
                             preferred_element_type=f32)[:, 0, :]       # (B, E) f32

        # ---- LSTM cell (split weights, no concatenate; PyTorch gate order) ----
        gates = (cap_proj[t * B:(t + 1) * B]
                 + jnp.dot(context.astype(bf16), wihx, preferred_element_type=f32)
                 + jnp.dot(h_bf, whh, preferred_element_type=f32)
                 + blstm)                                                # (B, 4H) f32
        i_g = jax.nn.sigmoid(gates[:, 0:H])
        f_g = jax.nn.sigmoid(gates[:, H:2 * H])
        g_g = jnp.tanh(gates[:, 2 * H:3 * H])
        o_g = jax.nn.sigmoid(gates[:, 3 * H:4 * H])
        c = f_g * c + i_g * g_g
        h = o_g * jnp.tanh(c)

        # Histories kept batch-major so the post-loop reshapes are layout-free.
        h_scr[:, t, :] = h
        ctx_scr[:, t, :] = context
        attn_scr[:, t, :] = weights

    # ---- post-loop: fc_out batched over all timesteps, single slab stores ----
    h_all = h_scr[...].reshape(B * T, H).astype(bf16)
    ctx_all = ctx_scr[...].reshape(B * T, E).astype(bf16)
    logits = (jnp.dot(h_all, wouth_ref[...], preferred_element_type=f32)
              + jnp.dot(ctx_all, woutx_ref[...], preferred_element_type=f32)
              + bout_ref[...])                                           # (B*T, V) f32
    out_ref[...] = logits
    attn_ref[...] = attn_scr[...].reshape(B * T, P)


def patch_attention_decoder(vit_out, cap_emb, params):
    """vit_out: (B, P, Dv); cap_emb: (B, T, E). Returns (B,T,V), (B,T,P)."""
    B, P, _ = vit_out.shape
    T, E = cap_emb.shape[1], cap_emb.shape[2]
    H = params['whh'].shape[0]
    V = params['wout'].shape[1]
    bf16 = jnp.bfloat16

    # Split concatenation weights so the kernel never concatenates on the lane
    # axis; cast matmul weights to bf16 (f32 accumulation in the kernel).
    w1_f = params['w1'][:E].astype(bf16)      # feats half of attn_fc1 (hoisted)
    w1_h = params['w1'][E:].astype(bf16)      # hidden half (per step, bf16 MXU)
    wih_cap = params['wih'][:E].astype(bf16)  # caption half of LSTM input weight
    wih_ctx = params['wih'][E:].astype(bf16)  # context half (per step, bf16 MXU)
    whh = params['whh'].astype(bf16)
    wout_h = params['wout'][:H].astype(bf16)
    wout_ctx = params['wout'][H:].astype(bf16)
    b_lstm = params['bih'] + params['bhh']    # fold constant biases once
    wp = params['wp'].astype(bf16)

    # Layout plumbing done in the wrapper (XLA), not in the kernel:
    #  - cast the streamed tensors to bf16 (halves HBM->VMEM traffic at scale)
    #  - pre-transpose captions to (T, B, E) so the kernel never transposes.
    vit_bf = vit_out.astype(bf16)
    cap_t = jnp.transpose(cap_emb, (1, 0, 2)).astype(bf16)   # (T, B, E)
    # attn_fc2 bias (b2) is softmax-invariant -> not passed to the kernel.

    args = (vit_bf, cap_t, wp, params['bp'], w1_f, w1_h, params['b1'],
            params['w2'], wih_cap, wih_ctx, whh, b_lstm,
            wout_h, wout_ctx, params['bout'])

    # Single invocation (grid=()): whole batch resident in VMEM.  At B=2 this
    # keeps every matmul >= B rows and avoids sequential-grid overhead; for
    # large B / realistic sizes (E=H=512, V~30k, v7x 64 MiB VMEM) reintroduce a
    # batch grid with >=8-row blocks, tile fc_out over V, and single-buffer the
    # constant weight inputs.
    out_flat, attn_flat = pl.pallas_call(
        decoder_kernel,
        out_shape=(jax.ShapeDtypeStruct((B * T, V), jnp.float32),
                   jax.ShapeDtypeStruct((B * T, P), jnp.float32)),
        scratch_shapes=[
            pltpu.VMEM((B, T, H), jnp.float32),   # h history (batch-major)
            pltpu.VMEM((B, T, E), jnp.float32),   # context history
            pltpu.VMEM((B, T, P), jnp.float32),   # attention-weight history
        ],
        compiler_params=pltpu.CompilerParams(
            vmem_limit_bytes=32 * 1024 * 1024),
    )(*args)

    # Free XLA reshapes back to the module's output layout.
    return out_flat.reshape(B, T, V), attn_flat.reshape(B, T, P)


# ---------------------------------------------------------------------------
# Plain-JAX glue: synthetic ViT stand-in, embedding lookup, reference model
# ---------------------------------------------------------------------------
def fake_vit(images, w_patch):
    # TODO(synk): stand-in for the frozen pretrained ViT backbone.
    B, C, Hh, Ww = images.shape
    ph = pw = 4
    x = images.reshape(B, C, Hh // ph, ph, Ww // pw, pw)
    x = x.transpose(0, 2, 4, 1, 3, 5).reshape(B, (Hh // ph) * (Ww // pw),
                                              C * ph * pw)
    return x @ w_patch                               # (B, P, Dv)


def reference_decoder(vit_out, cap_emb, params):
    feats = vit_out @ params['wp'] + params['bp']
    B, P, E = feats.shape
    T = cap_emb.shape[1]
    H = params['whh'].shape[0]
    h = jnp.zeros((B, H), jnp.float32)
    c = jnp.zeros((B, H), jnp.float32)
    outs, attns = [], []
    for t in range(T):
        hs = jnp.broadcast_to(h[:, None, :], (B, P, H))
        concat = jnp.concatenate([feats, hs], axis=-1)
        energy = jnp.tanh(concat @ params['w1'] + params['b1'])
        scores = jnp.sum(energy * params['w2'], axis=-1) + params['b2']
        w = jax.nn.softmax(scores, axis=-1)
        ctx = jnp.sum(w[:, :, None] * feats, axis=1)
        x_t = jnp.concatenate([cap_emb[:, t, :], ctx], axis=-1)
        gates = (x_t @ params['wih'] + h @ params['whh']
                 + params['bih'] + params['bhh'])
        i_g = jax.nn.sigmoid(gates[:, 0:H])
        f_g = jax.nn.sigmoid(gates[:, H:2 * H])
        g_g = jnp.tanh(gates[:, 2 * H:3 * H])
        o_g = jax.nn.sigmoid(gates[:, 3 * H:4 * H])
        c = f_g * c + i_g * g_g
        h = o_g * jnp.tanh(c)
        logits = jnp.concatenate([h, ctx], axis=-1) @ params['wout'] + params['bout']
        outs.append(logits[:, None, :])
        attns.append(w[:, None, :])
    return jnp.concatenate(outs, axis=1), jnp.concatenate(attns, axis=1)


if __name__ == "__main__":
    # Small shapes consistent with the module's forward.
    B, C, IMG = 2, 3, 16          # images: (B, 3, 16, 16) NCHW
    P, Dv = 16, 64                # synthetic "ViT" patch tokens / hidden size
    E = 32                        # embed_dim
    H = 32                        # hidden_dim (== embed_dim, required by module)
    A = 256                       # attn_fc1 output size (hardcoded 256 in module)
    V = 64                        # vocab_size
    T_FULL = 9                    # caption length; decoder runs T_FULL-1 steps

    key = jax.random.PRNGKey(0)
    ks = jax.random.split(key, 16)
    s = 0.05
    params = {
        'wp':   jax.random.normal(ks[0], (Dv, E), jnp.float32) * s,
        'bp':   jax.random.normal(ks[1], (1, E), jnp.float32) * s,
        'w1':   jax.random.normal(ks[2], (E + H, A), jnp.float32) * s,
        'b1':   jax.random.normal(ks[3], (1, A), jnp.float32) * s,
        'w2':   jax.random.normal(ks[4], (1, A), jnp.float32) * s,
        'b2':   jax.random.normal(ks[5], (1, 1), jnp.float32) * s,
        'wih':  jax.random.normal(ks[6], (2 * E, 4 * H), jnp.float32) * s,
        'whh':  jax.random.normal(ks[7], (H, 4 * H), jnp.float32) * s,
        'bih':  jax.random.normal(ks[8], (1, 4 * H), jnp.float32) * s,
        'bhh':  jax.random.normal(ks[9], (1, 4 * H), jnp.float32) * s,
        'wout': jax.random.normal(ks[10], (H + E, V), jnp.float32) * s,
        'bout': jax.random.normal(ks[11], (1, V), jnp.float32) * s,
    }
    w_patch_embed = jax.random.normal(ks[12], (C * 4 * 4, Dv), jnp.float32) * s
    emb_table = jax.random.normal(ks[13], (V, E), jnp.float32) * s

    images = jax.random.normal(ks[14], (B, C, IMG, IMG), jnp.float32)
    captions = jax.random.randint(ks[15], (B, T_FULL), 0, V, jnp.int32)

    # Glue (as in the PyTorch forward): ViT features + embedding lookup.
    vit_out = fake_vit(images, w_patch_embed)                  # (B, P, Dv)
    cap_emb = jnp.take(emb_table, captions[:, :-1], axis=0)    # (B, T, E)

    outputs, attn_weights = patch_attention_decoder(vit_out, cap_emb, params)
    outputs = jax.block_until_ready(outputs)
    attn_weights = jax.block_until_ready(attn_weights)

    assert outputs.shape == (B, T_FULL - 1, V)
    assert attn_weights.shape == (B, T_FULL - 1, P)

    ref_out, ref_attn = reference_decoder(vit_out, cap_emb, params)
    # Tolerance accounts for bf16 matmul operands and the approx reciprocal in
    # the softmax (deliberate speed/accuracy trade-offs; state/gates stay f32).
    np.testing.assert_allclose(np.asarray(outputs), np.asarray(ref_out),
                               rtol=2e-2, atol=2e-2)
    np.testing.assert_allclose(np.asarray(attn_weights), np.asarray(ref_attn),
                               rtol=2e-2, atol=2e-2)

    print("KERNEL_OK")
</pallas_src>

<mosaic_0001>
module attributes {stable_mosaic.version = 11 : i64} {
  func.func @decoder_kernel(%arg0: memref<2x16x64xbf16, #tpu.memory_space<vmem>>, %arg1: memref<8x2x32xbf16, #tpu.memory_space<vmem>>, %arg2: memref<64x32xbf16, #tpu.memory_space<vmem>>, %arg3: memref<1x32xf32, #tpu.memory_space<vmem>>, %arg4: memref<32x256xbf16, #tpu.memory_space<vmem>>, %arg5: memref<32x256xbf16, #tpu.memory_space<vmem>>, %arg6: memref<1x256xf32, #tpu.memory_space<vmem>>, %arg7: memref<1x256xf32, #tpu.memory_space<vmem>>, %arg8: memref<32x128xbf16, #tpu.memory_space<vmem>>, %arg9: memref<32x128xbf16, #tpu.memory_space<vmem>>, %arg10: memref<32x128xbf16, #tpu.memory_space<vmem>>, %arg11: memref<1x128xf32, #tpu.memory_space<vmem>>, %arg12: memref<32x64xbf16, #tpu.memory_space<vmem>>, %arg13: memref<32x64xbf16, #tpu.memory_space<vmem>>, %arg14: memref<1x64xf32, #tpu.memory_space<vmem>>, %arg15: memref<16x64xf32, #tpu.memory_space<vmem>>, %arg16: memref<16x16xf32, #tpu.memory_space<vmem>>, %arg17: memref<2x8x32xf32, #tpu.memory_space<vmem>>, %arg18: memref<2x8x32xf32, #tpu.memory_space<vmem>>, %arg19: memref<2x8x16xf32, #tpu.memory_space<vmem>>) attributes {dimension_semantics = [], scalar_prefetch = 0 : i64, scratch_operands = 3 : i64, tpu.core_type = #tpu.core_type<tc>} {
    %c0 = arith.constant 0 : index
    %c0_0 = arith.constant 0 : index
    %c0_1 = arith.constant 0 : index
    %0 = vector.load %arg0[%c0, %c0_0, %c0_1] : memref<2x16x64xbf16, #tpu.memory_space<vmem>>, vector<2x16x64xbf16>
    %1 = vector.shape_cast %0 : vector<2x16x64xbf16> to vector<32x64xbf16>
    %c0_2 = arith.constant 0 : index
    %c0_3 = arith.constant 0 : index
    %2 = vector.load %arg2[%c0_2, %c0_3] : memref<64x32xbf16, #tpu.memory_space<vmem>>, vector<64x32xbf16>
    %cst = arith.constant dense<0.000000e+00> : vector<32x32xf32>
    %3 = tpu.matmul %1, %2, %cst {dimension_numbers = #tpu.dot_dimension_numbers<[1], [0], [0], [1], [0, 0, 1, 1], [], []>} : vector<32x64xbf16>, vector<64x32xbf16>, vector<32x32xf32> -> vector<32x32xf32>
    %c0_4 = arith.constant 0 : index
    %c0_5 = arith.constant 0 : index
    %4 = vector.load %arg3[%c0_4, %c0_5] : memref<1x32xf32, #tpu.memory_space<vmem>>, vector<1x32xf32>
    %5 = vector.broadcast %4 : vector<1x32xf32> to vector<32x32xf32>
    %6 = arith.addf %3, %5 : vector<32x32xf32>
    %7 = vector.shape_cast %6 : vector<32x32xf32> to vector<2x16x32xf32>
    %8 = arith.truncf %6 : vector<32x32xf32> to vector<32x32xbf16>
    %c0_6 = arith.constant 0 : index
    %c0_7 = arith.constant 0 : index
    %9 = vector.load %arg4[%c0_6, %c0_7] : memref<32x256xbf16, #tpu.memory_space<vmem>>, vector<32x256xbf16>
    %cst_8 = arith.constant dense<0.000000e+00> : vector<32x256xf32>
    %10 = tpu.matmul %8, %9, %cst_8 {dimension_numbers = #tpu.dot_dimension_numbers<[1], [0], [0], [1], [0, 0, 1, 1], [], []>} : vector<32x32xbf16>, vector<32x256xbf16>, vector<32x256xf32> -> vector<32x256xf32>
    %c0_9 = arith.constant 0 : index
    %c0_10 = arith.constant 0 : index
    %11 = vector.load %arg6[%c0_9, %c0_10] : memref<1x256xf32, #tpu.memory_space<vmem>>, vector<1x256xf32>
    %12 = vector.broadcast %11 : vector<1x256xf32> to vector<32x256xf32>
    %13 = arith.addf %10, %12 : vector<32x256xf32>
    %14 = vector.shape_cast %13 : vector<32x256xf32> to vector<2x16x256xf32>
    %c0_11 = arith.constant 0 : index
    %c0_12 = arith.constant 0 : index
    %c0_13 = arith.constant 0 : index
    %15 = vector.load %arg1[%c0_11, %c0_12, %c0_13] : memref<8x2x32xbf16, #tpu.memory_space<vmem>>, vector<8x2x32xbf16>
    %16 = vector.shape_cast %15 : vector<8x2x32xbf16> to vector<16x32xbf16>
    %c0_14 = arith.constant 0 : index
    %c0_15 = arith.constant 0 : index
    %17 = vector.load %arg8[%c0_14, %c0_15] : memref<32x128xbf16, #tpu.memory_space<vmem>>, vector<32x128xbf16>
    %cst_16 = arith.constant dense<0.000000e+00> : vector<16x128xf32>
    %18 = tpu.matmul %16, %17, %cst_16 {dimension_numbers = #tpu.dot_dimension_numbers<[1], [0], [0], [1], [0, 0, 1, 1], [], []>} : vector<16x32xbf16>, vector<32x128xbf16>, vector<16x128xf32> -> vector<16x128xf32>
    %c0_17 = arith.constant 0 : index
    %c0_18 = arith.constant 0 : index
    %19 = vector.load %arg5[%c0_17, %c0_18] : memref<32x256xbf16, #tpu.memory_space<vmem>>, vector<32x256xbf16>
    %c0_19 = arith.constant 0 : index
    %c0_20 = arith.constant 0 : index
    %20 = vector.load %arg9[%c0_19, %c0_20] : memref<32x128xbf16, #tpu.memory_space<vmem>>, vector<32x128xbf16>
    %c0_21 = arith.constant 0 : index
    %c0_22 = arith.constant 0 : index
    %21 = vector.load %arg10[%c0_21, %c0_22] : memref<32x128xbf16, #tpu.memory_space<vmem>>, vector<32x128xbf16>
    %c0_23 = arith.constant 0 : index
    %c0_24 = arith.constant 0 : index
    %22 = vector.load %arg7[%c0_23, %c0_24] : memref<1x256xf32, #tpu.memory_space<vmem>>, vector<1x256xf32>
    %23 = vector.shape_cast %22 : vector<1x256xf32> to vector<1x1x256xf32>
    %24 = vector.shape_cast %23 : vector<1x1x256xf32> to vector<1x1x256xf32>
    %25 = vector.broadcast %24 : vector<1x1x256xf32> to vector<2x16x256xf32>
    %c0_25 = arith.constant 0 : index
    %c0_26 = arith.constant 0 : index
    %26 = vector.load %arg11[%c0_25, %c0_26] : memref<1x128xf32, #tpu.memory_space<vmem>>, vector<1x128xf32>
    %27 = vector.shape_cast %26 : vector<1x128xf32> to vector<1x128xf32>
    %28 = vector.broadcast %27 : vector<1x128xf32> to vector<2x128xf32>
    %cst_27 = arith.constant 0.000000e+00 : f32
    %29 = vector.broadcast %cst_27 : f32 to vector<2x32xf32>
    %cst_28 = arith.constant 0.000000e+00 : f32
    %30 = vector.broadcast %cst_28 : f32 to vector<2x32xf32>
    %31 = arith.truncf %29 : vector<2x32xf32> to vector<2x32xbf16>
    %cst_29 = arith.constant dense<0.000000e+00> : vector<2x256xf32>
    %32 = tpu.matmul %31, %19, %cst_29 {dimension_numbers = #tpu.dot_dimension_numbers<[1], [0], [0], [1], [0, 0, 1, 1], [], []>} : vector<2x32xbf16>, vector<32x256xbf16>, vector<2x256xf32> -> vector<2x256xf32>
    %33 = vector.shape_cast %32 : vector<2x256xf32> to vector<2x1x256xf32>
    %34 = vector.broadcast %33 : vector<2x1x256xf32> to vector<2x16x256xf32>
    %35 = arith.addf %14, %34 : vector<2x16x256xf32>
    %36 = math.tanh %35 : vector<2x16x256xf32>
    %37 = arith.mulf %36, %25 : vector<2x16x256xf32>
    %cst_30 = arith.constant dense<0.000000e+00> : vector<2x16xf32>
    %38 = vector.multi_reduction <add>, %37, %cst_30 [2] : vector<2x16x256xf32> to vector<2x16xf32>
    %cst_31 = arith.constant dense<0xFF800000> : vector<2xf32>
    %39 = vector.multi_reduction <maximumf>, %38, %cst_31 [1] : vector<2x16xf32> to vector<2xf32>
    %40 = vector.shape_cast %39 : vector<2xf32> to vector<2x1xf32>
    %41 = vector.broadcast %40 : vector<2x1xf32> to vector<2x16xf32>
    %42 = arith.subf %38, %41 : vector<2x16xf32>
    %43 = math.exp %42 : vector<2x16xf32>
    %cst_32 = arith.constant dense<0.000000e+00> : vector<2xf32>
    %44 = vector.multi_reduction <add>, %43, %cst_32 [1] : vector<2x16xf32> to vector<2xf32>
    %45 = vector.shape_cast %44 : vector<2xf32> to vector<2x1xf32>
    %46 = tpu.reciprocal %45 {approx = true} : vector<2x1xf32> -> vector<2x1xf32>
    %47 = vector.broadcast %46 : vector<2x1xf32> to vector<2x16xf32>
    %48 = arith.mulf %43, %47 : vector<2x16xf32>
    %49 = vector.shape_cast %48 : vector<2x16xf32> to vector<2x1x16xf32>
    "tpu.trace_start"() <{level = 10 : i32, message = "bqp,bpe->bqe"}> : () -> ()
    %cst_33 = arith.constant dense<0.000000e+00> : vector<2x1x32xf32>
    %50 = tpu.matmul %49, %7, %cst_33 {dimension_numbers = #tpu.dot_dimension_numbers<[2], [1], [1], [2], [0, 0, 0, 1, 1, 2], [0], [0]>} : vector<2x1x16xf32>, vector<2x16x32xf32>, vector<2x1x32xf32> -> vector<2x1x32xf32>
    "tpu.trace_stop"() : () -> ()
    %51 = vector.shape_cast %50 : vector<2x1x32xf32> to vector<2x32xf32>
    %52 = vector.extract_strided_slice %18 {offsets = [0, 0], sizes = [2, 128], strides = [1, 1]} : vector<16x128xf32> to vector<2x128xf32>
    %53 = arith.truncf %51 : vector<2x32xf32> to vector<2x32xbf16>
    %cst_34 = arith.constant dense<0.000000e+00> : vector<2x128xf32>
    %54 = tpu.matmul %53, %20, %cst_34 {dimension_numbers = #tpu.dot_dimension_numbers<[1], [0], [0], [1], [0, 0, 1, 1], [], []>} : vector<2x32xbf16>, vector<32x128xbf16>, vector<2x128xf32> -> vector<2x128xf32>
    %55 = arith.addf %52, %54 : vector<2x128xf32>
    %cst_35 = arith.constant dense<0.000000e+00> : vector<2x128xf32>
    %56 = tpu.matmul %31, %21, %cst_35 {dimension_numbers = #tpu.dot_dimension_numbers<[1], [0], [0], [1], [0, 0, 1, 1], [], []>} : vector<2x32xbf16>, vector<32x128xbf16>, vector<2x128xf32> -> vector<2x128xf32>
    %57 = arith.addf %55, %56 : vector<2x128xf32>
    %58 = arith.addf %57, %28 : vector<2x128xf32>
    %59 = vector.extract_strided_slice %58 {offsets = [0, 0], sizes = [2, 32], strides = [1, 1]} : vector<2x128xf32> to vector<2x32xf32>
    %60 = arith.negf %59 : vector<2x32xf32>
    %61 = math.exp %60 : vector<2x32xf32>
    %cst_36 = arith.constant 1.000000e+00 : f32
    %62 = vector.broadcast %cst_36 : f32 to vector<2x32xf32>
    %63 = arith.addf %62, %61 : vector<2x32xf32>
    %64 = arith.divf %62, %63 : vector<2x32xf32>
    %65 = vector.extract_strided_slice %58 {offsets = [0, 32], sizes = [2, 32], strides = [1, 1]} : vector<2x128xf32> to vector<2x32xf32>
    %66 = arith.negf %65 : vector<2x32xf32>
    %67 = math.exp %66 : vector<2x32xf32>
    %cst_37 = arith.constant 1.000000e+00 : f32
    %68 = vector.broadcast %cst_37 : f32 to vector<2x32xf32>
    %69 = arith.addf %68, %67 : vector<2x32xf32>
    %70 = arith.divf %68, %69 : vector<2x32xf32>
    %71 = vector.extract_strided_slice %58 {offsets = [0, 64], sizes = [2, 32], strides = [1, 1]} : vector<2x128xf32> to vector<2x32xf32>
    %72 = math.tanh %71 : vector<2x32xf32>
    %73 = vector.extract_strided_slice %58 {offsets = [0, 96], sizes = [2, 32], strides = [1, 1]} : vector<2x128xf32> to vector<2x32xf32>
    %74 = arith.negf %73 : vector<2x32xf32>
    %75 = math.exp %74 : vector<2x32xf32>
    %cst_38 = arith.constant 1.000000e+00 : f32
    %76 = vector.broadcast %cst_38 : f32 to vector<2x32xf32>
    %77 = arith.addf %76, %75 : vector<2x32xf32>
    %78 = arith.divf %76, %77 : vector<2x32xf32>
    %79 = arith.mulf %70, %30 : vector<2x32xf32>
    %80 = arith.mulf %64, %72 : vector<2x32xf32>
    %81 = arith.addf %79, %80 : vector<2x32xf32>
    %82 = math.tanh %81 : vector<2x32xf32>
    %83 = arith.mulf %78, %82 : vector<2x32xf32>
    %c0_39 = arith.constant 0 : index
    %c0_40 = arith.constant 0 : index
    %c0_41 = arith.constant 0 : index
    %84 = vector.load %arg17[%c0_39, %c0_40, %c0_41] : memref<2x8x32xf32, #tpu.memory_space<vmem>>, vector<2x1x32xf32>
    %85 = vector.shape_cast %84 : vector<2x1x32xf32> to vector<2x32xf32>
    %86 = vector.shape_cast %83 : vector<2x32xf32> to vector<2x1x32xf32>
    tpu.vector_store %arg17[%c0_39, %c0_40, %c0_41], %86 {strides = array<i32>} : memref<2x8x32xf32, #tpu.memory_space<vmem>>, vector<2x1x32xf32>,
    %c0_42 = arith.constant 0 : index
    %c0_43 = arith.constant 0 : index
    %c0_44 = arith.constant 0 : index
    %87 = vector.load %arg18[%c0_42, %c0_43, %c0_44] : memref<2x8x32xf32, #tpu.memory_space<vmem>>, vector<2x1x32xf32>
    %88 = vector.shape_cast %87 : vector<2x1x32xf32> to vector<2x32xf32>
    %89 = vector.shape_cast %51 : vector<2x32xf32> to vector<2x1x32xf32>
    tpu.vector_store %arg18[%c0_42, %c0_43, %c0_44], %89 {strides = array<i32>} : memref<2x8x32xf32, #tpu.memory_space<vmem>>, vector<2x1x32xf32>,
    %c0_45 = arith.constant 0 : index
    %c0_46 = arith.constant 0 : index
    %c0_47 = arith.constant 0 : index
    %90 = vector.load %arg19[%c0_45, %c0_46, %c0_47] : memref<2x8x16xf32, #tpu.memory_space<vmem>>, vector<2x1x16xf32>
    %91 = vector.shape_cast %90 : vector<2x1x16xf32> to vector<2x16xf32>
    %92 = vector.shape_cast %48 : vector<2x16xf32> to vector<2x1x16xf32>
    tpu.vector_store %arg19[%c0_45, %c0_46, %c0_47], %92 {strides = array<i32>} : memref<2x8x16xf32, #tpu.memory_space<vmem>>, vector<2x1x16xf32>,
    %93 = arith.truncf %83 : vector<2x32xf32> to vector<2x32xbf16>
    %cst_48 = arith.constant dense<0.000000e+00> : vector<2x256xf32>
    %94 = tpu.matmul %93, %19, %cst_48 {dimension_numbers = #tpu.dot_dimension_numbers<[1], [0], [0], [1], [0, 0, 1, 1], [], []>} : vector<2x32xbf16>, vector<32x256xbf16>, vector<2x256xf32> -> vector<2x256xf32>
    %95 = vector.shape_cast %94 : vector<2x256xf32> to vector<2x1x256xf32>
    %96 = vector.broadcast %95 : vector<2x1x256xf32> to vector<2x16x256xf32>
    %97 = arith.addf %14, %96 : vector<2x16x256xf32>
    %98 = math.tanh %97 : vector<2x16x256xf32>
    %99 = arith.mulf %98, %25 : vector<2x16x256xf32>
    %cst_49 = arith.constant dense<0.000000e+00> : vector<2x16xf32>
    %100 = vector.multi_reduction <add>, %99, %cst_49 [2] : vector<2x16x256xf32> to vector<2x16xf32>
    %cst_50 = arith.constant dense<0xFF800000> : vector<2xf32>
    %101 = vector.multi_reduction <maximumf>, %100, %cst_50 [1] : vector<2x16xf32> to vector<2xf32>
    %102 = vector.shape_cast %101 : vector<2xf32> to vector<2x1xf32>
    %103 = vector.broadcast %102 : vector<2x1xf32> to vector<2x16xf32>
    %104 = arith.subf %100, %103 : vector<2x16xf32>
    %105 = math.exp %104 : vector<2x16xf32>
    %cst_51 = arith.constant dense<0.000000e+00> : vector<2xf32>
    %106 = vector.multi_reduction <add>, %105, %cst_51 [1] : vector<2x16xf32> to vector<2xf32>
    %107 = vector.shape_cast %106 : vector<2xf32> to vector<2x1xf32>
    %108 = tpu.reciprocal %107 {approx = true} : vector<2x1xf32> -> vector<2x1xf32>
    %109 = vector.broadcast %108 : vector<2x1xf32> to vector<2x16xf32>
    %110 = arith.mulf %105, %109 : vector<2x16xf32>
    %111 = vector.shape_cast %110 : vector<2x16xf32> to vector<2x1x16xf32>
    "tpu.trace_start"() <{level = 10 : i32, message = "bqp,bpe->bqe"}> : () -> ()
    %cst_52 = arith.constant dense<0.000000e+00> : vector<2x1x32xf32>
    %112 = tpu.matmul %111, %7, %cst_52 {dimension_numbers = #tpu.dot_dimension_numbers<[2], [1], [1], [2], [0, 0, 0, 1, 1, 2], [0], [0]>} : vector<2x1x16xf32>, vector<2x16x32xf32>, vector<2x1x32xf32> -> vector<2x1x32xf32>
    "tpu.trace_stop"() : () -> ()
    %113 = vector.shape_cast %112 : vector<2x1x32xf32> to vector<2x32xf32>
    %114 = vector.extract_strided_slice %18 {offsets = [2, 0], sizes = [2, 128], strides = [1, 1]} : vector<16x128xf32> to vector<2x128xf32>
    %115 = arith.truncf %113 : vector<2x32xf32> to vector<2x32xbf16>
    %cst_53 = arith.constant dense<0.000000e+00> : vector<2x128xf32>
    %116 = tpu.matmul %115, %20, %cst_53 {dimension_numbers = #tpu.dot_dimension_numbers<[1], [0], [0], [1], [0, 0, 1, 1], [], []>} : vector<2x32xbf16>, vector<32x128xbf16>, vector<2x128xf32> -> vector<2x128xf32>
    %117 = arith.addf %114, %116 : vector<2x128xf32>
    %cst_54 = arith.constant dense<0.000000e+00> : vector<2x128xf32>
    %118 = tpu.matmul %93, %21, %cst_54 {dimension_numbers = #tpu.dot_dimension_numbers<[1], [0], [0], [1], [0, 0, 1, 1], [], []>} : vector<2x32xbf16>, vector<32x128xbf16>, vector<2x128xf32> -> vector<2x128xf32>
    %119 = arith.addf %117, %118 : vector<2x128xf32>
    %120 = arith.addf %119, %28 : vector<2x128xf32>
    %121 = vector.extract_strided_slice %120 {offsets = [0, 0], sizes = [2, 32], strides = [1, 1]} : vector<2x128xf32> to vector<2x32xf32>
    %122 = arith.negf %121 : vector<2x32xf32>
    %123 = math.exp %122 : vector<2x32xf32>
    %cst_55 = arith.constant 1.000000e+00 : f32
    %124 = vector.broadcast %cst_55 : f32 to vector<2x32xf32>
    %125 = arith.addf %124, %123 : vector<2x32xf32>
    %126 = arith.divf %124, %125 : vector<2x32xf32>
    %127 = vector.extract_strided_slice %120 {offsets = [0, 32], sizes = [2, 32], strides = [1, 1]} : vector<2x128xf32> to vector<2x32xf32>
    %128 = arith.negf %127 : vector<2x32xf32>
    %129 = math.exp %128 : vector<2x32xf32>
    %cst_56 = arith.constant 1.000000e+00 : f32
    %130 = vector.broadcast %cst_56 : f32 to vector<2x32xf32>
    %131 = arith.addf %130, %129 : vector<2x32xf32>
    %132 = arith.divf %130, %131 : vector<2x32xf32>
    %133 = vector.extract_strided_slice %120 {offsets = [0, 64], sizes = [2, 32], strides = [1, 1]} : vector<2x128xf32> to vector<2x32xf32>
    %134 = math.tanh %133 : vector<2x32xf32>
    %135 = vector.extract_strided_slice %120 {offsets = [0, 96], sizes = [2, 32], strides = [1, 1]} : vector<2x128xf32> to vector<2x32xf32>
    %136 = arith.negf %135 : vector<2x32xf32>
    %137 = math.exp %136 : vector<2x32xf32>
    %cst_57 = arith.constant 1.000000e+00 : f32
    %138 = vector.broadcast %cst_57 : f32 to vector<2x32xf32>
    %139 = arith.addf %138, %137 : vector<2x32xf32>
    %140 = arith.divf %138, %139 : vector<2x32xf32>
    %141 = arith.mulf %132, %81 : vector<2x32xf32>
    %142 = arith.mulf %126, %134 : vector<2x32xf32>
    %143 = arith.addf %141, %142 : vector<2x32xf32>
    %144 = math.tanh %143 : vector<2x32xf32>
    %145 = arith.mulf %140, %144 : vector<2x32xf32>
    %c0_58 = arith.constant 0 : index
    %c1 = arith.constant 1 : index
    %c0_59 = arith.constant 0 : index
    %146 = vector.load %arg17[%c0_58, %c1, %c0_59] : memref<2x8x32xf32, #tpu.memory_space<vmem>>, vector<2x1x32xf32>
    %147 = vector.shape_cast %146 : vector<2x1x32xf32> to vector<2x32xf32>
    %148 = vector.shape_cast %145 : vector<2x32xf32> to vector<2x1x32xf32>
    tpu.vector_store %arg17[%c0_58, %c1, %c0_59], %148 {strides = array<i32>} : memref<2x8x32xf32, #tpu.memory_space<vmem>>, vector<2x1x32xf32>,
    %c0_60 = arith.constant 0 : index
    %c1_61 = arith.constant 1 : index
    %c0_62 = arith.constant 0 : index
    %149 = vector.load %arg18[%c0_60, %c1_61, %c0_62] : memref<2x8x32xf32, #tpu.memory_space<vmem>>, vector<2x1x32xf32>
    %150 = vector.shape_cast %149 : vector<2x1x32xf32> to vector<2x32xf32>
    %151 = vector.shape_cast %113 : vector<2x32xf32> to vector<2x1x32xf32>
    tpu.vector_store %arg18[%c0_60, %c1_61, %c0_62], %151 {strides = array<i32>} : memref<2x8x32xf32, #tpu.memory_space<vmem>>, vector<2x1x32xf32>,
    %c0_63 = arith.constant 0 : index
    %c1_64 = arith.constant 1 : index
    %c0_65 = arith.constant 0 : index
    %152 = vector.load %arg19[%c0_63, %c1_64, %c0_65] : memref<2x8x16xf32, #tpu.memory_space<vmem>>, vector<2x1x16xf32>
    %153 = vector.shape_cast %152 : vector<2x1x16xf32> to vector<2x16xf32>
    %154 = vector.shape_cast %110 : vector<2x16xf32> to vector<2x1x16xf32>
    tpu.vector_store %arg19[%c0_63, %c1_64, %c0_65], %154 {strides = array<i32>} : memref<2x8x16xf32, #tpu.memory_space<vmem>>, vector<2x1x16xf32>,
    %155 = arith.truncf %145 : vector<2x32xf32> to vector<2x32xbf16>
    %cst_66 = arith.constant dense<0.000000e+00> : vector<2x256xf32>
    %156 = tpu.matmul %155, %19, %cst_66 {dimension_numbers = #tpu.dot_dimension_numbers<[1], [0], [0], [1], [0, 0, 1, 1], [], []>} : vector<2x32xbf16>, vector<32x256xbf16>, vector<2x256xf32> -> vector<2x256xf32>
    %157 = vector.shape_cast %156 : vector<2x256xf32> to vector<2x1x256xf32>
    %158 = vector.broadcast %157 : vector<2x1x256xf32> to vector<2x16x256xf32>
    %159 = arith.addf %14, %158 : vector<2x16x256xf32>
    %160 = math.tanh %159 : vector<2x16x256xf32>
    %161 = arith.mulf %160, %25 : vector<2x16x256xf32>
    %cst_67 = arith.constant dense<0.000000e+00> : vector<2x16xf32>
    %162 = vector.multi_reduction <add>, %161, %cst_67 [2] : vector<2x16x256xf32> to vector<2x16xf32>
    %cst_68 = arith.constant dense<0xFF800000> : vector<2xf32>
    %163 = vector.multi_reduction <maximumf>, %162, %cst_68 [1] : vector<2x16xf32> to vector<2xf32>
    %164 = vector.shape_cast %163 : vector<2xf32> to vector<2x1xf32>
    %165 = vector.broadcast %164 : vector<2x1xf32> to vector<2x16xf32>
    %166 = arith.subf %162, %165 : vector<2x16xf32>
    %167 = math.exp %166 : vector<2x16xf32>
    %cst_69 = arith.constant dense<0.000000e+00> : vector<2xf32>
    %168 = vector.multi_reduction <add>, %167, %cst_69 [1] : vector<2x16xf32> to vector<2xf32>
    %169 = vector.shape_cast %168 : vector<2xf32> to vector<2x1xf32>
    %170 = tpu.reciprocal %169 {approx = true} : vector<2x1xf32> -> vector<2x1xf32>
    %171 = vector.broadcast %170 : vector<2x1xf32> to vector<2x16xf32>
    %172 = arith.mulf %167, %171 : vector<2x16xf32>
    %173 = vector.shape_cast %172 : vector<2x16xf32> to vector<2x1x16xf32>
    "tpu.trace_start"() <{level = 10 : i32, message = "bqp,bpe->bqe"}> : () -> ()
    %cst_70 = arith.constant dense<0.000000e+00> : vector<2x1x32xf32>
    %174 = tpu.matmul %173, %7, %cst_70 {dimension_numbers = #tpu.dot_dimension_numbers<[2], [1], [1], [2], [0, 0, 0, 1, 1, 2], [0], [0]>} : vector<2x1x16xf32>, vector<2x16x32xf32>, vector<2x1x32xf32> -> vector<2x1x32xf32>
    "tpu.trace_stop"() : () -> ()
    %175 = vector.shape_cast %174 : vector<2x1x32xf32> to vector<2x32xf32>
    %176 = vector.extract_strided_slice %18 {offsets = [4, 0], sizes = [2, 128], strides = [1, 1]} : vector<16x128xf32> to vector<2x128xf32>
    %177 = arith.truncf %175 : vector<2x32xf32> to vector<2x32xbf16>
    %cst_71 = arith.constant dense<0.000000e+00> : vector<2x128xf32>
    %178 = tpu.matmul %177, %20, %cst_71 {dimension_numbers = #tpu.dot_dimension_numbers<[1], [0], [0], [1], [0, 0, 1, 1], [], []>} : vector<2x32xbf16>, vector<32x128xbf16>, vector<2x128xf32> -> vector<2x128xf32>
    %179 = arith.addf %176, %178 : vector<2x128xf32>
    %cst_72 = arith.constant dense<0.000000e+00> : vector<2x128xf32>
    %180 = tpu.matmul %155, %21, %cst_72 {dimension_numbers = #tpu.dot_dimension_numbers<[1], [0], [0], [1], [0, 0, 1, 1], [], []>} : vector<2x32xbf16>, vector<32x128xbf16>, vector<2x128xf32> -> vector<2x128xf32>
    %181 = arith.addf %179, %180 : vector<2x128xf32>
    %182 = arith.addf %181, %28 : vector<2x128xf32>
    %183 = vector.extract_strided_slice %182 {offsets = [0, 0], sizes = [2, 32], strides = [1, 1]} : vector<2x128xf32> to vector<2x32xf32>
    %184 = arith.negf %183 : vector<2x32xf32>
    %185 = math.exp %184 : vector<2x32xf32>
    %cst_73 = arith.constant 1.000000e+00 : f32
    %186 = vector.broadcast %cst_73 : f32 to vector<2x32xf32>
    %187 = arith.addf %186, %185 : vector<2x32xf32>
    %188 = arith.divf %186, %187 : vector<2x32xf32>
    %189 = vector.extract_strided_slice %182 {offsets = [0, 32], sizes = [2, 32], strides = [1, 1]} : vector<2x128xf32> to vector<2x32xf32>
    %190 = arith.negf %189 : vector<2x32xf32>
    %191 = math.exp %190 : vector<2x32xf32>
    %cst_74 = arith.constant 1.000000e+00 : f32
    %192 = vector.broadcast %cst_74 : f32 to vector<2x32xf32>
    %193 = arith.addf %192, %191 : vector<2x32xf32>
    %194 = arith.divf %192, %193 : vector<2x32xf32>
    %195 = vector.extract_strided_slice %182 {offsets = [0, 64], sizes = [2, 32], strides = [1, 1]} : vector<2x128xf32> to vector<2x32xf32>
    %196 = math.tanh %195 : vector<2x32xf32>
    %197 = vector.extract_strided_slice %182 {offsets = [0, 96], sizes = [2, 32], strides = [1, 1]} : vector<2x128xf32> to vector<2x32xf32>
    %198 = arith.negf %197 : vector<2x32xf32>
    %199 = math.exp %198 : vector<2x32xf32>
    %cst_75 = arith.constant 1.000000e+00 : f32
    %200 = vector.broadcast %cst_75 : f32 to vector<2x32xf32>
    %201 = arith.addf %200, %199 : vector<2x32xf32>
    %202 = arith.divf %200, %201 : vector<2x32xf32>
    %203 = arith.mulf %194, %143 : vector<2x32xf32>
    %204 = arith.mulf %188, %196 : vector<2x32xf32>
    %205 = arith.addf %203, %204 : vector<2x32xf32>
    %206 = math.tanh %205 : vector<2x32xf32>
    %207 = arith.mulf %202, %206 : vector<2x32xf32>
    %c0_76 = arith.constant 0 : index
    %c2 = arith.constant 2 : index
    %c0_77 = arith.constant 0 : index
    %208 = vector.load %arg17[%c0_76, %c2, %c0_77] : memref<2x8x32xf32, #tpu.memory_space<vmem>>, vector<2x1x32xf32>
    %209 = vector.shape_cast %208 : vector<2x1x32xf32> to vector<2x32xf32>
    %210 = vector.shape_cast %207 : vector<2x32xf32> to vector<2x1x32xf32>
    tpu.vector_store %arg17[%c0_76, %c2, %c0_77], %210 {strides = array<i32>} : memref<2x8x32xf32, #tpu.memory_space<vmem>>, vector<2x1x32xf32>,
    %c0_78 = arith.constant 0 : index
    %c2_79 = arith.constant 2 : index
    %c0_80 = arith.constant 0 : index
    %211 = vector.load %arg18[%c0_78, %c2_79, %c0_80] : memref<2x8x32xf32, #tpu.memory_space<vmem>>, vector<2x1x32xf32>
    %212 = vector.shape_cast %211 : vector<2x1x32xf32> to vector<2x32xf32>
    %213 = vector.shape_cast %175 : vector<2x32xf32> to vector<2x1x32xf32>
    tpu.vector_store %arg18[%c0_78, %c2_79, %c0_80], %213 {strides = array<i32>} : memref<2x8x32xf32, #tpu.memory_space<vmem>>, vector<2x1x32xf32>,
    %c0_81 = arith.constant 0 : index
    %c2_82 = arith.constant 2 : index
    %c0_83 = arith.constant 0 : index
    %214 = vector.load %arg19[%c0_81, %c2_82, %c0_83] : memref<2x8x16xf32, #tpu.memory_space<vmem>>, vector<2x1x16xf32>
    %215 = vector.shape_cast %214 : vector<2x1x16xf32> to vector<2x16xf32>
    %216 = vector.shape_cast %172 : vector<2x16xf32> to vector<2x1x16xf32>
    tpu.vector_store %arg19[%c0_81, %c2_82, %c0_83], %216 {strides = array<i32>} : memref<2x8x16xf32, #tpu.memory_space<vmem>>, vector<2x1x16xf32>,
    %217 = arith.truncf %207 : vector<2x32xf32> to vector<2x32xbf16>
    %cst_84 = arith.constant dense<0.000000e+00> : vector<2x256xf32>
    %218 = tpu.matmul %217, %19, %cst_84 {dimension_numbers = #tpu.dot_dimension_numbers<[1], [0], [0], [1], [0, 0, 1, 1], [], []>} : vector<2x32xbf16>, vector<32x256xbf16>, vector<2x256xf32> -> vector<2x256xf32>
    %219 = vector.shape_cast %218 : vector<2x256xf32> to vector<2x1x256xf32>
    %220 = vector.broadcast %219 : vector<2x1x256xf32> to vector<2x16x256xf32>
    %221 = arith.addf %14, %220 : vector<2x16x256xf32>
    %222 = math.tanh %221 : vector<2x16x256xf32>
    %223 = arith.mulf %222, %25 : vector<2x16x256xf32>
    %cst_85 = arith.constant dense<0.000000e+00> : vector<2x16xf32>
    %224 = vector.multi_reduction <add>, %223, %cst_85 [2] : vector<2x16x256xf32> to vector<2x16xf32>
    %cst_86 = arith.constant dense<0xFF800000> : vector<2xf32>
    %225 = vector.multi_reduction <maximumf>, %224, %cst_86 [1] : vector<2x16xf32> to vector<2xf32>
    %226 = vector.shape_cast %225 : vector<2xf32> to vector<2x1xf32>
    %227 = vector.broadcast %226 : vector<2x1xf32> to vector<2x16xf32>
    %228 = arith.subf %224, %227 : vector<2x16xf32>
    %229 = math.exp %228 : vector<2x16xf32>
    %cst_87 = arith.constant dense<0.000000e+00> : vector<2xf32>
    %230 = vector.multi_reduction <add>, %229, %cst_87 [1] : vector<2x16xf32> to vector<2xf32>
    %231 = vector.shape_cast %230 : vector<2xf32> to vector<2x1xf32>
    %232 = tpu.reciprocal %231 {approx = true} : vector<2x1xf32> -> vector<2x1xf32>
    %233 = vector.broadcast %232 : vector<2x1xf32> to vector<2x16xf32>
    %234 = arith.mulf %229, %233 : vector<2x16xf32>
    %235 = vector.shape_cast %234 : vector<2x16xf32> to vector<2x1x16xf32>
    "tpu.trace_start"() <{level = 10 : i32, message = "bqp,bpe->bqe"}> : () -> ()
    %cst_88 = arith.constant dense<0.000000e+00> : vector<2x1x32xf32>
    %236 = tpu.matmul %235, %7, %cst_88 {dimension_numbers = #tpu.dot_dimension_numbers<[2], [1], [1], [2], [0, 0, 0, 1, 1, 2], [0], [0]>} : vector<2x1x16xf32>, vector<2x16x32xf32>, vector<2x1x32xf32> -> vector<2x1x32xf32>
    "tpu.trace_stop"() : () -> ()
    %237 = vector.shape_cast %236 : vector<2x1x32xf32> to vector<2x32xf32>
    %238 = vector.extract_strided_slice %18 {offsets = [6, 0], sizes = [2, 128], strides = [1, 1]} : vector<16x128xf32> to vector<2x128xf32>
    %239 = arith.truncf %237 : vector<2x32xf32> to vector<2x32xbf16>
    %cst_89 = arith.constant dense<0.000000e+00> : vector<2x128xf32>
    %240 = tpu.matmul %239, %20, %cst_89 {dimension_numbers = #tpu.dot_dimension_numbers<[1], [0], [0], [1], [0, 0, 1, 1], [], []>} : vector<2x32xbf16>, vector<32x128xbf16>, vector<2x128xf32> -> vector<2x128xf32>
    %241 = arith.addf %238, %240 : vector<2x128xf32>
    %cst_90 = arith.constant dense<0.000000e+00> : vector<2x128xf32>
    %242 = tpu.matmul %217, %21, %cst_90 {dimension_numbers = #tpu.dot_dimension_numbers<[1], [0], [0], [1], [0, 0, 1, 1], [], []>} : vector<2x32xbf16>, vector<32x128xbf16>, vector<2x128xf32> -> vector<2x128xf32>
    %243 = arith.addf %241, %242 : vector<2x128xf32>
    %244 = arith.addf %243, %28 : vector<2x128xf32>
    %245 = vector.extract_strided_slice %244 {offsets = [0, 0], sizes = [2, 32], strides = [1, 1]} : vector<2x128xf32> to vector<2x32xf32>
    %246 = arith.negf %245 : vector<2x32xf32>
    %247 = math.exp %246 : vector<2x32xf32>
    %cst_91 = arith.constant 1.000000e+00 : f32
    %248 = vector.broadcast %cst_91 : f32 to vector<2x32xf32>
    %249 = arith.addf %248, %247 : vector<2x32xf32>
    %250 = arith.divf %248, %249 : vector<2x32xf32>
    %251 = vector.extract_strided_slice %244 {offsets = [0, 32], sizes = [2, 32], strides = [1, 1]} : vector<2x128xf32> to vector<2x32xf32>
    %252 = arith.negf %251 : vector<2x32xf32>
    %253 = math.exp %252 : vector<2x32xf32>
    %cst_92 = arith.constant 1.000000e+00 : f32
    %254 = vector.broadcast %cst_92 : f32 to vector<2x32xf32>
    %255 = arith.addf %254, %253 : vector<2x32xf32>
    %256 = arith.divf %254, %255 : vector<2x32xf32>
    %257 = vector.extract_strided_slice %244 {offsets = [0, 64], sizes = [2, 32], strides = [1, 1]} : vector<2x128xf32> to vector<2x32xf32>
    %258 = math.tanh %257 : vector<2x32xf32>
    %259 = vector.extract_strided_slice %244 {offsets = [0, 96], sizes = [2, 32], strides = [1, 1]} : vector<2x128xf32> to vector<2x32xf32>
    %260 = arith.negf %259 : vector<2x32xf32>
    %261 = math.exp %260 : vector<2x32xf32>
    %cst_93 = arith.constant 1.000000e+00 : f32
    %262 = vector.broadcast %cst_93 : f32 to vector<2x32xf32>
    %263 = arith.addf %262, %261 : vector<2x32xf32>
    %264 = arith.divf %262, %263 : vector<2x32xf32>
    %265 = arith.mulf %256, %205 : vector<2x32xf32>
    %266 = arith.mulf %250, %258 : vector<2x32xf32>
    %267 = arith.addf %265, %266 : vector<2x32xf32>
    %268 = math.tanh %267 : vector<2x32xf32>
    %269 = arith.mulf %264, %268 : vector<2x32xf32>
    %c0_94 = arith.constant 0 : index
    %c3 = arith.constant 3 : index
    %c0_95 = arith.constant 0 : index
    %270 = vector.load %arg17[%c0_94, %c3, %c0_95] : memref<2x8x32xf32, #tpu.memory_space<vmem>>, vector<2x1x32xf32>
    %271 = vector.shape_cast %270 : vector<2x1x32xf32> to vector<2x32xf32>
    %272 = vector.shape_cast %269 : vector<2x32xf32> to vector<2x1x32xf32>
    tpu.vector_store %arg17[%c0_94, %c3, %c0_95], %272 {strides = array<i32>} : memref<2x8x32xf32, #tpu.memory_space<vmem>>, vector<2x1x32xf32>,
    %c0_96 = arith.constant 0 : index
    %c3_97 = arith.constant 3 : index
    %c0_98 = arith.constant 0 : index
    %273 = vector.load %arg18[%c0_96, %c3_97, %c0_98] : memref<2x8x32xf32, #tpu.memory_space<vmem>>, vector<2x1x32xf32>
    %274 = vector.shape_cast %273 : vector<2x1x32xf32> to vector<2x32xf32>
    %275 = vector.shape_cast %237 : vector<2x32xf32> to vector<2x1x32xf32>
    tpu.vector_store %arg18[%c0_96, %c3_97, %c0_98], %275 {strides = array<i32>} : memref<2x8x32xf32, #tpu.memory_space<vmem>>, vector<2x1x32xf32>,
    %c0_99 = arith.constant 0 : index
    %c3_100 = arith.constant 3 : index
    %c0_101 = arith.constant 0 : index
    %276 = vector.load %arg19[%c0_99, %c3_100, %c0_101] : memref<2x8x16xf32, #tpu.memory_space<vmem>>, vector<2x1x16xf32>
    %277 = vector.shape_cast %276 : vector<2x1x16xf32> to vector<2x16xf32>
    %278 = vector.shape_cast %234 : vector<2x16xf32> to vector<2x1x16xf32>
    tpu.vector_store %arg19[%c0_99, %c3_100, %c0_101], %278 {strides = array<i32>} : memref<2x8x16xf32, #tpu.memory_space<vmem>>, vector<2x1x16xf32>,
    %279 = arith.truncf %269 : vector<2x32xf32> to vector<2x32xbf16>
    %cst_102 = arith.constant dense<0.000000e+00> : vector<2x256xf32>
    %280 = tpu.matmul %279, %19, %cst_102 {dimension_numbers = #tpu.dot_dimension_numbers<[1], [0], [0], [1], [0, 0, 1, 1], [], []>} : vector<2x32xbf16>, vector<32x256xbf16>, vector<2x256xf32> -> vector<2x256xf32>
    %281 = vector.shape_cast %280 : vector<2x256xf32> to vector<2x1x256xf32>
    %282 = vector.broadcast %281 : vector<2x1x256xf32> to vector<2x16x256xf32>
    %283 = arith.addf %14, %282 : vector<2x16x256xf32>
    %284 = math.tanh %283 : vector<2x16x256xf32>
    %285 = arith.mulf %284, %25 : vector<2x16x256xf32>
    %cst_103 = arith.constant dense<0.000000e+00> : vector<2x16xf32>
    %286 = vector.multi_reduction <add>, %285, %cst_103 [2] : vector<2x16x256xf32> to vector<2x16xf32>
    %cst_104 = arith.constant dense<0xFF800000> : vector<2xf32>
    %287 = vector.multi_reduction <maximumf>, %286, %cst_104 [1] : vector<2x16xf32> to vector<2xf32>
    %288 = vector.shape_cast %287 : vector<2xf32> to vector<2x1xf32>
    %289 = vector.broadcast %288 : vector<2x1xf32> to vector<2x16xf32>
    %290 = arith.subf %286, %289 : vector<2x16xf32>
    %291 = math.exp %290 : vector<2x16xf32>
    %cst_105 = arith.constant dense<0.000000e+00> : vector<2xf32>
    %292 = vector.multi_reduction <add>, %291, %cst_105 [1] : vector<2x16xf32> to vector<2xf32>
    %293 = vector.shape_cast %292 : vector<2xf32> to vector<2x1xf32>
    %294 = tpu.reciprocal %293 {approx = true} : vector<2x1xf32> -> vector<2x1xf32>
    %295 = vector.broadcast %294 : vector<2x1xf32> to vector<2x16xf32>
    %296 = arith.mulf %291, %295 : vector<2x16xf32>
    %297 = vector.shape_cast %296 : vector<2x16xf32> to vector<2x1x16xf32>
    "tpu.trace_start"() <{level = 10 : i32, message = "bqp,bpe->bqe"}> : () -> ()
    %cst_106 = arith.constant dense<0.000000e+00> : vector<2x1x32xf32>
    %298 = tpu.matmul %297, %7, %cst_106 {dimension_numbers = #tpu.dot_dimension_numbers<[2], [1], [1], [2], [0, 0, 0, 1, 1, 2], [0], [0]>} : vector<2x1x16xf32>, vector<2x16x32xf32>, vector<2x1x32xf32> -> vector<2x1x32xf32>
    "tpu.trace_stop"() : () -> ()
    %299 = vector.shape_cast %298 : vector<2x1x32xf32> to vector<2x32xf32>
    %300 = vector.extract_strided_slice %18 {offsets = [8, 0], sizes = [2, 128], strides = [1, 1]} : vector<16x128xf32> to vector<2x128xf32>
    %301 = arith.truncf %299 : vector<2x32xf32> to vector<2x32xbf16>
    %cst_107 = arith.constant dense<0.000000e+00> : vector<2x128xf32>
    %302 = tpu.matmul %301, %20, %cst_107 {dimension_numbers = #tpu.dot_dimension_numbers<[1], [0], [0], [1], [0, 0, 1, 1], [], []>} : vector<2x32xbf16>, vector<32x128xbf16>, vector<2x128xf32> -> vector<2x128xf32>
    %303 = arith.addf %300, %302 : vector<2x128xf32>
    %cst_108 = arith.constant dense<0.000000e+00> : vector<2x128xf32>
    %304 = tpu.matmul %279, %21, %cst_108 {dimension_numbers = #tpu.dot_dimension_numbers<[1], [0], [0], [1], [0, 0, 1, 1], [], []>} : vector<2x32xbf16>, vector<32x128xbf16>, vector<2x128xf32> -> vector<2x128xf32>
    %305 = arith.addf %303, %304 : vector<2x128xf32>
    %306 = arith.addf %305, %28 : vector<2x128xf32>
    %307 = vector.extract_strided_slice %306 {offsets = [0, 0], sizes = [2, 32], strides = [1, 1]} : vector<2x128xf32> to vector<2x32xf32>
    %308 = arith.negf %307 : vector<2x32xf32>
    %309 = math.exp %308 : vector<2x32xf32>
    %cst_109 = arith.constant 1.000000e+00 : f32
    %310 = vector.broadcast %cst_109 : f32 to vector<2x32xf32>
    %311 = arith.addf %310, %309 : vector<2x32xf32>
    %312 = arith.divf %310, %311 : vector<2x32xf32>
    %313 = vector.extract_strided_slice %306 {offsets = [0, 32], sizes = [2, 32], strides = [1, 1]} : vector<2x128xf32> to vector<2x32xf32>
    %314 = arith.negf %313 : vector<2x32xf32>
    %315 = math.exp %314 : vector<2x32xf32>
    %cst_110 = arith.constant 1.000000e+00 : f32
    %316 = vector.broadcast %cst_110 : f32 to vector<2x32xf32>
    %317 = arith.addf %316, %315 : vector<2x32xf32>
    %318 = arith.divf %316, %317 : vector<2x32xf32>
    %319 = vector.extract_strided_slice %306 {offsets = [0, 64], sizes = [2, 32], strides = [1, 1]} : vector<2x128xf32> to vector<2x32xf32>
    %320 = math.tanh %319 : vector<2x32xf32>
    %321 = vector.extract_strided_slice %306 {offsets = [0, 96], sizes = [2, 32], strides = [1, 1]} : vector<2x128xf32> to vector<2x32xf32>
    %322 = arith.negf %321 : vector<2x32xf32>
    %323 = math.exp %322 : vector<2x32xf32>
    %cst_111 = arith.constant 1.000000e+00 : f32
    %324 = vector.broadcast %cst_111 : f32 to vector<2x32xf32>
    %325 = arith.addf %324, %323 : vector<2x32xf32>
    %326 = arith.divf %324, %325 : vector<2x32xf32>
    %327 = arith.mulf %318, %267 : vector<2x32xf32>
    %328 = arith.mulf %312, %320 : vector<2x32xf32>
    %329 = arith.addf %327, %328 : vector<2x32xf32>
    %330 = math.tanh %329 : vector<2x32xf32>
    %331 = arith.mulf %326, %330 : vector<2x32xf32>
    %c0_112 = arith.constant 0 : index
    %c4 = arith.constant 4 : index
    %c0_113 = arith.constant 0 : index
    %332 = vector.load %arg17[%c0_112, %c4, %c0_113] : memref<2x8x32xf32, #tpu.memory_space<vmem>>, vector<2x1x32xf32>
    %333 = vector.shape_cast %332 : vector<2x1x32xf32> to vector<2x32xf32>
    %334 = vector.shape_cast %331 : vector<2x32xf32> to vector<2x1x32xf32>
    tpu.vector_store %arg17[%c0_112, %c4, %c0_113], %334 {strides = array<i32>} : memref<2x8x32xf32, #tpu.memory_space<vmem>>, vector<2x1x32xf32>,
    %c0_114 = arith.constant 0 : index
    %c4_115 = arith.constant 4 : index
    %c0_116 = arith.constant 0 : index
    %335 = vector.load %arg18[%c0_114, %c4_115, %c0_116] : memref<2x8x32xf32, #tpu.memory_space<vmem>>, vector<2x1x32xf32>
    %336 = vector.shape_cast %335 : vector<2x1x32xf32> to vector<2x32xf32>
    %337 = vector.shape_cast %299 : vector<2x32xf32> to vector<2x1x32xf32>
    tpu.vector_store %arg18[%c0_114, %c4_115, %c0_116], %337 {strides = array<i32>} : memref<2x8x32xf32, #tpu.memory_space<vmem>>, vector<2x1x32xf32>,
    %c0_117 = arith.constant 0 : index
    %c4_118 = arith.constant 4 : index
    %c0_119 = arith.constant 0 : index
    %338 = vector.load %arg19[%c0_117, %c4_118, %c0_119] : memref<2x8x16xf32, #tpu.memory_space<vmem>>, vector<2x1x16xf32>
    %339 = vector.shape_cast %338 : vector<2x1x16xf32> to vector<2x16xf32>
    %340 = vector.shape_cast %296 : vector<2x16xf32> to vector<2x1x16xf32>
    tpu.vector_store %arg19[%c0_117, %c4_118, %c0_119], %340 {strides = array<i32>} : memref<2x8x16xf32, #tpu.memory_space<vmem>>, vector<2x1x16xf32>,
    %341 = arith.truncf %331 : vector<2x32xf32> to vector<2x32xbf16>
    %cst_120 = arith.constant dense<0.000000e+00> : vector<2x256xf32>
    %342 = tpu.matmul %341, %19, %cst_120 {dimension_numbers = #tpu.dot_dimension_numbers<[1], [0], [0], [1], [0, 0, 1, 1], [], []>} : vector<2x32xbf16>, vector<32x256xbf16>, vector<2x256xf32> -> vector<2x256xf32>
    %343 = vector.shape_cast %342 : vector<2x256xf32> to vector<2x1x256xf32>
    %344 = vector.broadcast %343 : vector<2x1x256xf32> to vector<2x16x256xf32>
    %345 = arith.addf %14, %344 : vector<2x16x256xf32>
    %346 = math.tanh %345 : vector<2x16x256xf32>
    %347 = arith.mulf %346, %25 : vector<2x16x256xf32>
    %cst_121 = arith.constant dense<0.000000e+00> : vector<2x16xf32>
    %348 = vector.multi_reduction <add>, %347, %cst_121 [2] : vector<2x16x256xf32> to vector<2x16xf32>
    %cst_122 = arith.constant dense<0xFF800000> : vector<2xf32>
    %349 = vector.multi_reduction <maximumf>, %348, %cst_122 [1] : vector<2x16xf32> to vector<2xf32>
    %350 = vector.shape_cast %349 : vector<2xf32> to vector<2x1xf32>
    %351 = vector.broadcast %350 : vector<2x1xf32> to vector<2x16xf32>
    %352 = arith.subf %348, %351 : vector<2x16xf32>
    %353 = math.exp %352 : vector<2x16xf32>
    %cst_123 = arith.constant dense<0.000000e+00> : vector<2xf32>
    %354 = vector.multi_reduction <add>, %353, %cst_123 [1] : vector<2x16xf32> to vector<2xf32>
    %355 = vector.shape_cast %354 : vector<2xf32> to vector<2x1xf32>
    %356 = tpu.reciprocal %355 {approx = true} : vector<2x1xf32> -> vector<2x1xf32>
    %357 = vector.broadcast %356 : vector<2x1xf32> to vector<2x16xf32>
    %358 = arith.mulf %353, %357 : vector<2x16xf32>
    %359 = vector.shape_cast %358 : vector<2x16xf32> to vector<2x1x16xf32>
    "tpu.trace_start"() <{level = 10 : i32, message = "bqp,bpe->bqe"}> : () -> ()
    %cst_124 = arith.constant dense<0.000000e+00> : vector<2x1x32xf32>
    %360 = tpu.matmul %359, %7, %cst_124 {dimension_numbers = #tpu.dot_dimension_numbers<[2], [1], [1], [2], [0, 0, 0, 1, 1, 2], [0], [0]>} : vector<2x1x16xf32>, vector<2x16x32xf32>, vector<2x1x32xf32> -> vector<2x1x32xf32>
    "tpu.trace_stop"() : () -> ()
    %361 = vector.shape_cast %360 : vector<2x1x32xf32> to vector<2x32xf32>
    %362 = vector.extract_strided_slice %18 {offsets = [10, 0], sizes = [2, 128], strides = [1, 1]} : vector<16x128xf32> to vector<2x128xf32>
    %363 = arith.truncf %361 : vector<2x32xf32> to vector<2x32xbf16>
    %cst_125 = arith.constant dense<0.000000e+00> : vector<2x128xf32>
    %364 = tpu.matmul %363, %20, %cst_125 {dimension_numbers = #tpu.dot_dimension_numbers<[1], [0], [0], [1], [0, 0, 1, 1], [], []>} : vector<2x32xbf16>, vector<32x128xbf16>, vector<2x128xf32> -> vector<2x128xf32>
    %365 = arith.addf %362, %364 : vector<2x128xf32>
    %cst_126 = arith.constant dense<0.000000e+00> : vector<2x128xf32>
    %366 = tpu.matmul %341, %21, %cst_126 {dimension_numbers = #tpu.dot_dimension_numbers<[1], [0], [0], [1], [0, 0, 1, 1], [], []>} : vector<2x32xbf16>, vector<32x128xbf16>, vector<2x128xf32> -> vector<2x128xf32>
    %367 = arith.addf %365, %366 : vector<2x128xf32>
    %368 = arith.addf %367, %28 : vector<2x128xf32>
    %369 = vector.extract_strided_slice %368 {offsets = [0, 0], sizes = [2, 32], strides = [1, 1]} : vector<2x128xf32> to vector<2x32xf32>
    %370 = arith.negf %369 : vector<2x32xf32>
    %371 = math.exp %370 : vector<2x32xf32>
    %cst_127 = arith.constant 1.000000e+00 : f32
    %372 = vector.broadcast %cst_127 : f32 to vector<2x32xf32>
    %373 = arith.addf %372, %371 : vector<2x32xf32>
    %374 = arith.divf %372, %373 : vector<2x32xf32>
    %375 = vector.extract_strided_slice %368 {offsets = [0, 32], sizes = [2, 32], strides = [1, 1]} : vector<2x128xf32> to vector<2x32xf32>
    %376 = arith.negf %375 : vector<2x32xf32>
    %377 = math.exp %376 : vector<2x32xf32>
    %cst_128 = arith.constant 1.000000e+00 : f32
    %378 = vector.broadcast %cst_128 : f32 to vector<2x32xf32>
    %379 = arith.addf %378, %377 : vector<2x32xf32>
    %380 = arith.divf %378, %379 : vector<2x32xf32>
    %381 = vector.extract_strided_slice %368 {offsets = [0, 64], sizes = [2, 32], strides = [1, 1]} : vector<2x128xf32> to vector<2x32xf32>
    %382 = math.tanh %381 : vector<2x32xf32>
    %383 = vector.extract_strided_slice %368 {offsets = [0, 96], sizes = [2, 32], strides = [1, 1]} : vector<2x128xf32> to vector<2x32xf32>
    %384 = arith.negf %383 : vector<2x32xf32>
    %385 = math.exp %384 : vector<2x32xf32>
    %cst_129 = arith.constant 1.000000e+00 : f32
    %386 = vector.broadcast %cst_129 : f32 to vector<2x32xf32>
    %387 = arith.addf %386, %385 : vector<2x32xf32>
    %388 = arith.divf %386, %387 : vector<2x32xf32>
    %389 = arith.mulf %380, %329 : vector<2x32xf32>
    %390 = arith.mulf %374, %382 : vector<2x32xf32>
    %391 = arith.addf %389, %390 : vector<2x32xf32>
    %392 = math.tanh %391 : vector<2x32xf32>
    %393 = arith.mulf %388, %392 : vector<2x32xf32>
    %c0_130 = arith.constant 0 : index
    %c5 = arith.constant 5 : index
    %c0_131 = arith.constant 0 : index
    %394 = vector.load %arg17[%c0_130, %c5, %c0_131] : memref<2x8x32xf32, #tpu.memory_space<vmem>>, vector<2x1x32xf32>
    %395 = vector.shape_cast %394 : vector<2x1x32xf32> to vector<2x32xf32>
    %396 = vector.shape_cast %393 : vector<2x32xf32> to vector<2x1x32xf32>
    tpu.vector_store %arg17[%c0_130, %c5, %c0_131], %396 {strides = array<i32>} : memref<2x8x32xf32, #tpu.memory_space<vmem>>, vector<2x1x32xf32>,
    %c0_132 = arith.constant 0 : index
    %c5_133 = arith.constant 5 : index
    %c0_134 = arith.constant 0 : index
    %397 = vector.load %arg18[%c0_132, %c5_133, %c0_134] : memref<2x8x32xf32, #tpu.memory_space<vmem>>, vector<2x1x32xf32>
    %398 = vector.shape_cast %397 : vector<2x1x32xf32> to vector<2x32xf32>
    %399 = vector.shape_cast %361 : vector<2x32xf32> to vector<2x1x32xf32>
    tpu.vector_store %arg18[%c0_132, %c5_133, %c0_134], %399 {strides = array<i32>} : memref<2x8x32xf32, #tpu.memory_space<vmem>>, vector<2x1x32xf32>,
    %c0_135 = arith.constant 0 : index
    %c5_136 = arith.constant 5 : index
    %c0_137 = arith.constant 0 : index
    %400 = vector.load %arg19[%c0_135, %c5_136, %c0_137] : memref<2x8x16xf32, #tpu.memory_space<vmem>>, vector<2x1x16xf32>
    %401 = vector.shape_cast %400 : vector<2x1x16xf32> to vector<2x16xf32>
    %402 = vector.shape_cast %358 : vector<2x16xf32> to vector<2x1x16xf32>
    tpu.vector_store %arg19[%c0_135, %c5_136, %c0_137], %402 {strides = array<i32>} : memref<2x8x16xf32, #tpu.memory_space<vmem>>, vector<2x1x16xf32>,
    %403 = arith.truncf %393 : vector<2x32xf32> to vector<2x32xbf16>
    %cst_138 = arith.constant dense<0.000000e+00> : vector<2x256xf32>
    %404 = tpu.matmul %403, %19, %cst_138 {dimension_numbers = #tpu.dot_dimension_numbers<[1], [0], [0], [1], [0, 0, 1, 1], [], []>} : vector<2x32xbf16>, vector<32x256xbf16>, vector<2x256xf32> -> vector<2x256xf32>
    %405 = vector.shape_cast %404 : vector<2x256xf32> to vector<2x1x256xf32>
    %406 = vector.broadcast %405 : vector<2x1x256xf32> to vector<2x16x256xf32>
    %407 = arith.addf %14, %406 : vector<2x16x256xf32>
    %408 = math.tanh %407 : vector<2x16x256xf32>
    %409 = arith.mulf %408, %25 : vector<2x16x256xf32>
    %cst_139 = arith.constant dense<0.000000e+00> : vector<2x16xf32>
    %410 = vector.multi_reduction <add>, %409, %cst_139 [2] : vector<2x16x256xf32> to vector<2x16xf32>
    %cst_140 = arith.constant dense<0xFF800000> : vector<2xf32>
    %411 = vector.multi_reduction <maximumf>, %410, %cst_140 [1] : vector<2x16xf32> to vector<2xf32>
    %412 = vector.shape_cast %411 : vector<2xf32> to vector<2x1xf32>
    %413 = vector.broadcast %412 : vector<2x1xf32> to vector<2x16xf32>
    %414 = arith.subf %410, %413 : vector<2x16xf32>
    %415 = math.exp %414 : vector<2x16xf32>
    %cst_141 = arith.constant dense<0.000000e+00> : vector<2xf32>
    %416 = vector.multi_reduction <add>, %415, %cst_141 [1] : vector<2x16xf32> to vector<2xf32>
    %417 = vector.shape_cast %416 : vector<2xf32> to vector<2x1xf32>
    %418 = tpu.reciprocal %417 {approx = true} : vector<2x1xf32> -> vector<2x1xf32>
    %419 = vector.broadcast %418 : vector<2x1xf32> to vector<2x16xf32>
    %420 = arith.mulf %415, %419 : vector<2x16xf32>
    %421 = vector.shape_cast %420 : vector<2x16xf32> to vector<2x1x16xf32>
    "tpu.trace_start"() <{level = 10 : i32, message = "bqp,bpe->bqe"}> : () -> ()
    %cst_142 = arith.constant dense<0.000000e+00> : vector<2x1x32xf32>
    %422 = tpu.matmul %421, %7, %cst_142 {dimension_numbers = #tpu.dot_dimension_numbers<[2], [1], [1], [2], [0, 0, 0, 1, 1, 2], [0], [0]>} : vector<2x1x16xf32>, vector<2x16x32xf32>, vector<2x1x32xf32> -> vector<2x1x32xf32>
    "tpu.trace_stop"() : () -> ()
    %423 = vector.shape_cast %422 : vector<2x1x32xf32> to vector<2x32xf32>
    %424 = vector.extract_strided_slice %18 {offsets = [12, 0], sizes = [2, 128], strides = [1, 1]} : vector<16x128xf32> to vector<2x128xf32>
    %425 = arith.truncf %423 : vector<2x32xf32> to vector<2x32xbf16>
    %cst_143 = arith.constant dense<0.000000e+00> : vector<2x128xf32>
    %426 = tpu.matmul %425, %20, %cst_143 {dimension_numbers = #tpu.dot_dimension_numbers<[1], [0], [0], [1], [0, 0, 1, 1], [], []>} : vector<2x32xbf16>, vector<32x128xbf16>, vector<2x128xf32> -> vector<2x128xf32>
    %427 = arith.addf %424, %426 : vector<2x128xf32>
    %cst_144 = arith.constant dense<0.000000e+00> : vector<2x128xf32>
    %428 = tpu.matmul %403, %21, %cst_144 {dimension_numbers = #tpu.dot_dimension_numbers<[1], [0], [0], [1], [0, 0, 1, 1], [], []>} : vector<2x32xbf16>, vector<32x128xbf16>, vector<2x128xf32> -> vector<2x128xf32>
    %429 = arith.addf %427, %428 : vector<2x128xf32>
    %430 = arith.addf %429, %28 : vector<2x128xf32>
    %431 = vector.extract_strided_slice %430 {offsets = [0, 0], sizes = [2, 32], strides = [1, 1]} : vector<2x128xf32> to vector<2x32xf32>
    %432 = arith.negf %431 : vector<2x32xf32>
    %433 = math.exp %432 : vector<2x32xf32>
    %cst_145 = arith.constant 1.000000e+00 : f32
    %434 = vector.broadcast %cst_145 : f32 to vector<2x32xf32>
    %435 = arith.addf %434, %433 : vector<2x32xf32>
    %436 = arith.divf %434, %435 : vector<2x32xf32>
    %437 = vector.extract_strided_slice %430 {offsets = [0, 32], sizes = [2, 32], strides = [1, 1]} : vector<2x128xf32> to vector<2x32xf32>
    %438 = arith.negf %437 : vector<2x32xf32>
    %439 = math.exp %438 : vector<2x32xf32>
    %cst_146 = arith.constant 1.000000e+00 : f32
    %440 = vector.broadcast %cst_146 : f32 to vector<2x32xf32>
    %441 = arith.addf %440, %439 : vector<2x32xf32>
    %442 = arith.divf %440, %441 : vector<2x32xf32>
    %443 = vector.extract_strided_slice %430 {offsets = [0, 64], sizes = [2, 32], strides = [1, 1]} : vector<2x128xf32> to vector<2x32xf32>
    %444 = math.tanh %443 : vector<2x32xf32>
    %445 = vector.extract_strided_slice %430 {offsets = [0, 96], sizes = [2, 32], strides = [1, 1]} : vector<2x128xf32> to vector<2x32xf32>
    %446 = arith.negf %445 : vector<2x32xf32>
    %447 = math.exp %446 : vector<2x32xf32>
    %cst_147 = arith.constant 1.000000e+00 : f32
    %448 = vector.broadcast %cst_147 : f32 to vector<2x32xf32>
    %449 = arith.addf %448, %447 : vector<2x32xf32>
    %450 = arith.divf %448, %449 : vector<2x32xf32>
    %451 = arith.mulf %442, %391 : vector<2x32xf32>
    %452 = arith.mulf %436, %444 : vector<2x32xf32>
    %453 = arith.addf %451, %452 : vector<2x32xf32>
    %454 = math.tanh %453 : vector<2x32xf32>
    %455 = arith.mulf %450, %454 : vector<2x32xf32>
    %c0_148 = arith.constant 0 : index
    %c6 = arith.constant 6 : index
    %c0_149 = arith.constant 0 : index
    %456 = vector.load %arg17[%c0_148, %c6, %c0_149] : memref<2x8x32xf32, #tpu.memory_space<vmem>>, vector<2x1x32xf32>
    %457 = vector.shape_cast %456 : vector<2x1x32xf32> to vector<2x32xf32>
    %458 = vector.shape_cast %455 : vector<2x32xf32> to vector<2x1x32xf32>
    tpu.vector_store %arg17[%c0_148, %c6, %c0_149], %458 {strides = array<i32>} : memref<2x8x32xf32, #tpu.memory_space<vmem>>, vector<2x1x32xf32>,
    %c0_150 = arith.constant 0 : index
    %c6_151 = arith.constant 6 : index
    %c0_152 = arith.constant 0 : index
    %459 = vector.load %arg18[%c0_150, %c6_151, %c0_152] : memref<2x8x32xf32, #tpu.memory_space<vmem>>, vector<2x1x32xf32>
    %460 = vector.shape_cast %459 : vector<2x1x32xf32> to vector<2x32xf32>
    %461 = vector.shape_cast %423 : vector<2x32xf32> to vector<2x1x32xf32>
    tpu.vector_store %arg18[%c0_150, %c6_151, %c0_152], %461 {strides = array<i32>} : memref<2x8x32xf32, #tpu.memory_space<vmem>>, vector<2x1x32xf32>,
    %c0_153 = arith.constant 0 : index
    %c6_154 = arith.constant 6 : index
    %c0_155 = arith.constant 0 : index
    %462 = vector.load %arg19[%c0_153, %c6_154, %c0_155] : memref<2x8x16xf32, #tpu.memory_space<vmem>>, vector<2x1x16xf32>
    %463 = vector.shape_cast %462 : vector<2x1x16xf32> to vector<2x16xf32>
    %464 = vector.shape_cast %420 : vector<2x16xf32> to vector<2x1x16xf32>
    tpu.vector_store %arg19[%c0_153, %c6_154, %c0_155], %464 {strides = array<i32>} : memref<2x8x16xf32, #tpu.memory_space<vmem>>, vector<2x1x16xf32>,
    %465 = arith.truncf %455 : vector<2x32xf32> to vector<2x32xbf16>
    %cst_156 = arith.constant dense<0.000000e+00> : vector<2x256xf32>
    %466 = tpu.matmul %465, %19, %cst_156 {dimension_numbers = #tpu.dot_dimension_numbers<[1], [0], [0], [1], [0, 0, 1, 1], [], []>} : vector<2x32xbf16>, vector<32x256xbf16>, vector<2x256xf32> -> vector<2x256xf32>
    %467 = vector.shape_cast %466 : vector<2x256xf32> to vector<2x1x256xf32>
    %468 = vector.broadcast %467 : vector<2x1x256xf32> to vector<2x16x256xf32>
    %469 = arith.addf %14, %468 : vector<2x16x256xf32>
    %470 = math.tanh %469 : vector<2x16x256xf32>
    %471 = arith.mulf %470, %25 : vector<2x16x256xf32>
    %cst_157 = arith.constant dense<0.000000e+00> : vector<2x16xf32>
    %472 = vector.multi_reduction <add>, %471, %cst_157 [2] : vector<2x16x256xf32> to vector<2x16xf32>
    %cst_158 = arith.constant dense<0xFF800000> : vector<2xf32>
    %473 = vector.multi_reduction <maximumf>, %472, %cst_158 [1] : vector<2x16xf32> to vector<2xf32>
    %474 = vector.shape_cast %473 : vector<2xf32> to vector<2x1xf32>
    %475 = vector.broadcast %474 : vector<2x1xf32> to vector<2x16xf32>
    %476 = arith.subf %472, %475 : vector<2x16xf32>
    %477 = math.exp %476 : vector<2x16xf32>
    %cst_159 = arith.constant dense<0.000000e+00> : vector<2xf32>
    %478 = vector.multi_reduction <add>, %477, %cst_159 [1] : vector<2x16xf32> to vector<2xf32>
    %479 = vector.shape_cast %478 : vector<2xf32> to vector<2x1xf32>
    %480 = tpu.reciprocal %479 {approx = true} : vector<2x1xf32> -> vector<2x1xf32>
    %481 = vector.broadcast %480 : vector<2x1xf32> to vector<2x16xf32>
    %482 = arith.mulf %477, %481 : vector<2x16xf32>
    %483 = vector.shape_cast %482 : vector<2x16xf32> to vector<2x1x16xf32>
    "tpu.trace_start"() <{level = 10 : i32, message = "bqp,bpe->bqe"}> : () -> ()
    %cst_160 = arith.constant dense<0.000000e+00> : vector<2x1x32xf32>
    %484 = tpu.matmul %483, %7, %cst_160 {dimension_numbers = #tpu.dot_dimension_numbers<[2], [1], [1], [2], [0, 0, 0, 1, 1, 2], [0], [0]>} : vector<2x1x16xf32>, vector<2x16x32xf32>, vector<2x1x32xf32> -> vector<2x1x32xf32>
    "tpu.trace_stop"() : () -> ()
    %485 = vector.shape_cast %484 : vector<2x1x32xf32> to vector<2x32xf32>
    %486 = vector.extract_strided_slice %18 {offsets = [14, 0], sizes = [2, 128], strides = [1, 1]} : vector<16x128xf32> to vector<2x128xf32>
    %487 = arith.truncf %485 : vector<2x32xf32> to vector<2x32xbf16>
    %cst_161 = arith.constant dense<0.000000e+00> : vector<2x128xf32>
    %488 = tpu.matmul %487, %20, %cst_161 {dimension_numbers = #tpu.dot_dimension_numbers<[1], [0], [0], [1], [0, 0, 1, 1], [], []>} : vector<2x32xbf16>, vector<32x128xbf16>, vector<2x128xf32> -> vector<2x128xf32>
    %489 = arith.addf %486, %488 : vector<2x128xf32>
    %cst_162 = arith.constant dense<0.000000e+00> : vector<2x128xf32>
    %490 = tpu.matmul %465, %21, %cst_162 {dimension_numbers = #tpu.dot_dimension_numbers<[1], [0], [0], [1], [0, 0, 1, 1], [], []>} : vector<2x32xbf16>, vector<32x128xbf16>, vector<2x128xf32> -> vector<2x128xf32>
    %491 = arith.addf %489, %490 : vector<2x128xf32>
    %492 = arith.addf %491, %28 : vector<2x128xf32>
    %493 = vector.extract_strided_slice %492 {offsets = [0, 0], sizes = [2, 32], strides = [1, 1]} : vector<2x128xf32> to vector<2x32xf32>
    %494 = arith.negf %493 : vector<2x32xf32>
    %495 = math.exp %494 : vector<2x32xf32>
    %cst_163 = arith.constant 1.000000e+00 : f32
    %496 = vector.broadcast %cst_163 : f32 to vector<2x32xf32>
    %497 = arith.addf %496, %495 : vector<2x32xf32>
    %498 = arith.divf %496, %497 : vector<2x32xf32>
    %499 = vector.extract_strided_slice %492 {offsets = [0, 32], sizes = [2, 32], strides = [1, 1]} : vector<2x128xf32> to vector<2x32xf32>
    %500 = arith.negf %499 : vector<2x32xf32>
    %501 = math.exp %500 : vector<2x32xf32>
    %cst_164 = arith.constant 1.000000e+00 : f32
    %502 = vector.broadcast %cst_164 : f32 to vector<2x32xf32>
    %503 = arith.addf %502, %501 : vector<2x32xf32>
    %504 = arith.divf %502, %503 : vector<2x32xf32>
    %505 = vector.extract_strided_slice %492 {offsets = [0, 64], sizes = [2, 32], strides = [1, 1]} : vector<2x128xf32> to vector<2x32xf32>
    %506 = math.tanh %505 : vector<2x32xf32>
    %507 = vector.extract_strided_slice %492 {offsets = [0, 96], sizes = [2, 32], strides = [1, 1]} : vector<2x128xf32> to vector<2x32xf32>
    %508 = arith.negf %507 : vector<2x32xf32>
    %509 = math.exp %508 : vector<2x32xf32>
    %cst_165 = arith.constant 1.000000e+00 : f32
    %510 = vector.broadcast %cst_165 : f32 to vector<2x32xf32>
    %511 = arith.addf %510, %509 : vector<2x32xf32>
    %512 = arith.divf %510, %511 : vector<2x32xf32>
    %513 = arith.mulf %504, %453 : vector<2x32xf32>
    %514 = arith.mulf %498, %506 : vector<2x32xf32>
    %515 = arith.addf %513, %514 : vector<2x32xf32>
    %516 = math.tanh %515 : vector<2x32xf32>
    %517 = arith.mulf %512, %516 : vector<2x32xf32>
    %c0_166 = arith.constant 0 : index
    %c7 = arith.constant 7 : index
    %c0_167 = arith.constant 0 : index
    %518 = vector.load %arg17[%c0_166, %c7, %c0_167] : memref<2x8x32xf32, #tpu.memory_space<vmem>>, vector<2x1x32xf32>
    %519 = vector.shape_cast %518 : vector<2x1x32xf32> to vector<2x32xf32>
    %520 = vector.shape_cast %517 : vector<2x32xf32> to vector<2x1x32xf32>
    tpu.vector_store %arg17[%c0_166, %c7, %c0_167], %520 {strides = array<i32>} : memref<2x8x32xf32, #tpu.memory_space<vmem>>, vector<2x1x32xf32>,
    %c0_168 = arith.constant 0 : index
    %c7_169 = arith.constant 7 : index
    %c0_170 = arith.constant 0 : index
    %521 = vector.load %arg18[%c0_168, %c7_169, %c0_170] : memref<2x8x32xf32, #tpu.memory_space<vmem>>, vector<2x1x32xf32>
    %522 = vector.shape_cast %521 : vector<2x1x32xf32> to vector<2x32xf32>
    %523 = vector.shape_cast %485 : vector<2x32xf32> to vector<2x1x32xf32>
    tpu.vector_store %arg18[%c0_168, %c7_169, %c0_170], %523 {strides = array<i32>} : memref<2x8x32xf32, #tpu.memory_space<vmem>>, vector<2x1x32xf32>,
    %c0_171 = arith.constant 0 : index
    %c7_172 = arith.constant 7 : index
    %c0_173 = arith.constant 0 : index
    %524 = vector.load %arg19[%c0_171, %c7_172, %c0_173] : memref<2x8x16xf32, #tpu.memory_space<vmem>>, vector<2x1x16xf32>
    %525 = vector.shape_cast %524 : vector<2x1x16xf32> to vector<2x16xf32>
    %526 = vector.shape_cast %482 : vector<2x16xf32> to vector<2x1x16xf32>
    tpu.vector_store %arg19[%c0_171, %c7_172, %c0_173], %526 {strides = array<i32>} : memref<2x8x16xf32, #tpu.memory_space<vmem>>, vector<2x1x16xf32>,
    %c0_174 = arith.constant 0 : index
    %c0_175 = arith.constant 0 : index
    %c0_176 = arith.constant 0 : index
    %527 = vector.load %arg17[%c0_174, %c0_175, %c0_176] : memref<2x8x32xf32, #tpu.memory_space<vmem>>, vector<2x8x32xf32>
    %528 = vector.shape_cast %527 : vector<2x8x32xf32> to vector<16x32xf32>
    %529 = arith.truncf %528 : vector<16x32xf32> to vector<16x32xbf16>
    %c0_177 = arith.constant 0 : index
    %c0_178 = arith.constant 0 : index
    %c0_179 = arith.constant 0 : index
    %530 = vector.load %arg18[%c0_177, %c0_178, %c0_179] : memref<2x8x32xf32, #tpu.memory_space<vmem>>, vector<2x8x32xf32>
    %531 = vector.shape_cast %530 : vector<2x8x32xf32> to vector<16x32xf32>
    %532 = arith.truncf %531 : vector<16x32xf32> to vector<16x32xbf16>
    %c0_180 = arith.constant 0 : index
    %c0_181 = arith.constant 0 : index
    %533 = vector.load %arg12[%c0_180, %c0_181] : memref<32x64xbf16, #tpu.memory_space<vmem>>, vector<32x64xbf16>
    %cst_182 = arith.constant dense<0.000000e+00> : vector<16x64xf32>
    %534 = tpu.matmul %529, %533, %cst_182 {dimension_numbers = #tpu.dot_dimension_numbers<[1], [0], [0], [1], [0, 0, 1, 1], [], []>} : vector<16x32xbf16>, vector<32x64xbf16>, vector<16x64xf32> -> vector<16x64xf32>
    %c0_183 = arith.constant 0 : index
    %c0_184 = arith.constant 0 : index
    %535 = vector.load %arg13[%c0_183, %c0_184] : memref<32x64xbf16, #tpu.memory_space<vmem>>, vector<32x64xbf16>
    %cst_185 = arith.constant dense<0.000000e+00> : vector<16x64xf32>
    %536 = tpu.matmul %532, %535, %cst_185 {dimension_numbers = #tpu.dot_dimension_numbers<[1], [0], [0], [1], [0, 0, 1, 1], [], []>} : vector<16x32xbf16>, vector<32x64xbf16>, vector<16x64xf32> -> vector<16x64xf32>
    %537 = arith.addf %534, %536 : vector<16x64xf32>
    %c0_186 = arith.constant 0 : index
    %c0_187 = arith.constant 0 : index
    %538 = vector.load %arg14[%c0_186, %c0_187] : memref<1x64xf32, #tpu.memory_space<vmem>>, vector<1x64xf32>
    %539 = vector.broadcast %538 : vector<1x64xf32> to vector<16x64xf32>
    %540 = arith.addf %537, %539 : vector<16x64xf32>
    %c0_188 = arith.constant 0 : index
    %c0_189 = arith.constant 0 : index
    %541 = vector.load %arg15[%c0_188, %c0_189] : memref<16x64xf32, #tpu.memory_space<vmem>>, vector<16x64xf32>
    tpu.vector_store %arg15[%c0_188, %c0_189], %540 {strides = array<i32>} : memref<16x64xf32, #tpu.memory_space<vmem>>, vector<16x64xf32>,
    %c0_190 = arith.constant 0 : index
    %c0_191 = arith.constant 0 : index
    %c0_192 = arith.constant 0 : index
    %542 = vector.load %arg19[%c0_190, %c0_191, %c0_192] : memref<2x8x16xf32, #tpu.memory_space<vmem>>, vector<2x8x16xf32>
    %543 = vector.shape_cast %542 : vector<2x8x16xf32> to vector<16x16xf32>
    %c0_193 = arith.constant 0 : index
    %c0_194 = arith.constant 0 : index
    %544 = vector.load %arg16[%c0_193, %c0_194] : memref<16x16xf32, #tpu.memory_space<vmem>>, vector<16x16xf32>
    tpu.vector_store %arg16[%c0_193, %c0_194], %543 {strides = array<i32>} : memref<16x16xf32, #tpu.memory_space<vmem>>, vector<16x16xf32>,
    return
  }
}

</mosaic_0001>

<bundles_post_ra>
// kernel: tpu_custom_call.1
= control target key start
LH: loop header
LB: loop body
LE: loop exit
PB: predicated region body
PF: predicated region fallthrough
CT: control target
= control target key end

     0   :  { %s7930_s0 = inlined_call_operand.hbm [shape: bf16[2,16,64], index: 0, kind: input, shape index: {}]   ;;  %s7931_s1 = inlined_call_operand.hbm [shape: bf16[8,2,32], index: 1, kind: input, shape index: {}]   ;;  %s7932_s2 = inlined_call_operand.vmem [shape: bf16[64,32], index: 2, kind: input, shape index: {}]   ;;  %s7933_s3 = inlined_call_operand.vmem [shape: f32[1,32], index: 3, kind: input, shape index: {}]   ;;  %s7934_s4 = inlined_call_operand.vmem [shape: bf16[32,256], index: 4, kind: input, shape index: {}]   ;;  %s7935_s5 = inlined_call_operand.vmem [shape: bf16[32,256], index: 5, kind: input, shape index: {}]   ;;  %s7936_s6 = inlined_call_operand.hbm [shape: f32[1,256], index: 6, kind: input, shape index: {}]   ;;  %s7937_s7 = inlined_call_operand.hbm [shape: f32[1,256], index: 7, kind: input, shape index: {}]   ;;  %s7938_s8 = inlined_call_operand.hbm [shape: bf16[32,128], index: 8, kind: input, shape index: {}]   ;;  %s7939_s9 = inlined_call_operand.vmem [shape: bf16[32,128], index: 9, kind: input, shape index: {}]   ;;  %s7940_s10 = inlined_call_operand.hbm [shape: bf16[32,128], index: 10, kind: input, shape index: {}]   ;;  %s7941_s11 = inlined_call_operand.hbm [shape: f32[1,128], index: 11, kind: input, shape index: {}]   ;;  %s7942_s12 = inlined_call_operand.hbm [shape: bf16[32,64], index: 12, kind: input, shape index: {}]   ;;  %s7943_s13 = inlined_call_operand.vmem [shape: bf16[32,64], index: 13, kind: input, shape index: {}]   ;;  %s7944_s14 = inlined_call_operand.vmem [shape: f32[1,64], index: 14, kind: input, shape index: {}]   ;;  %s7945_s15 = inlined_call_operand.hbm [shape: f32[16,64], index: 15, kind: output, shape index: {0}]   ;;  %s7946_s16 = inlined_call_operand.hbm [shape: f32[16,16], index: 16, kind: output, shape index: {1}]  }
   0x1   :  { %7948 = sst [smem:[#allocation29_spill]] %s7930_s0 }
   0x2   :  { %22 = vsyncpa [#allocation6], 0 }
   0x3   :  { %23 = vsyncpa [#allocation9], 0 }
   0x4   :  { %24 = vsyncpa [#allocation12], 0 }
   0x5   :  { %25 = vsyncpa [#allocation15], 0 }
   0x6   :  { %26 = vsyncpa [#allocation18], 0 }
   0x7   :  { %27 = vsyncpa [#allocation7], 0 }
   0x8   :  { %28 = vsyncpa [#allocation21], 0  ;;  %s6519_s21 = smov [#allocation8]   ;;  %s6285_s25 = scalar_lea.hbm %s7931_s1, 128 }
   0x9   :  { %s46_s22 = sshll.u32 %s6519_s21, 4  ;;  %p6286_p0 = scmp.ne.s32.totalorder %s7931_s1, %s6285_s25  ;;  %s47_s22 = int_to_ptr.vmem [resolvable:$true] %s46_s22 }
   0xa   :  { %p6289_p1 = scmp.lt.u32.totalorder %s6285_s25, %s7931_s1 }
   0xc   :  { %p6291_p2 = pnand %p6289_p1, %p6286_p0 }
   0xe   :  { %6294 = shalt.err (!%p6291_p2)
}
   0xf   :  { %s6295_s30 = scalar_lea.vmem %s47_s22, 128  ;;  %p6300_p4 = scmp.lt.s32.totalorder %s47_s22, %s47_s22 }
  0x10   :  { %p6296_p3 = scmp.ne.s32.totalorder %s47_s22, %s6295_s30  ;;  %p6301_p5 = scmp.lt.s32.totalorder %s6295_s30, %s6295_s30 }
  0x12   :  { %p6302_p6 = por %p6301_p5, %p6300_p4 }
  0x14   :  { %p6303_p7 = pnand %p6302_p6, %p6296_p3 }
  0x16   :  { %6306 = shalt.err (!%p6303_p7)
}
  0x17   :  { %s6520_s0 = smov 16   ;;  %s6521_s17 = smov 1  }
  0x18   :  { %52 = dma.hbm_to_vmem [thread:$0]  %s7931_s1, 128, %s47_s22, [#allocation9], %s6520_s0, %s6520_s0, %s6521_s17  }
  0x19   :  { %s6522_s20 = smov [#allocation11]   ;;  %s6307_s25 = scalar_lea.hbm %s7937_s7, 32 }
  0x1a   :  { %s77_s21 = sshll.u32 %s6522_s20, 4  ;;  %p6308_p8 = scmp.ne.s32.totalorder %s7937_s7, %s6307_s25  ;;  %s78_s21 = int_to_ptr.vmem [resolvable:$true] %s77_s21 }
  0x1b   :  { %p6311_p9 = scmp.lt.u32.totalorder %s6307_s25, %s7937_s7 }
  0x1d   :  { %p6313_p10 = pnand %p6311_p9, %p6308_p8 }
  0x1f   :  { %6316 = shalt.err (!%p6313_p10)
}
  0x20   :  { %s6317_s30 = scalar_lea.vmem %s78_s21, 32  ;;  %p6322_p12 = scmp.lt.s32.totalorder %s78_s21, %s78_s21 }
  0x21   :  { %p6318_p11 = scmp.ne.s32.totalorder %s78_s21, %s6317_s30  ;;  %p6323_p13 = scmp.lt.s32.totalorder %s6317_s30, %s6317_s30 }
  0x23   :  { %p6324_p0 = por %p6323_p13, %p6322_p12 }
  0x25   :  { %p6325_p1 = pnand %p6324_p0, %p6318_p11 }
  0x27   :  { %6328 = shalt.err (!%p6325_p1)
}
  0x28   :  { %80 = dma.hbm_to_vmem [thread:$0]  %s7937_s7, 32, %s78_s21, [#allocation12]  }
  0x29   :  { %s6523_s0 = smov [#allocation14]   ;;  %s6524_s18 = smov [#allocation5]  }
  0x2a   :  { %s100_s17 = sshll.u32 %s6523_s0, 4  ;;  %s34_s19 = sshll.u32 %s6524_s18, 4  ;;  %s101_s17 = int_to_ptr.vmem [resolvable:$true] %s100_s17  ;;  %s6650_s19 = int_to_ptr.vmem [resolvable:$true] %s34_s19 }
  0x2b   :  { %s6329_s24 = scalar_lea.hbm %s7940_s10, 256 }
  0x2c   :  { %p6330_p2 = scmp.ne.s32.totalorder %s7940_s10, %s6329_s24  ;;  %p6333_p3 = scmp.lt.u32.totalorder %s6329_s24, %s7940_s10 }
  0x2e   :  { %p6335_p4 = pnand %p6333_p3, %p6330_p2 }
  0x30   :  { %6338 = shalt.err (!%p6335_p4)
}
  0x31   :  { %s6339_s7 = scalar_lea.vmem %s101_s17, 256  ;;  %p6344_p6 = scmp.lt.s32.totalorder %s101_s17, %s101_s17 }
  0x32   :  { %p6340_p5 = scmp.ne.s32.totalorder %s101_s17, %s6339_s7  ;;  %p6345_p7 = scmp.lt.s32.totalorder %s6339_s7, %s6339_s7 }
  0x34   :  { %p6346_p8 = por %p6345_p7, %p6344_p6 }
  0x36   :  { %p6347_p9 = pnand %p6346_p8, %p6340_p5 }
  0x38   :  { %6350 = shalt.err (!%p6347_p9)
}
  0x39   :  { %s6525_s21 = smov 64   ;;  %s6526_s29 = smov 4  }
  0x3a   :  { %106 = dma.hbm_to_vmem [thread:$0]  %s7940_s10, 256, %s101_s17, [#allocation15], %s6525_s21, %s6525_s21, %s6526_s29  }
  0x3b   :  { %s7949_s18 = sld [smem:[#allocation29_spill]] }
  0x41   :  { %s6351_s20 = scalar_lea.hbm %s7949_s18, 256 }
  0x42   :  { %p6352_p10 = scmp.ne.s32.totalorder %s7949_s18, %s6351_s20  ;;  %p6355_p11 = scmp.lt.u32.totalorder %s6351_s20, %s7949_s18 }
  0x44   :  { %p6357_p12 = pnand %p6355_p11, %p6352_p10 }
  0x46   :  { %6360 = shalt.err (!%p6357_p12)
}
  0x47   :  { %s6361_s27 = scalar_lea.vmem %s6650_s19, 256  ;;  %p6366_p0 = scmp.lt.s32.totalorder %s6650_s19, %s6650_s19 }
  0x48   :  { %p6362_p13 = scmp.ne.s32.totalorder %s6650_s19, %s6361_s27  ;;  %p6367_p1 = scmp.lt.s32.totalorder %s6361_s27, %s6361_s27 }
  0x4a   :  { %p6368_p2 = por %p6367_p1, %p6366_p0 }
  0x4c   :  { %p6369_p3 = pnand %p6368_p2, %p6362_p13 }
  0x4e   :  { %6372 = shalt.err (!%p6369_p3)
}
  0x4f   :  { %40 = dma.hbm_to_vmem [thread:$0]  %s7949_s18, 256, %s6650_s19, [#allocation6], %s6525_s21, %s6525_s21, %s6526_s29  }
  0x50   :  { %s6527_s28 = smov [#allocation10]   ;;  %s6528_s30 = smov [#allocation13]  }
  0x51   :  { %s67_s7 = sshll.u32 %s6527_s28, 4  ;;  %s86_s1 = sshll.u32 %s6528_s30, 4  ;;  %s68_s7 = int_to_ptr.vmem [resolvable:$true] %s67_s7  ;;  %s6687_s1 = int_to_ptr.vmem [resolvable:$true] %s86_s1 }
  0x52   :  { %s6373_s20 = scalar_lea.hbm %s7936_s6, 32 }
  0x53   :  { %p6374_p4 = scmp.ne.s32.totalorder %s7936_s6, %s6373_s20  ;;  %p6377_p5 = scmp.lt.u32.totalorder %s6373_s20, %s7936_s6 }
  0x55   :  { %p6379_p6 = pnand %p6377_p5, %p6374_p4 }
  0x57   :  { %6382 = shalt.err (!%p6379_p6)
}
  0x58   :  { %s6383_s19 = scalar_lea.vmem %s68_s7, 32  ;;  %p6388_p8 = scmp.lt.s32.totalorder %s68_s7, %s68_s7 }
  0x59   :  { %p6384_p7 = scmp.ne.s32.totalorder %s68_s7, %s6383_s19  ;;  %p6389_p9 = scmp.lt.s32.totalorder %s6383_s19, %s6383_s19 }
  0x5b   :  { %p6390_p10 = por %p6389_p9, %p6388_p8 }
  0x5d   :  { %p6391_p11 = pnand %p6390_p10, %p6384_p7 }
  0x5f   :  { %6394 = shalt.err (!%p6391_p11)
}
  0x60   :  { %70 = dma.hbm_to_vmem [thread:$0]  %s7936_s6, 32, %s68_s7, [#allocation9]  }
  0x61   :  { %s6395_s28 = scalar_lea.hbm %s7938_s8, 256 }
  0x62   :  { %p6396_p12 = scmp.ne.s32.totalorder %s7938_s8, %s6395_s28  ;;  %p6399_p13 = scmp.lt.u32.totalorder %s6395_s28, %s7938_s8 }
  0x64   :  { %p6401_p0 = pnand %p6399_p13, %p6396_p12 }
  0x66   :  { %6404 = shalt.err (!%p6401_p0)
}
  0x67   :  { %s6405_s23 = scalar_lea.vmem %s6687_s1, 256  ;;  %p6410_p2 = scmp.lt.s32.totalorder %s6687_s1, %s6687_s1 }
  0x68   :  { %p6406_p1 = scmp.ne.s32.totalorder %s6687_s1, %s6405_s23  ;;  %p6411_p3 = scmp.lt.s32.totalorder %s6405_s23, %s6405_s23 }
  0x6a   :  { %p6412_p4 = por %p6411_p3, %p6410_p2 }
  0x6c   :  { %p6413_p5 = pnand %p6412_p4, %p6406_p1 }
  0x6e   :  { %6416 = shalt.err (!%p6413_p5)
}
  0x6f   :  { %92 = dma.hbm_to_vmem [thread:$0]  %s7938_s8, 256, %s6687_s1, [#allocation12], %s6525_s21, %s6525_s21, %s6526_s29  }
  0x70   :  { %s6529_s24 = smov [#allocation16]   ;;  %s6530_s26 = smov [#allocation17]  }
  0x71   :  { %s113_s25 = sshll.u32 %s6529_s24, 4  ;;  %s122_s19 = sshll.u32 %s6530_s26, 4  ;;  %s114_s25 = int_to_ptr.vmem [resolvable:$true] %s113_s25  ;;  %s6721_s19 = int_to_ptr.vmem [resolvable:$true] %s122_s19 }
  0x72   :  { %s6417_s10 = scalar_lea.hbm %s7941_s11, 16 }
  0x73   :  { %p6418_p6 = scmp.ne.s32.totalorder %s7941_s11, %s6417_s10  ;;  %p6421_p7 = scmp.lt.u32.totalorder %s6417_s10, %s7941_s11 }
  0x75   :  { %p6423_p8 = pnand %p6421_p7, %p6418_p6 }
  0x77   :  { %6426 = shalt.err (!%p6423_p8)
}
  0x78   :  { %s6427_s8 = scalar_lea.vmem %s114_s25, 16  ;;  %s6431_s1 = scalar_lea.vmem %s114_s25, 32 }
  0x79   :  { %p6428_p9 = scmp.ne.s32.totalorder %s114_s25, %s6427_s8  ;;  %p6432_p10 = scmp.lt.s32.totalorder %s114_s25, %s114_s25 }
  0x7a   :  { %p6433_p11 = scmp.lt.s32.totalorder %s6431_s1, %s6427_s8 }
  0x7c   :  { %p6434_p12 = por %p6433_p11, %p6432_p10 }
  0x7e   :  { %p6435_p13 = pnand %p6434_p12, %p6428_p9 }
  0x80   :  { %6438 = shalt.err (!%p6435_p13)
}
  0x81   :  { %116 = dma.hbm_to_vmem [thread:$0]  %s7941_s11, 16, %s114_s25, [#allocation15]  }
  0x82   :  { %s6439_s7 = scalar_lea.hbm %s7942_s12, 256 }
  0x83   :  { %p6440_p0 = scmp.ne.s32.totalorder %s7942_s12, %s6439_s7  ;;  %p6443_p1 = scmp.lt.u32.totalorder %s6439_s7, %s7942_s12 }
  0x85   :  { %p6445_p2 = pnand %p6443_p1, %p6440_p0 }
  0x87   :  { %6448 = shalt.err (!%p6445_p2)
}
  0x88   :  { %s6449_s10 = scalar_lea.vmem %s6721_s19, 256  ;;  %p6454_p4 = scmp.lt.s32.totalorder %s6721_s19, %s6721_s19 }
  0x89   :  { %p6450_p3 = scmp.ne.s32.totalorder %s6721_s19, %s6449_s10  ;;  %p6455_p5 = scmp.lt.s32.totalorder %s6449_s10, %s6449_s10 }
  0x8b   :  { %p6456_p6 = por %p6455_p5, %p6454_p4 }
  0x8d   :  { %p6457_p7 = pnand %p6456_p6, %p6450_p3 }
  0x8f   :  { %6460 = shalt.err (!%p6457_p7)
}
  0x90   :  { %128 = dma.hbm_to_vmem [thread:$0]  %s7942_s12, 256, %s6721_s19, [#allocation18], %s6525_s21, %s6525_s21, %s6526_s29  }
  0x91   :  { %6505 = dma.done.wait [#allocation6], 256  }
  0x92   :  { %6506 = vsyncadd [#allocation6], 4294967040 }
  0x93   :  { %6507 = dma.done.wait [#allocation9], 160  }
  0x94   :  { %6508 = vsyncadd [#allocation9], 4294967136 }
  0x95   :  { %6509 = dma.done.wait [#allocation12], 288  }
  0x96   :  { %6510 = vsyncadd [#allocation12], 4294967008 }
  0x97   :  { %6511 = dma.done.wait [#allocation15], 272  }
  0x98   :  { %6512 = vsyncadd [#allocation15], 4294967024 }
  0x99   :  { %6513 = dma.done.wait [#allocation18], 256  }
  0x9a   :  { %6514 = vsyncadd [#allocation18], 4294967040  ;;  %v5969_v0 = vld [vmem:[%s7932_s2] sm:$0xff]   ;;  %v5970_v1 = vld [vmem:[%s7932_s2 + $0x8] sm:$0xff]   ;;  %vm211_vm0 = vcmask 523264   ;;  %v6531_v11 = vmov 0   ;;  %v275_v31 = vlaneseq }
  0x9b   :  { %5621 = vmatprep.subr.bf16.mxu0 %v5969_v0  ;;  %v5971_v2 = vld [vmem:[%s7932_s2 + $0x10] sm:$0xff]   ;;  %v5972_v4 = vld [vmem:[%s7932_s2 + $0x18] sm:$0xff]   ;;  %v5975_v5 = vld [vmem:[%s7934_s4 + $0x4] ss:$8 sps:$4 sm:$0xff]   ;;  %344 = vmatprep.mubr.bf16.mxu1 %v6531_v11  ;;  %vm305_vm1 = vcmask 261120   ;;  %v6532_v26 = vmov 0.0|0.0  }
  0x9c   :  { %5622 = vmatpush3.bf16.msra.mxu0 %v5969_v0  ;;  %v5973_v3 = vld [vmem:[#allocation5] sm:$0xff]   ;;  %312 = vmatprep.subr.bf16.mxu1 %v5975_v5  ;;  %v5974_v6 = vld [vmem:[#allocation5 + $0x8] sm:$0xff]   ;;  %v5977_v7 = vld [vmem:[%s7934_s4] ss:$8 sps:$4 sm:$0xff]   ;;  %v6533_v33 = vmov 1966171168  }
  0x9d   :  { %5623 = vmatprep.subr.bf16.mxu0 %v5970_v1  ;;  %5629 = vmatprep.mubr.msk.bf16.mxu0 %vm211_vm0, %v5973_v3  ;;  %v5978_v8 = vld [vmem:[%s7934_s4 + $0x14] ss:$8 sps:$4 sm:$0xff]   ;;  %v5980_v9 = vld [vmem:[%s7934_s4 + $0x10] ss:$8 sps:$4 sm:$0xff]   ;;  %v6784_v10 = vld [vmem:[%s7935_s5 + $0x4] ss:$8 sps:$4 sm:$0xff]   ;;  %v390_v34 = vunpack.c.l.s4 %v6533_v33 }
  0x9e   :  { %313 = vmatpush1.bf16.msra.mxu1 %v5977_v7  ;;  %5968 = vset.pattern.permute.xlu0 %v6531_v11  ;;  %v5430_v13 = vld [vmem:[%s7933_s3] ss:$0 sm:$0xff]  ;;  %v6805_v24 = vld [vmem:[%s7935_s5 + $0x14] ss:$8 sps:$4 sm:$0xff]   ;;  %v6814_v25 = vld [vmem:[%s7935_s5 + $0x10] ss:$8 sps:$4 sm:$0xff]  }
  0x9f   :  { %314 = vmatprep.subr.bf16.mxu1 %v5978_v8  ;;  %5967 = vset.pattern.permute.xlu1 %v6531_v11  ;;  %v6798_v22 = vld [vmem:[%s7935_s5] ss:$8 sps:$4 sm:$0xff]   ;;  %v6826_v37 = vshrl.u32 %v275_v31, 7  ;;  %v391_v39 = vunpack.c.0.s8 %v390_v34  ;;  %vm681_vm2 = vcmask 130112   ;;  %vm692_vm3 = vcmask 1041409   ;;  %s6536_s19 = smov 32  }
  0xa0   :  { %5624 = vmatpush3.bf16.msra.mxu0 %v5970_v1  ;;  %v273_v41 = vld [vmem:[#allocation10] sm:$0x3]  ;;  %vm695_vm4 = vcmask 123904   ;;  %vm6534_vm5 = vmmov 0   ;;  %vm794_vm6 = vcmask 130048   ;;  %vm1143_vm7 = vcmask 122880  }
  0xa1   :  { %5625 = vmatprep.subr.bf16.mxu0 %v5971_v2  ;;  %v6829_v40 = vsub.s32 0, %v6826_v37  ;;  %v6832_v42 = vsub.s32 1, %v6826_v37  ;;  %v6835_v44 = vsub.s32 %v391_v39, %v6826_v37  ;;  %vm1136_vm8 = vcmask 253952  }
  0xa2   :  { %315 = vmatpush1.bf16.msra.mxu1 %v5980_v9 }
  0xa3   :  { %544 = vmatprep.subr.bf16.mxu1 %v6784_v10  ;;  %v278_v48 = vrot.slane %v273_v41, %v6829_v40  ;;  %v282_v50 = vrot.slane %v273_v41, %v6832_v42 }
  0xa4   :  { %5626 = vmatpush3.bf16.msra.mxu0 %v5971_v2 }
  0xa5   :  { %5627 = vmatprep.subr.bf16.mxu0 %v5972_v4 }
  0xa8   :  { %5628 = vmatpush3.bf16.msra.mxu0 %v5972_v4 }
  0xab   :  { %5630 = vmatmul.mubr.msk.bf16.vlgmr.msra.gmra.mrb[0].mxu0 %vm211_vm0, %v5974_v6 }
 0x17e   :  { %v5631_v12 = vpop.f32.mrb[0].mxu0 }
 0x17f   :  { %v252_v14 = vpop.f32.mrb[1].mxu0  ;;  %v261_v16 = vadd.f32 %v5631_v12, %v5430_v13 }
 0x180   :  { %v5632_v15 = vpop.f32.mrb[2].mxu0  ;;  %v253_v19 = vadd.f32 %v5430_v13, %v252_v14 }
 0x181   :  { %v264_v17 = vadd.f32 %v5632_v15, %v5430_v13  ;;  %v255_v18 = vpop.f32.mrb[3].mxu0 }
 0x182   :  { %v256_v20 = vadd.f32 %v5430_v13, %v255_v18  ;;  %v502_v13 = vld [vmem:[#allocation11] sm:$0x3] }
 0x183   :  { %v6793_v21 = vpack.c.bf16 %v264_v17, %v261_v16  ;;  %v6871_v14 = vrot.slane %v502_v13, %v6829_v40  ;;  %v6874_v15 = vrot.slane %v502_v13, %v6832_v42 }
 0x184   :  { %v6800_v23 = vpack.c.bf16 %v256_v20, %v253_v19 }
 0x186   :  { %5443 = vmatmul.mubr.msk.bf16.vlgmr.msra.gmra.mrb[0].mxu1 %vm305_vm1, %v6800_v23 }
 0x187   :  { %545 = vmatpush1.bf16.msra.mxu1 %v6798_v22  ;;  %354 = vmatprep.mubr.bf16.mxu1 %v6531_v11 }
 0x188   :  { %546 = vmatprep.subr.bf16.mxu1 %v6805_v24 }
 0x18b   :  { %547 = vmatpush1.bf16.msra.mxu1 %v6814_v25 }
 0x18c   :  { %5897 = vmatprep.subr.bf16.mxu1 %v6532_v26 }
 0x18e   :  { %5444 = vmatmul.mubr.msk.bf16.gmra.mrb[4].mxu1 %vm305_vm1, %v6793_v21 }
 0x18f   :  { %576 = vmatprep.mubr.bf16.mxu1 %v6531_v11 }
 0x196   :  { %577 = vmatmul.mubr.bf16.vlgmr.msra.gmra.mrb[8].mxu1 %v6531_v11 }
 0x197   :  { %5899 = vmatpush3.bf16.msra.mxu1 %v6800_v23 }
 0x198   :  { %5900 = vmatprep.subr.bf16.mxu1 %v6532_v26 }
 0x259   :  { %v346_v27 = vpop.f32.mrb[0].mxu1 }
 0x25a   :  { %v348_v28 = vpop.f32.mrb[1].mxu1  ;;  %v6841_v54 = vadd.f32 %v346_v27, %v278_v48 }
 0x25b   :  { %v350_v29 = vpop.f32.mrb[2].mxu1  ;;  %v6843_v55 = vadd.f32 %v348_v28, %v282_v50 }
 0x25c   :  { %v352_v30 = vpop.f32.mrb[3].mxu1  ;;  %v6848_v59 = vadd.f32 %v350_v29, %v278_v48 }
 0x25d   :  { %v6850_v60 = vadd.f32 %v352_v30, %v282_v50 }
 0x261   :  { %v356_v32 = vpop.f32.mrb[4].mxu1 }
 0x262   :  { %v358_v35 = vpop.f32.mrb[5].mxu1  ;;  %v6856_v1 = vadd.f32 %v356_v32, %v278_v48 }
 0x263   :  { %v360_v36 = vpop.f32.mrb[6].mxu1  ;;  %v6859_v3 = vadd.f32 %v358_v35, %v282_v50 }
 0x264   :  { %v362_v38 = vpop.f32.mrb[7].mxu1  ;;  %v6862_v5 = vadd.f32 %v360_v36, %v278_v48 }
 0x265   :  { %v6865_v7 = vadd.f32 %v362_v38, %v282_v50 }
 0x269   :  { %v578_v43 = vpop.f32.mrb[8].mxu1 }
 0x26a   :  { %v580_v45 = vpop.f32.mrb[9].mxu1 }
 0x26b   :  { %v587_v46 = vcombine.low %v578_v43, %v580_v45  ;;  %v582_v47 = vpop.f32.mrb[10].mxu1 }
 0x26c   :  { %v583_v49 = vpop.f32.mrb[11].mxu1  ;;  %v671_v47 = vand.u32 127, %v275_v31 }
 0x26d   :  { %v594_v51 = vrot.slane %v587_v46, %v6835_v44 }
 0x26e   :  { %v676_v48 = vadd.s32 4294967288, %v671_v47 }
 0x26f   :  { %v595_v52 = vcombine.high %v594_v51, %v594_v51  ;;  %v602_v53 = vrot.slane %v594_v51, %v6835_v44 }
 0x270   :  { %v6886_v50 = vsub.s32 %v676_v48, %v6826_v37 }
 0x271   :  { %v609_v56 = vrot.slane %v595_v52, %v6835_v44  ;;  %v613_v57 = vrot.slane %v602_v53, %v6829_v40  ;;  %v617_v58 = vrot.slane %v602_v53, %v6832_v42  ;;  %v6889_v53 = vsub.s32 %v671_v47, %v6826_v37 }
 0x273   :  { %v621_v61 = vrot.slane %v609_v56, %v6829_v40  ;;  %v625_v62 = vrot.slane %v609_v56, %v6832_v42  ;;  %v630_v63 = vadd.f32 %v613_v57, %v6841_v54  ;;  %v631_v0 = vadd.f32 %v617_v58, %v6843_v55 }
 0x274   :  { %v632_v2 = vadd.f32 %v613_v57, %v6848_v59  ;;  %v633_v4 = vadd.f32 %v617_v58, %v6850_v60 }
 0x275   :  { %v634_v6 = vadd.f32 %v621_v61, %v6856_v1  ;;  %5997 = vtanh.f32 %v630_v63  ;;  %v635_v8 = vadd.f32 %v625_v62, %v6859_v3  ;;  %v636_v9 = vadd.f32 %v621_v61, %v6862_v5 }
 0x276   :  { %5999 = vtanh.f32 %v631_v0  ;;  %v637_v12 = vadd.f32 %v625_v62, %v6865_v7 }
 0x277   :  { %6001 = vtanh.f32 %v632_v2 }
 0x278   :  { %6003 = vtanh.f32 %v633_v4 }
 0x279   :  { %6005 = vtanh.f32 %v634_v6 }
 0x27a   :  { %6007 = vtanh.f32 %v635_v8 }
 0x27b   :  { %6009 = vtanh.f32 %v636_v9 }
 0x27c   :  { %6011 = vtanh.f32 %v637_v12 }
 0x27f   :  { %v5998_v16 = vpop.eup %5997 }
 0x280   :  { %v6000_v17 = vpop.eup %5999  ;;  %v646_v18 = vmul.f32 %v5998_v16, %v6871_v14 }
 0x281   :  { %v6002_v19 = vpop.eup %6001  ;;  %v647_v20 = vmul.f32 %v6000_v17, %v6874_v15 }
 0x282   :  { %v6004_v27 = vpop.eup %6003  ;;  %v648_v30 = vmul.f32 %v6002_v19, %v6871_v14 }
 0x283   :  { %v6006_v28 = vpop.eup %6005  ;;  %v654_v29 = vadd.f32 %v647_v20, %v646_v18  ;;  %v649_v32 = vmul.f32 %v6004_v27, %v6874_v15 }
 0x284   :  { %v6008_v33 = vpop.eup %6007  ;;  %v650_v34 = vmul.f32 %v6006_v28, %v6871_v14 }
 0x285   :  { %v6010_v35 = vpop.eup %6009  ;;  %655 = vadd.xlane.f32.xlu0 %v654_v29  ;;  %v651_v36 = vmul.f32 %v6008_v33, %v6874_v15  ;;  %v657_v41 = vadd.f32 %v649_v32, %v648_v30 }
 0x286   :  { %v6012_v38 = vpop.eup %6011  ;;  %v652_v43 = vmul.f32 %v6010_v35, %v6871_v14 }
 0x287   :  { %v660_v39 = vadd.f32 %v651_v36, %v650_v34  ;;  %v653_v45 = vmul.f32 %v6012_v38, %v6874_v15 }
 0x289   :  { %661 = vadd.xlane.f32.xlu1 %v660_v39  ;;  %658 = vadd.xlane.f32.xlu0 %v657_v41  ;;  %v663_v46 = vadd.f32 %v653_v45, %v652_v43 }
 0x28d   :  { %664 = vadd.xlane.f32.xlu1 %v663_v46 }
 0x312   :  { %v656_v49 = vpop.xlane.xlu0 %655 }
 0x313   :  { %v675_v58 = vrot.slane %v656_v49, %v6889_v53 }
 0x316   :  { %v662_v51 = vpop.xlane.xlu1 %661  ;;  %v659_v52 = vpop.xlane.xlu0 %658 }
 0x317   :  { %v680_v56 = vrot.slane %v659_v52, %v6886_v50  ;;  %v686_v61 = vrot.slane %v662_v51, %v6889_v53 }
 0x319   :  { %v682_v62 = vsel %vm681_vm2, %v680_v56, %v675_v58 }
 0x31a   :  { %v665_v57 = vpop.xlane.xlu1 %664 }
 0x31b   :  { %v690_v31 = vrot.slane %v665_v57, %v6886_v50 }
 0x31d   :  { %v691_v63 = vsel %vm681_vm2, %v690_v31, %v686_v61  ;;  %v5989_v31 = vld [vmem:[#allocation13] sm:$0xff]  }
 0x31e   :  { %v693_v0 = vsel %vm692_vm3, %v691_v63, %v682_v62 }
 0x31f   :  { %v696_v37 = vsel %vm695_vm4, %v693_v0, -inf }
 0x320   :  { %697 = vmax.xlane.f32.xlu0 %v696_v37 }
 0x3ad   :  { %v698_v2 = vpop.xlane.xlu0 %697 }
 0x3ae   :  { %v703_v4 = vrot.slane %v698_v2, %v6829_v40  ;;  %v707_v6 = vrot.slane %v698_v2, %v6832_v42 }
 0x3b0   :  { %v710_v8 = vsub.f32 %v656_v49, %v703_v4  ;;  %v711_v9 = vsub.f32 %v659_v52, %v703_v4  ;;  %v712_v12 = vsub.f32 %v662_v51, %v707_v6  ;;  %v713_v17 = vsub.f32 %v665_v57, %v707_v6 }
 0x3b1   :  { %v6535_v57 = vmov 0.0  }
 0x3b2   :  { %v714_v13 = vmul.f32 1.442695, %v710_v8  ;;  %v716_v16 = vmul.f32 1.442695, %v711_v9  ;;  %v718_v18 = vmul.f32 1.442695, %v712_v12  ;;  %5645 = vmatprep.mubr.msk.f32.mxu1 %vm6534_vm5, %v6535_v57  ;;  %5633 = vmatprep.subr.bf16.mxu0 %v6535_v57 }
 0x3b3   :  { %v720_v19 = vmul.f32 1.442695, %v713_v17  ;;  %5637 = vmatprep.mubr.msk.bf16.mxu0 %vm6534_vm5, %v6535_v57  ;;  %5634 = vmatpush3.bf16.msra.mxu0 %v5989_v31  ;;  %v6928_v12 = vld [vmem:[#allocation14] sm:$0xff]  }
 0x3b4   :  { %6013 = vpow2.f32 %v714_v13  ;;  %5635 = vmatprep.subr.bf16.mxu0 %v6535_v57  ;;  %v365_v17 = vld [vmem:[#allocation8] sm:$0x1] }
 0x3b5   :  { %6015 = vpow2.f32 %v716_v16  ;;  %v6934_v16 = vld [vmem:[#allocation14 + $0x8] sm:$0xff]  }
 0x3b6   :  { %6017 = vpow2.f32 %v718_v18  ;;  %v366_v18 = vld [vmem:[#allocation8 + $0x1] sm:$0x1] }
 0x3b7   :  { %6019 = vpow2.f32 %v720_v19  ;;  %v367_v19 = vld [vmem:[#allocation8 + $0x2] sm:$0x1] }
 0x3be   :  { %v6014_v20 = vpop.eup %6013 }
 0x3bf   :  { %v6016_v27 = vpop.eup %6015  ;;  %727 = vperm.xlu1 %5967, %v6014_v20  }
 0x3c0   :  { %730 = vperm.xlu0 %5968, %v6016_v27   ;;  %v6018_v28 = vpop.eup %6017 }
 0x3c1   :  { %v6020_v29 = vpop.eup %6019 }
 0x3c3   :  { %733 = vperm.xlu1 %5967, %v6018_v28  }
 0x3c7   :  { %736 = vperm.xlu1 %5967, %v6020_v29  }
 0x43e   :  { %v728_v30 = vpop.permute.xlu1 %727 }
 0x43f   :  { %v731_v32 = vpop.permute.xlu0 %730  ;;  %v741_v35 = vrot.slane %v728_v30, %v6889_v53  ;;  %v371_v30 = vld [vmem:[#allocation8 + $0x6] sm:$0x1] }
 0x440   :  { %v745_v34 = vrot.slane %v731_v32, %v6886_v50  ;;  %v372_v32 = vld [vmem:[#allocation8 + $0x7] sm:$0x1] }
 0x442   :  { %v734_v33 = vpop.permute.xlu1 %733  ;;  %v746_v41 = vsel %vm681_vm2, %v745_v34, %v741_v35  ;;  %v388_v35 = vcombine.low %v371_v30, %v372_v32  ;;  %v6984_v32 = vld [vmem:[#allocation16] ss:$0 sm:$0xff] }
 0x443   :  { %v750_v38 = vrot.slane %v734_v33, %v6889_v53 }
 0x446   :  { %v737_v36 = vpop.permute.xlu1 %736 }
 0x447   :  { %v754_v39 = vrot.slane %v737_v36, %v6886_v50 }
 0x449   :  { %v755_v43 = vsel %vm681_vm2, %v754_v39, %v750_v38  ;;  %v5990_v38 = vld [vmem:[#allocation13 + $0x8] sm:$0xff]  }
 0x44a   :  { %v756_v45 = vsel %vm692_vm3, %v755_v43, %v746_v41  ;;  %v416_v43 = vrot.slane %v388_v35, %v6835_v44  ;;  %5636 = vmatpush3.bf16.msra.mxu0 %v5990_v38 }
 0x44b   :  { %v758_v46 = vsel %vm695_vm4, %v756_v45, 0.0  ;;  %5655 = vmatprep.subr.bf16.mxu0 %v6535_v57 }
 0x44c   :  { %759 = vadd.xlane.f32.xlu1 %v758_v46 }
 0x4d9   :  { %v760_v47 = vpop.xlane.xlu1 %759 }
 0x4da   :  { %6021 = vrcp.f32 %v760_v47 }
 0x4e4   :  { %v6022_v48 = vpop.eup %6021 }
 0x4e5   :  { %v766_v49 = vrot.slane %v6022_v48, %v6829_v40  ;;  %v770_v56 = vrot.slane %v6022_v48, %v6832_v42 }
 0x4e7   :  { %v773_v51 = vmul.f32 %v6014_v20, %v766_v49  ;;  %v774_v52 = vmul.f32 %v6016_v27, %v766_v49  ;;  %v775_v58 = vmul.f32 %v6018_v28, %v770_v56  ;;  %v776_v61 = vmul.f32 %v6020_v29, %v770_v56  ;;  %v368_v20 = vld [vmem:[#allocation8 + $0x3] sm:$0x1]  ;;  %v369_v27 = vld [vmem:[#allocation8 + $0x4] sm:$0x1]  ;;  %v370_v28 = vld [vmem:[#allocation8 + $0x5] sm:$0x1] }
 0x4e8   :  { %v385_v29 = vcombine.low %v365_v17, %v366_v18  ;;  %v386_v33 = vcombine.low %v367_v19, %v368_v20  ;;  %v387_v34 = vcombine.low %v369_v27, %v370_v28 }
 0x4e9   :  { %780 = vperm.xlu0 %5968, %v773_v51   ;;  %v6957_v51 = vld [vmem:[%s7939_s9] sm:$0xff]  }
 0x4ea   :  { %v395_v36 = vrot.slane %v385_v29, %v6835_v44  ;;  %v402_v39 = vrot.slane %v386_v33, %v6835_v44  ;;  %v409_v41 = vrot.slane %v387_v34, %v6835_v44 }
 0x4ec   :  { %v417_v45 = vcombine.low %v395_v36, %v402_v39  ;;  %v418_v46 = vcombine.low %v409_v41, %v416_v43 }
 0x4ed   :  { %783 = vperm.xlu0 %5968, %v774_v52   ;;  %v6966_v52 = vld [vmem:[%s7939_s9 + $0x8] sm:$0xff]  }
 0x4ee   :  { %v425_v47 = vrot.slane %v417_v45, %v6835_v44  ;;  %v432_v48 = vrot.slane %v418_v46, %v6835_v44 }
 0x4f0   :  { %v433_v49 = vcombine.low %v425_v47, %v432_v48 }
 0x4f1   :  { %870 = vperm.xlu0 %5968, %v775_v58  }
 0x4f2   :  { %5638 = vmatmul.mubr.msk.bf16.vlgmr.msra.gmra.mrb[4].mxu0 %vm305_vm1, %v433_v49 }
 0x4f3   :  { %5659 = vmatprep.mubr.msk.bf16.mxu0 %vm6534_vm5, %v6535_v57  ;;  %5656 = vmatpush3.bf16.msra.mxu0 %v6957_v51 }
 0x4f4   :  { %5657 = vmatprep.subr.bf16.mxu0 %v6535_v57 }
 0x4f5   :  { %873 = vperm.xlu0 %5968, %v776_v61  }
 0x4f7   :  { %5658 = vmatpush3.bf16.msra.mxu0 %v6966_v52 }
 0x4f8   :  { %1153 = vmatprep.subr.bf16.mxu0 %v6784_v10 }
 0x568   :  { %v781_v62 = vpop.permute.xlu0 %780 }
 0x569   :  { %v788_v0 = vrot.slane %v781_v62, %v6889_v53 }
 0x56c   :  { %v784_v63 = vpop.permute.xlu0 %783 }
 0x56d   :  { %v792_v37 = vrot.slane %v784_v63, %v6886_v50 }
 0x56f   :  { %v793_v2 = vsel %vm681_vm2, %v792_v37, %v788_v0 }
 0x570   :  { %5646 = vmatmul.mubr.msk.f32.vlgmr.msra.gmra.mrb[12].mxu1 %vm794_vm6, %v793_v2  ;;  %1144 = vst.msk [vmem:[#allocation4] sm:$0x1] %vm1143_vm7, %v793_v2  ;;  %v871_v4 = vpop.permute.xlu0 %870 }
 0x571   :  { %5902 = vmatpush3.bf16.msra.mxu1 %v6793_v21  ;;  %5652 = vmatprep.mubr.msk.f32.mxu1 %vm6534_vm5, %v6535_v57  ;;  %v878_v8 = vrot.slane %v871_v4, %v6889_v53 }
 0x572   :  { %5663 = vmatprep.subr.bf16.mxu1 %v6535_v57 }
 0x574   :  { %v874_v6 = vpop.permute.xlu0 %873 }
 0x575   :  { %v882_v9 = vrot.slane %v874_v6, %v6886_v50 }
 0x577   :  { %v883_v13 = vsel %vm681_vm2, %v882_v9, %v878_v8 }
 0x578   :  { %5653 = vmatmul.mubr.msk.f32.vlgmr.msra.gmra.mrb[14].mxu1 %vm794_vm6, %v883_v13  ;;  %1145 = vst.msk [vmem:[#allocation4 + $0x8] sm:$0x1] %vm1143_vm7, %v883_v13 }
 0x579   :  { %5664 = vmatpush3.bf16.msra.mxu1 %v6928_v12  ;;  %5667 = vmatprep.mubr.msk.bf16.mxu1 %vm6534_vm5, %v6535_v57 }
 0x57a   :  { %5665 = vmatprep.subr.bf16.mxu1 %v6535_v57 }
 0x57d   :  { %5666 = vmatpush3.bf16.msra.mxu1 %v6934_v16 }
 0x57e   :  { %5903 = vmatprep.subr.bf16.mxu1 %v6532_v26 }
 0x580   :  { %5668 = vmatmul.mubr.bf16.vlgmr.msra.gmra.mrb[16].mxu1 %v6531_v11 }
 0x581   :  { %5905 = vmatpush3.bf16.msra.mxu1 %v6800_v23  ;;  %5675 = vmatprep.mubr.msk.f32.mxu1 %vm6534_vm5, %v6535_v57 }
 0x582   :  { %5906 = vmatprep.subr.bf16.mxu1 %v6532_v26 }
 0x5c5   :  { %v6979_v18 = vpop.f32.mrb[4].mxu0 }
 0x5c6   :  { %v5639_v19 = vpop.f32.mrb[5].mxu0 }
 0x5c7   :  { %v6981_v20 = vpop.f32.mrb[6].mxu0 }
 0x5c8   :  { %v5640_v27 = vpop.f32.mrb[7].mxu0 }
 0x643   :  { %v863_v56 = vpop.f32.mrb[12].mxu1 }
 0x644   :  { %1139 = vst.msk [vmem:[#allocation3] sm:$0x1] %vm1136_vm8, %v863_v56  ;;  %v5647_v58 = vpop.f32.mrb[13].mxu1  ;;  %v956_v31 = vpack.c.bf16 %v863_v56, %v863_v56 }
 0x646   :  { %v960_v37 = vunpack.c.l.b16 %v956_v31 }
 0x64b   :  { %v952_v61 = vpop.f32.mrb[14].mxu1 }
 0x64c   :  { %v957_v62 = vpack.c.bf16 %v952_v61, %v952_v61  ;;  %1140 = vst.msk [vmem:[#allocation3 + $0x8] sm:$0x1] %vm1136_vm8, %v952_v61  ;;  %v5654_v63 = vpop.f32.mrb[15].mxu1 }
 0x64e   :  { %v961_v0 = vunpack.c.l.b16 %v957_v62 }
 0x650   :  { %v962_v2 = vrot.slane %v961_v0, 7 }
 0x652   :  { %v963_v4 = vsel %vm692_vm3, %v962_v2, %v960_v37 }
 0x653   :  { %v964_v6 = vpack.c.b16 %v963_v4, %v963_v4  ;;  %v1067_v8 = vpop.f32.mrb[16].mxu1 }
 0x654   :  { %v5669_v9 = vpop.f32.mrb[17].mxu1 }
 0x655   :  { %5660 = vmatmul.mubr.msk.bf16.vlgmr.msra.gmra.mrb[8].mxu0 %vm305_vm1, %v964_v6  ;;  %v1070_v13 = vpop.f32.mrb[18].mxu1 }
 0x656   :  { %v5670_v17 = vpop.f32.mrb[19].mxu1  ;;  %1154 = vmatpush1.bf16.msra.mxu0 %v6798_v22  ;;  %1185 = vmatprep.mubr.bf16.mxu0 %v6531_v11 }
 0x657   :  { %1155 = vmatprep.subr.bf16.mxu0 %v6805_v24 }
 0x65a   :  { %1156 = vmatpush1.bf16.msra.mxu0 %v6814_v25 }
 0x65b   :  { %5685 = vmatprep.subr.bf16.mxu0 %v6535_v57 }
 0x728   :  { %v1014_v28 = vpop.f32.mrb[8].mxu0 }
 0x729   :  { %v1020_v29 = vadd.f32 %v1014_v28, %v6979_v18  ;;  %v5661_v30 = vpop.f32.mrb[9].mxu0 }
 0x72a   :  { %v1017_v33 = vpop.f32.mrb[10].mxu0 }
 0x72b   :  { %v1073_v34 = vadd.f32 %v1067_v8, %v1020_v29  ;;  %v5662_v35 = vpop.f32.mrb[11].mxu0 }
 0x72d   :  { %v1074_v36 = vadd.f32 %v6984_v32, %v1073_v34 }
 0x72f   :  { %6023 = vtanh.f32 %v1074_v36  ;;  %v5460_v39 = vmul.f32 -1.442695, %v1074_v36 }
 0x731   :  { %6025 = vpow2.f32 %v5460_v39 }
 0x739   :  { %v6024_v38 = vpop.eup %6023 }
 0x73a   :  { %1084 = vrot.lane.b32.xlu1 %v6024_v38, %s6525_s21 }
 0x73b   :  { %v6026_v41 = vpop.eup %6025 }
 0x73c   :  { %v1078_v43 = vadd.f32 1.0, %v6026_v41 }
 0x73e   :  { %6027 = vrcp.f32 %v1078_v43 }
 0x748   :  { %v6028_v45 = vpop.eup %6027 }
 0x749   :  { %v1082_v48 = vmul.f32 0.0, %v6028_v45 }
 0x7ac   :  { %v1085_v46 = vpop.permute.xlu1 %1084 }
 0x7ad   :  { %v1087_v47 = vmul.f32 %v6028_v45, %v1085_v46 }
 0x7af   :  { %1089 = vrot.lane.b32.xlu0 %v1087_v47, %s6536_s19 }
 0x821   :  { %v1090_v49 = vpop.permute.xlu0 %1089 }
 0x822   :  { %v6989_v56 = vadd.f32 %v1090_v49, %v1082_v48 }
 0x824   :  { %6029 = vtanh.f32 %v6989_v56 }
 0x82e   :  { %v6030_v58 = vpop.eup %6029 }
 0x82f   :  { %1095 = vrot.lane.b32.xlu0 %v6030_v58, %s6525_s21 }
 0x8a1   :  { %v1096_v61 = vpop.permute.xlu0 %1095 }
 0x8a2   :  { %v6993_v31 = vmul.f32 %v6028_v45, %v1096_v61 }
 0x8a4   :  { %v1146_v62 = vpack.c.bf16 %v6993_v31, %v6993_v31 }
 0x8a6   :  { %1148 = vrot.lane.b32.xlu0 %v1146_v62, %s6536_s19 }
 0x918   :  { %v6998_v63 = vpop.permute.xlu0 %1148 }
 0x919   :  { %5461 = vmatmul.mubr.msk.bf16.vlgmr.msra.gmra.mrb[12].mxu0 %vm305_vm1, %v6998_v63 }
 0x91a   :  { %5686 = vmatpush3.bf16.msra.mxu0 %v6957_v51  ;;  %5689 = vmatprep.mubr.msk.bf16.mxu0 %vm6534_vm5, %v6535_v57 }
 0x91b   :  { %5687 = vmatprep.subr.bf16.mxu0 %v6535_v57 }
 0x91e   :  { %5688 = vmatpush3.bf16.msra.mxu0 %v6966_v52 }
 0x91f   :  { %1741 = vmatprep.subr.bf16.mxu0 %v6784_v10 }
 0x9ec   :  { %v1187_v0 = vpop.f32.mrb[12].mxu0 }
 0x9ed   :  { %v1189_v37 = vpop.f32.mrb[13].mxu0 }
 0x9ee   :  { %v1196_v2 = vcombine.low %v1187_v0, %v1189_v37  ;;  %v1191_v4 = vpop.f32.mrb[14].mxu0 }
 0x9ef   :  { %v1192_v6 = vpop.f32.mrb[15].mxu0 }
 0x9f0   :  { %v1203_v8 = vrot.slane %v1196_v2, %v6835_v44 }
 0x9f2   :  { %v1204_v9 = vcombine.high %v1203_v8, %v1203_v8  ;;  %v1211_v13 = vrot.slane %v1203_v8, %v6835_v44 }
 0x9f4   :  { %v1218_v17 = vrot.slane %v1204_v9, %v6835_v44  ;;  %v1222_v19 = vrot.slane %v1211_v13, %v6829_v40  ;;  %v1226_v27 = vrot.slane %v1211_v13, %v6832_v42 }
 0x9f6   :  { %v1230_v28 = vrot.slane %v1218_v17, %v6829_v40  ;;  %v1234_v10 = vrot.slane %v1218_v17, %v6832_v42  ;;  %v1239_v29 = vadd.f32 %v1222_v19, %v6841_v54  ;;  %v1240_v30 = vadd.f32 %v1226_v27, %v6843_v55 }
 0x9f7   :  { %v1241_v33 = vadd.f32 %v1222_v19, %v6848_v59  ;;  %v1242_v34 = vadd.f32 %v1226_v27, %v6850_v60 }
 0x9f8   :  { %v1243_v35 = vadd.f32 %v1230_v28, %v6856_v1  ;;  %6031 = vtanh.f32 %v1239_v29  ;;  %v1244_v36 = vadd.f32 %v1234_v10, %v6859_v3  ;;  %v1245_v38 = vadd.f32 %v1230_v28, %v6862_v5 }
 0x9f9   :  { %6033 = vtanh.f32 %v1240_v30  ;;  %v1246_v39 = vadd.f32 %v1234_v10, %v6865_v7 }
 0x9fa   :  { %6035 = vtanh.f32 %v1241_v33 }
 0x9fb   :  { %6037 = vtanh.f32 %v1242_v34 }
 0x9fc   :  { %6039 = vtanh.f32 %v1243_v35 }
 0x9fd   :  { %6041 = vtanh.f32 %v1244_v36 }
 0x9fe   :  { %6043 = vtanh.f32 %v1245_v38 }
 0x9ff   :  { %6045 = vtanh.f32 %v1246_v39 }
 0xa02   :  { %v6032_v41 = vpop.eup %6031 }
 0xa03   :  { %v6034_v43 = vpop.eup %6033  ;;  %v1255_v45 = vmul.f32 %v6032_v41, %v6871_v14 }
 0xa04   :  { %v6036_v46 = vpop.eup %6035  ;;  %v1256_v47 = vmul.f32 %v6034_v43, %v6874_v15 }
 0xa05   :  { %v6038_v48 = vpop.eup %6037  ;;  %v1257_v49 = vmul.f32 %v6036_v46, %v6871_v14 }
 0xa06   :  { %v6040_v58 = vpop.eup %6039  ;;  %v1258_v61 = vmul.f32 %v6038_v48, %v6874_v15  ;;  %v1263_v62 = vadd.f32 %v1256_v47, %v1255_v45 }
 0xa07   :  { %v6042_v0 = vpop.eup %6041  ;;  %v1259_v37 = vmul.f32 %v6040_v58, %v6871_v14 }
 0xa08   :  { %v6044_v2 = vpop.eup %6043  ;;  %v1266_v4 = vadd.f32 %v1258_v61, %v1257_v49  ;;  %1264 = vadd.xlane.f32.xlu0 %v1263_v62  ;;  %v1260_v6 = vmul.f32 %v6042_v0, %v6874_v15 }
 0xa09   :  { %v6046_v8 = vpop.eup %6045  ;;  %v1261_v13 = vmul.f32 %v6044_v2, %v6871_v14 }
 0xa0a   :  { %1267 = vadd.xlane.f32.xlu1 %v1266_v4  ;;  %v1269_v9 = vadd.f32 %v1260_v6, %v1259_v37  ;;  %v1262_v17 = vmul.f32 %v6046_v8, %v6874_v15 }
 0xa0c   :  { %1270 = vadd.xlane.f32.xlu0 %v1269_v9  ;;  %v1272_v19 = vadd.f32 %v1262_v17, %v1261_v13 }
 0xa10   :  { %1273 = vadd.xlane.f32.xlu0 %v1272_v19 }
 0xa95   :  { %v1265_v27 = vpop.xlane.xlu0 %1264 }
 0xa96   :  { %v1282_v30 = vrot.slane %v1265_v27, %v6889_v53 }
 0xa97   :  { %v1268_v28 = vpop.xlane.xlu1 %1267 }
 0xa98   :  { %v1286_v29 = vrot.slane %v1268_v28, %v6886_v50 }
 0xa99   :  { %v1271_v10 = vpop.xlane.xlu0 %1270 }
 0xa9a   :  { %v1291_v34 = vrot.slane %v1271_v10, %v6889_v53  ;;  %v1287_v36 = vsel %vm681_vm2, %v1286_v29, %v1282_v30 }
 0xa9d   :  { %v1274_v33 = vpop.xlane.xlu0 %1273 }
 0xa9e   :  { %v1295_v35 = vrot.slane %v1274_v33, %v6886_v50 }
 0xaa0   :  { %v1296_v38 = vsel %vm681_vm2, %v1295_v35, %v1291_v34 }
 0xaa1   :  { %v1297_v39 = vsel %vm692_vm3, %v1296_v38, %v1287_v36 }
 0xaa2   :  { %v1299_v41 = vsel %vm695_vm4, %v1297_v39, -inf }
 0xaa3   :  { %1300 = vmax.xlane.f32.xlu1 %v1299_v41 }
 0xb30   :  { %v1301_v43 = vpop.xlane.xlu1 %1300 }
 0xb31   :  { %v1306_v45 = vrot.slane %v1301_v43, %v6829_v40  ;;  %v1310_v46 = vrot.slane %v1301_v43, %v6832_v42 }
 0xb33   :  { %v1313_v47 = vsub.f32 %v1265_v27, %v1306_v45  ;;  %v1314_v48 = vsub.f32 %v1268_v28, %v1306_v45  ;;  %v1316_v49 = vsub.f32 %v1274_v33, %v1310_v46  ;;  %v1315_v58 = vsub.f32 %v1271_v10, %v1310_v46 }
 0xb35   :  { %v1317_v61 = vmul.f32 1.442695, %v1313_v47  ;;  %v1319_v62 = vmul.f32 1.442695, %v1314_v48  ;;  %v1323_v0 = vmul.f32 1.442695, %v1316_v49 }
 0xb36   :  { %v1321_v37 = vmul.f32 1.442695, %v1315_v58 }
 0xb37   :  { %6047 = vpow2.f32 %v1317_v61 }
 0xb38   :  { %6049 = vpow2.f32 %v1319_v62 }
 0xb39   :  { %6051 = vpow2.f32 %v1323_v0 }
 0xb3a   :  { %6053 = vpow2.f32 %v1321_v37 }
 0xb41   :  { %v6048_v2 = vpop.eup %6047 }
 0xb42   :  { %v6050_v4 = vpop.eup %6049  ;;  %1330 = vperm.xlu0 %5968, %v6048_v2  }
 0xb43   :  { %1333 = vperm.xlu1 %5967, %v6050_v4   ;;  %v6052_v6 = vpop.eup %6051 }
 0xb44   :  { %v6054_v8 = vpop.eup %6053 }
 0xb46   :  { %1339 = vperm.xlu0 %5968, %v6052_v6  }
 0xb47   :  { %1336 = vperm.xlu1 %5967, %v6054_v8  }
 0xbc1   :  { %v1331_v9 = vpop.permute.xlu0 %1330 }
 0xbc2   :  { %v1334_v13 = vpop.permute.xlu1 %1333  ;;  %v1344_v19 = vrot.slane %v1331_v9, %v6889_v53 }
 0xbc3   :  { %v1348_v17 = vrot.slane %v1334_v13, %v6886_v50 }
 0xbc5   :  { %v1340_v27 = vpop.permute.xlu0 %1339  ;;  %v1349_v30 = vsel %vm681_vm2, %v1348_v17, %v1344_v19 }
 0xbc6   :  { %v1337_v28 = vpop.permute.xlu1 %1336  ;;  %v1357_v10 = vrot.slane %v1340_v27, %v6886_v50 }
 0xbc7   :  { %v1353_v29 = vrot.slane %v1337_v28, %v6889_v53 }
 0xbc9   :  { %v1358_v33 = vsel %vm681_vm2, %v1357_v10, %v1353_v29 }
 0xbca   :  { %v1359_v34 = vsel %vm692_vm3, %v1358_v33, %v1349_v30 }
 0xbcb   :  { %v1361_v35 = vsel %vm695_vm4, %v1359_v34, 0.0 }
 0xbcc   :  { %1362 = vadd.xlane.f32.xlu1 %v1361_v35 }
 0xc59   :  { %v1363_v36 = vpop.xlane.xlu1 %1362 }
 0xc5a   :  { %6055 = vrcp.f32 %v1363_v36 }
 0xc64   :  { %v6056_v38 = vpop.eup %6055 }
 0xc65   :  { %v1369_v39 = vrot.slane %v6056_v38, %v6829_v40  ;;  %v1373_v45 = vrot.slane %v6056_v38, %v6832_v42 }
 0xc67   :  { %v1376_v41 = vmul.f32 %v6048_v2, %v1369_v39  ;;  %v1377_v43 = vmul.f32 %v6050_v4, %v1369_v39  ;;  %v1378_v46 = vmul.f32 %v6054_v8, %v1373_v45  ;;  %v1379_v47 = vmul.f32 %v6052_v6, %v1373_v45 }
 0xc69   :  { %1383 = vperm.xlu0 %5968, %v1376_v41  }
 0xc6d   :  { %1386 = vperm.xlu0 %5968, %v1377_v43  }
 0xc71   :  { %1472 = vperm.xlu0 %5968, %v1378_v46  }
 0xc75   :  { %1475 = vperm.xlu0 %5968, %v1379_v47  }
 0xce8   :  { %v1384_v48 = vpop.permute.xlu0 %1383 }
 0xce9   :  { %v1391_v58 = vrot.slane %v1384_v48, %v6889_v53 }
 0xcec   :  { %v1387_v49 = vpop.permute.xlu0 %1386 }
 0xced   :  { %v1395_v61 = vrot.slane %v1387_v49, %v6886_v50 }
 0xcef   :  { %v1396_v62 = vsel %vm681_vm2, %v1395_v61, %v1391_v58 }
 0xcf0   :  { %5676 = vmatmul.mubr.msk.f32.vlgmr.msra.gmra.mrb[20].mxu1 %vm794_vm6, %v1396_v62  ;;  %1731 = vst.msk [vmem:[#allocation4 + $0x1] sm:$0x1] %vm1143_vm7, %v1396_v62  ;;  %v1473_v0 = vpop.permute.xlu0 %1472 }
 0xcf1   :  { %5908 = vmatpush3.bf16.msra.mxu1 %v6793_v21  ;;  %5682 = vmatprep.mubr.msk.f32.mxu1 %vm6534_vm5, %v6535_v57  ;;  %v1480_v2 = vrot.slane %v1473_v0, %v6889_v53 }
 0xcf2   :  { %5693 = vmatprep.subr.bf16.mxu1 %v6535_v57 }
 0xcf4   :  { %v1476_v37 = vpop.permute.xlu0 %1475 }
 0xcf5   :  { %v1484_v4 = vrot.slane %v1476_v37, %v6886_v50  ;;  %v1667_v37 = vrot.slane %v6989_v56, 6 }
 0xcf7   :  { %v1485_v6 = vsel %vm681_vm2, %v1484_v4, %v1480_v2 }
 0xcf8   :  { %5683 = vmatmul.mubr.msk.f32.vlgmr.msra.gmra.mrb[22].mxu1 %vm794_vm6, %v1485_v6  ;;  %1732 = vst.msk [vmem:[#allocation4 + $0x9] sm:$0x1] %vm1143_vm7, %v1485_v6 }
 0xcf9   :  { %5694 = vmatpush3.bf16.msra.mxu1 %v6928_v12  ;;  %5697 = vmatprep.mubr.msk.bf16.mxu1 %vm6534_vm5, %v6535_v57 }
 0xcfa   :  { %5695 = vmatprep.subr.bf16.mxu1 %v6535_v57 }
 0xcfd   :  { %5696 = vmatpush3.bf16.msra.mxu1 %v6934_v16 }
 0xcfe   :  { %5909 = vmatprep.subr.bf16.mxu1 %v6532_v26 }
 0xd00   :  { %5698 = vmatmul.mubr.msk.bf16.vlgmr.msra.gmra.mrb[24].mxu1 %vm305_vm1, %v6998_v63 }
 0xd01   :  { %5911 = vmatpush3.bf16.msra.mxu1 %v6800_v23  ;;  %5705 = vmatprep.mubr.msk.f32.mxu1 %vm6534_vm5, %v6535_v57 }
 0xd02   :  { %5715 = vmatprep.subr.bf16.mxu1 %v6535_v57 }
 0xdc3   :  { %v1465_v8 = vpop.f32.mrb[20].mxu1 }
 0xdc4   :  { %1727 = vst.msk [vmem:[#allocation3 + $0x1] sm:$0x1] %vm1136_vm8, %v1465_v8  ;;  %v5677_v9 = vpop.f32.mrb[21].mxu1  ;;  %v1558_v17 = vpack.c.bf16 %v1465_v8, %v1465_v8 }
 0xdc6   :  { %v1562_v10 = vunpack.c.l.b16 %v1558_v17 }
 0xdcb   :  { %v1554_v13 = vpop.f32.mrb[22].mxu1 }
 0xdcc   :  { %v1559_v19 = vpack.c.bf16 %v1554_v13, %v1554_v13  ;;  %1728 = vst.msk [vmem:[#allocation3 + $0x9] sm:$0x1] %vm1136_vm8, %v1554_v13  ;;  %v5684_v27 = vpop.f32.mrb[23].mxu1 }
 0xdce   :  { %v1563_v28 = vunpack.c.l.b16 %v1559_v19 }
 0xdd0   :  { %v1564_v63 = vrot.slane %v1563_v28, 7 }
 0xdd2   :  { %v1565_v29 = vsel %vm692_vm3, %v1564_v63, %v1562_v10 }
 0xdd3   :  { %v1566_v30 = vpack.c.b16 %v1565_v29, %v1565_v29  ;;  %v1648_v33 = vpop.f32.mrb[24].mxu1 }
 0xdd4   :  { %v5699_v34 = vpop.f32.mrb[25].mxu1  ;;  %v1655_v45 = vrot.slane %v1648_v33, 6 }
 0xdd5   :  { %v1651_v35 = vpop.f32.mrb[26].mxu1  ;;  %5690 = vmatmul.mubr.msk.bf16.vlgmr.msra.gmra.mrb[16].mxu0 %vm305_vm1, %v1566_v30 }
 0xdd6   :  { %v5700_v36 = vpop.f32.mrb[27].mxu1  ;;  %1742 = vmatpush1.bf16.msra.mxu0 %v6798_v22  ;;  %1773 = vmatprep.mubr.bf16.mxu0 %v6531_v11 }
 0xdd7   :  { %1743 = vmatprep.subr.bf16.mxu0 %v6805_v24 }
 0xdda   :  { %1744 = vmatpush1.bf16.msra.mxu0 %v6814_v25 }
 0xddb   :  { %5912 = vmatprep.subr.bf16.mxu0 %v6532_v26 }
 0xea8   :  { %v1604_v38 = vpop.f32.mrb[16].mxu0 }
 0xea9   :  { %v1611_v39 = vrot.slane %v1604_v38, 6  ;;  %v5691_v41 = vpop.f32.mrb[17].mxu0 }
 0xeaa   :  { %v1607_v43 = vpop.f32.mrb[18].mxu0 }
 0xeab   :  { %v1613_v46 = vadd.f32 %v1611_v39, %v6979_v18  ;;  %v5692_v47 = vpop.f32.mrb[19].mxu0 }
 0xead   :  { %v1657_v48 = vadd.f32 %v1655_v45, %v1613_v46 }
 0xeaf   :  { %v1658_v49 = vadd.f32 %v6984_v32, %v1657_v48 }
 0xeb1   :  { %6057 = vtanh.f32 %v1658_v49  ;;  %v5466_v24 = vmul.f32 -1.442695, %v1658_v49 }
 0xeb3   :  { %6059 = vpow2.f32 %v5466_v24 }
 0xebb   :  { %v6058_v22 = vpop.eup %6057 }
 0xebc   :  { %1671 = vrot.lane.b32.xlu0 %v6058_v22, %s6525_s21 }
 0xebd   :  { %v6060_v25 = vpop.eup %6059 }
 0xebe   :  { %v1662_v58 = vadd.f32 1.0, %v6060_v25 }
 0xec0   :  { %6061 = vrcp.f32 %v1662_v58 }
 0xeca   :  { %v6062_v61 = vpop.eup %6061 }
 0xecb   :  { %v1669_v2 = vmul.f32 %v6062_v61, %v1667_v37 }
 0xf2e   :  { %v1672_v62 = vpop.permute.xlu0 %1671 }
 0xf2f   :  { %v1674_v0 = vmul.f32 %v6062_v61, %v1672_v62 }
 0xf31   :  { %1676 = vrot.lane.b32.xlu0 %v1674_v0, %s6536_s19 }
 0xfa3   :  { %v1677_v4 = vpop.permute.xlu0 %1676 }
 0xfa4   :  { %v7091_v6 = vadd.f32 %v1677_v4, %v1669_v2 }
 0xfa6   :  { %6063 = vtanh.f32 %v7091_v6 }
 0xfb0   :  { %v6064_v8 = vpop.eup %6063 }
 0xfb1   :  { %1682 = vrot.lane.b32.xlu0 %v6064_v8, %s6525_s21 }
0x1023   :  { %v1683_v9 = vpop.permute.xlu0 %1682 }
0x1024   :  { %v7095_v13 = vmul.f32 %v6062_v61, %v1683_v9 }
0x1026   :  { %v1733_v17 = vpack.c.bf16 %v7095_v13, %v7095_v13 }
0x1028   :  { %v1735_v19 = vrot.slane %v1733_v17, 1 }
0x102a   :  { %1736 = vrot.lane.b32.xlu0 %v1735_v19, %s6536_s19 }
0x109c   :  { %v7100_v27 = vpop.permute.xlu0 %1736 }
0x109d   :  { %5467 = vmatmul.mubr.msk.bf16.vlgmr.msra.gmra.mrb[20].mxu0 %vm305_vm1, %v7100_v27 }
0x109e   :  { %5914 = vmatpush3.bf16.msra.mxu0 %v6793_v21  ;;  %5712 = vmatprep.mubr.msk.f32.mxu0 %vm6534_vm5, %v6535_v57 }
0x109f   :  { %5723 = vmatprep.subr.bf16.mxu0 %v6535_v57 }
0x1170   :  { %v1775_v56 = vpop.f32.mrb[20].mxu0 }
0x1171   :  { %v1777_v28 = vpop.f32.mrb[21].mxu0 }
0x1172   :  { %v1784_v10 = vcombine.low %v1775_v56, %v1777_v28  ;;  %v1779_v63 = vpop.f32.mrb[22].mxu0 }
0x1173   :  { %v1780_v29 = vpop.f32.mrb[23].mxu0 }
0x1174   :  { %v1791_v30 = vrot.slane %v1784_v10, %v6835_v44 }
0x1176   :  { %v1792_v33 = vcombine.high %v1791_v30, %v1791_v30  ;;  %v1799_v34 = vrot.slane %v1791_v30, %v6835_v44 }
0x1178   :  { %v1806_v35 = vrot.slane %v1792_v33, %v6835_v44  ;;  %v1810_v36 = vrot.slane %v1799_v34, %v6829_v40  ;;  %v1814_v38 = vrot.slane %v1799_v34, %v6832_v42 }
0x117a   :  { %v1818_v39 = vrot.slane %v1806_v35, %v6829_v40  ;;  %v1822_v41 = vrot.slane %v1806_v35, %v6832_v42  ;;  %v1827_v43 = vadd.f32 %v1810_v36, %v6841_v54  ;;  %v1828_v45 = vadd.f32 %v1814_v38, %v6843_v55 }
0x117b   :  { %v1829_v46 = vadd.f32 %v1810_v36, %v6848_v59  ;;  %v1830_v47 = vadd.f32 %v1814_v38, %v6850_v60 }
0x117c   :  { %v1831_v48 = vadd.f32 %v1818_v39, %v6856_v1  ;;  %6065 = vtanh.f32 %v1827_v43  ;;  %v1832_v49 = vadd.f32 %v1822_v41, %v6859_v3  ;;  %v1833_v22 = vadd.f32 %v1818_v39, %v6862_v5 }
0x117d   :  { %6067 = vtanh.f32 %v1828_v45  ;;  %v1834_v24 = vadd.f32 %v1822_v41, %v6865_v7 }
0x117e   :  { %6069 = vtanh.f32 %v1829_v46 }
0x117f   :  { %6071 = vtanh.f32 %v1830_v47 }
0x1180   :  { %6073 = vtanh.f32 %v1831_v48 }
0x1181   :  { %6075 = vtanh.f32 %v1832_v49 }
0x1182   :  { %6077 = vtanh.f32 %v1833_v22 }
0x1183   :  { %6079 = vtanh.f32 %v1834_v24 }
0x1186   :  { %v6066_v25 = vpop.eup %6065 }
0x1187   :  { %v6068_v58 = vpop.eup %6067  ;;  %v1843_v61 = vmul.f32 %v6066_v25, %v6871_v14 }
0x1188   :  { %v6070_v62 = vpop.eup %6069  ;;  %v1844_v0 = vmul.f32 %v6068_v58, %v6874_v15 }
0x1189   :  { %v6072_v37 = vpop.eup %6071  ;;  %v1845_v2 = vmul.f32 %v6070_v62, %v6871_v14 }
0x118a   :  { %v6074_v4 = vpop.eup %6073  ;;  %v1846_v8 = vmul.f32 %v6072_v37, %v6874_v15  ;;  %v1851_v9 = vadd.f32 %v1844_v0, %v1843_v61 }
0x118b   :  { %v6076_v17 = vpop.eup %6075  ;;  %v1847_v28 = vmul.f32 %v6074_v4, %v6871_v14 }
0x118c   :  { %v6078_v19 = vpop.eup %6077  ;;  %v1854_v56 = vadd.f32 %v1846_v8, %v1845_v2  ;;  %1852 = vadd.xlane.f32.xlu0 %v1851_v9  ;;  %v1848_v10 = vmul.f32 %v6076_v17, %v6874_v15 }
0x118d   :  { %v6080_v63 = vpop.eup %6079  ;;  %v1849_v30 = vmul.f32 %v6078_v19, %v6871_v14 }
0x118e   :  { %1855 = vadd.xlane.f32.xlu1 %v1854_v56  ;;  %v1857_v29 = vadd.f32 %v1848_v10, %v1847_v28  ;;  %v1850_v33 = vmul.f32 %v6080_v63, %v6874_v15 }
0x1190   :  { %v1860_v34 = vadd.f32 %v1850_v33, %v1849_v30 }
0x1192   :  { %1858 = vadd.xlane.f32.xlu1 %v1857_v29 }
0x1196   :  { %1861 = vadd.xlane.f32.xlu1 %v1860_v34 }
0x1219   :  { %v1853_v36 = vpop.xlane.xlu0 %1852 }
0x121a   :  { %v1870_v41 = vrot.slane %v1853_v36, %v6889_v53 }
0x121b   :  { %v1856_v35 = vpop.xlane.xlu1 %1855 }
0x121c   :  { %v1874_v39 = vrot.slane %v1856_v35, %v6886_v50 }
0x121e   :  { %v1875_v47 = vsel %vm681_vm2, %v1874_v39, %v1870_v41 }
0x121f   :  { %v1859_v38 = vpop.xlane.xlu1 %1858 }
0x1220   :  { %v1879_v45 = vrot.slane %v1859_v38, %v6889_v53 }
0x1223   :  { %v1862_v43 = vpop.xlane.xlu1 %1861 }
0x1224   :  { %v1883_v46 = vrot.slane %v1862_v43, %v6886_v50 }
0x1226   :  { %v1884_v48 = vsel %vm681_vm2, %v1883_v46, %v1879_v45 }
0x1227   :  { %v1885_v49 = vsel %vm692_vm3, %v1884_v48, %v1875_v47 }
0x1228   :  { %v1887_v22 = vsel %vm695_vm4, %v1885_v49, -inf }
0x1229   :  { %1888 = vmax.xlane.f32.xlu1 %v1887_v22 }
0x12b6   :  { %v1889_v24 = vpop.xlane.xlu1 %1888 }
0x12b7   :  { %v1894_v25 = vrot.slane %v1889_v24, %v6829_v40  ;;  %v1898_v58 = vrot.slane %v1889_v24, %v6832_v42 }
0x12b9   :  { %v1901_v61 = vsub.f32 %v1853_v36, %v1894_v25  ;;  %v1902_v62 = vsub.f32 %v1856_v35, %v1894_v25  ;;  %v1903_v0 = vsub.f32 %v1859_v38, %v1898_v58  ;;  %v1904_v4 = vsub.f32 %v1862_v43, %v1898_v58 }
0x12bb   :  { %v1905_v37 = vmul.f32 1.442695, %v1901_v61  ;;  %v1907_v2 = vmul.f32 1.442695, %v1902_v62  ;;  %v1909_v8 = vmul.f32 1.442695, %v1903_v0 }
0x12bc   :  { %v1911_v9 = vmul.f32 1.442695, %v1904_v4 }
0x12bd   :  { %6081 = vpow2.f32 %v1905_v37 }
0x12be   :  { %6083 = vpow2.f32 %v1907_v2 }
0x12bf   :  { %6085 = vpow2.f32 %v1909_v8 }
0x12c0   :  { %6087 = vpow2.f32 %v1911_v9 }
0x12c7   :  { %v6082_v17 = vpop.eup %6081 }
0x12c8   :  { %v6084_v19 = vpop.eup %6083  ;;  %1918 = vperm.xlu1 %5967, %v6082_v17  }
0x12c9   :  { %1921 = vperm.xlu0 %5968, %v6084_v19   ;;  %v6086_v56 = vpop.eup %6085 }
0x12ca   :  { %v6088_v28 = vpop.eup %6087 }
0x12cc   :  { %1924 = vperm.xlu1 %5967, %v6086_v56  }
0x12d0   :  { %1927 = vperm.xlu1 %5967, %v6088_v28  }
0x1347   :  { %v1919_v10 = vpop.permute.xlu1 %1918 }
0x1348   :  { %v1922_v63 = vpop.permute.xlu0 %1921  ;;  %v1932_v33 = vrot.slane %v1919_v10, %v6889_v53 }
0x1349   :  { %v1936_v30 = vrot.slane %v1922_v63, %v6886_v50 }
0x134b   :  { %v1925_v29 = vpop.permute.xlu1 %1924  ;;  %v1937_v38 = vsel %vm681_vm2, %v1936_v30, %v1932_v33 }
0x134c   :  { %v1941_v35 = vrot.slane %v1925_v29, %v6889_v53 }
0x134f   :  { %v1928_v34 = vpop.permute.xlu1 %1927 }
0x1350   :  { %v1945_v36 = vrot.slane %v1928_v34, %v6886_v50 }
0x1352   :  { %v1946_v39 = vsel %vm681_vm2, %v1945_v36, %v1941_v35 }
0x1353   :  { %v1947_v41 = vsel %vm692_vm3, %v1946_v39, %v1937_v38 }
0x1354   :  { %v1949_v43 = vsel %vm695_vm4, %v1947_v41, 0.0  ;;  %v7191_v41 = vld [vmem:[%s7935_s5] ss:$8 sps:$4 sm:$0xff]  }
0x1355   :  { %1950 = vadd.xlane.f32.xlu1 %v1949_v43  ;;  %v7198_v43 = vld [vmem:[%s7935_s5 + $0x14] ss:$8 sps:$4 sm:$0xff]  }
0x13e2   :  { %v1951_v45 = vpop.xlane.xlu1 %1950 }
0x13e3   :  { %6089 = vrcp.f32 %v1951_v45  ;;  %v7204_v45 = vld [vmem:[%s7935_s5 + $0x10] ss:$8 sps:$4 sm:$0xff]  }
0x13ed   :  { %v6090_v46 = vpop.eup %6089 }
0x13ee   :  { %v1961_v47 = vrot.slane %v6090_v46, %v6832_v42  ;;  %v1957_v22 = vrot.slane %v6090_v46, %v6829_v40 }
0x13f0   :  { %v1966_v48 = vmul.f32 %v6086_v56, %v1961_v47  ;;  %v1967_v49 = vmul.f32 %v6088_v28, %v1961_v47  ;;  %v1964_v24 = vmul.f32 %v6082_v17, %v1957_v22  ;;  %v1965_v25 = vmul.f32 %v6084_v19, %v1957_v22 }
0x13f2   :  { %2060 = vperm.xlu0 %5968, %v1966_v48  }
0x13f6   :  { %2063 = vperm.xlu0 %5968, %v1967_v49  }
0x13fa   :  { %1971 = vperm.xlu0 %5968, %v1964_v24  }
0x13fe   :  { %1974 = vperm.xlu0 %5968, %v1965_v25  }
0x1471   :  { %v2061_v58 = vpop.permute.xlu0 %2060 }
0x1472   :  { %v2068_v62 = vrot.slane %v2061_v58, %v6889_v53 }
0x1475   :  { %v2064_v61 = vpop.permute.xlu0 %2063 }
0x1476   :  { %v2072_v0 = vrot.slane %v2064_v61, %v6886_v50 }
0x1478   :  { %v2073_v37 = vsel %vm681_vm2, %v2072_v0, %v2068_v62 }
0x1479   :  { %5713 = vmatmul.mubr.msk.f32.vlgmr.msra.gmra.mrb[24].mxu0 %vm794_vm6, %v2073_v37  ;;  %2319 = vst.msk [vmem:[#allocation4 + $0xa] sm:$0x1] %vm1143_vm7, %v2073_v37  ;;  %v1972_v2 = vpop.permute.xlu0 %1971 }
0x147a   :  { %5724 = vmatpush3.bf16.msra.mxu0 %v6928_v12  ;;  %5727 = vmatprep.mubr.msk.bf16.mxu0 %vm6534_vm5, %v6535_v57  ;;  %v1979_v8 = vrot.slane %v1972_v2, %v6889_v53  ;;  %v7181_v12 = vld [vmem:[%s7935_s5 + $0x4] ss:$8 sps:$4 sm:$0xff]  }
0x147b   :  { %5725 = vmatprep.subr.bf16.mxu0 %v6535_v57 }
0x147d   :  { %v1975_v4 = vpop.permute.xlu0 %1974 }
0x147e   :  { %5726 = vmatpush3.bf16.msra.mxu0 %v6934_v16  ;;  %v1983_v9 = vrot.slane %v1975_v4, %v6886_v50 }
0x147f   :  { %5915 = vmatprep.subr.bf16.mxu0 %v6532_v26 }
0x1480   :  { %v1984_v17 = vsel %vm681_vm2, %v1983_v9, %v1979_v8 }
0x1481   :  { %5728 = vmatmul.mubr.msk.bf16.vlgmr.msra.gmra.mrb[28].mxu0 %vm305_vm1, %v7100_v27  ;;  %5706 = vmatmul.mubr.msk.f32.vlgmr.msra.gmra.mrb[28].mxu1 %vm794_vm6, %v1984_v17  ;;  %2318 = vst.msk [vmem:[#allocation4 + $0x2] sm:$0x1] %vm1143_vm7, %v1984_v17  ;;  %v2255_v17 = vrot.slane %v7091_v6, 6 }
0x1482   :  { %5917 = vmatpush3.bf16.msra.mxu0 %v6800_v23  ;;  %5716 = vmatpush3.bf16.msra.mxu1 %v6957_v51 }
0x1483   :  { %5717 = vmatprep.subr.bf16.mxu1 %v6535_v57  ;;  %5719 = vmatprep.mubr.msk.bf16.mxu1 %vm6534_vm5, %v6535_v57 }
0x1484   :  { %5735 = vmatprep.mubr.msk.f32.mxu0 %vm6534_vm5, %v6535_v57  ;;  %5918 = vmatprep.subr.bf16.mxu0 %v6532_v26 }
0x1486   :  { %5718 = vmatpush3.bf16.msra.mxu1 %v6966_v52 }
0x1487   :  { %2328 = vmatprep.subr.bf16.mxu1 %v7181_v12 }
0x154c   :  { %v2142_v16 = vpop.f32.mrb[24].mxu0 }
0x154d   :  { %2315 = vst.msk [vmem:[#allocation3 + $0xa] sm:$0x1] %vm1136_vm8, %v2142_v16  ;;  %v5714_v27 = vpop.f32.mrb[25].mxu0  ;;  %v2147_v19 = vpack.c.bf16 %v2142_v16, %v2142_v16 }
0x154f   :  { %v2151_v56 = vunpack.c.l.b16 %v2147_v19 }
0x1551   :  { %v2152_v34 = vrot.slane %v2151_v56, 7 }
0x1554   :  { %v2236_v28 = vpop.f32.mrb[28].mxu0  ;;  %v2053_v10 = vpop.f32.mrb[28].mxu1 }
0x1555   :  { %v2146_v63 = vpack.c.bf16 %v2053_v10, %v2053_v10  ;;  %2314 = vst.msk [vmem:[#allocation3 + $0x2] sm:$0x1] %vm1136_vm8, %v2053_v10  ;;  %v5729_v29 = vpop.f32.mrb[29].mxu0  ;;  %v5707_v30 = vpop.f32.mrb[29].mxu1  ;;  %v2243_v22 = vrot.slane %v2236_v28, 4 }
0x1556   :  { %v2239_v33 = vpop.f32.mrb[30].mxu0 }
0x1557   :  { %v2150_v35 = vunpack.c.l.b16 %v2146_v63  ;;  %v5730_v36 = vpop.f32.mrb[31].mxu0 }
0x1559   :  { %v2153_v38 = vsel %vm692_vm3, %v2152_v34, %v2150_v35 }
0x155a   :  { %v2154_v39 = vpack.c.b16 %v2153_v38, %v2153_v38 }
0x155c   :  { %5720 = vmatmul.mubr.msk.bf16.vlgmr.msra.gmra.mrb[32].mxu1 %vm305_vm1, %v2154_v39 }
0x155d   :  { %2329 = vmatpush1.bf16.msra.mxu1 %v7191_v41  ;;  %2360 = vmatprep.mubr.bf16.mxu1 %v6531_v11 }
0x155e   :  { %2330 = vmatprep.subr.bf16.mxu1 %v7198_v43 }
0x1561   :  { %2331 = vmatpush1.bf16.msra.mxu1 %v7204_v45 }
0x1562   :  { %5745 = vmatprep.subr.bf16.mxu1 %v6535_v57 }
0x162f   :  { %v2192_v46 = vpop.f32.mrb[32].mxu1 }
0x1630   :  { %v2199_v47 = vrot.slane %v2192_v46, 4  ;;  %v5721_v48 = vpop.f32.mrb[33].mxu1 }
0x1631   :  { %v2195_v49 = vpop.f32.mrb[34].mxu1 }
0x1632   :  { %v2201_v24 = vadd.f32 %v2199_v47, %v6979_v18  ;;  %v5722_v25 = vpop.f32.mrb[35].mxu1 }
0x1634   :  { %v2245_v58 = vadd.f32 %v2243_v22, %v2201_v24 }
0x1636   :  { %v2246_v61 = vadd.f32 %v6984_v32, %v2245_v58 }
0x1638   :  { %6091 = vtanh.f32 %v2246_v61  ;;  %v5472_v0 = vmul.f32 -1.442695, %v2246_v61 }
0x163a   :  { %6093 = vpow2.f32 %v5472_v0 }
0x1642   :  { %v6092_v62 = vpop.eup %6091 }
0x1643   :  { %2259 = vrot.lane.b32.xlu0 %v6092_v62, %s6525_s21 }
0x1644   :  { %v6094_v37 = vpop.eup %6093 }
0x1645   :  { %v2250_v2 = vadd.f32 1.0, %v6094_v37 }
0x1647   :  { %6095 = vrcp.f32 %v2250_v2 }
0x1651   :  { %v6096_v4 = vpop.eup %6095 }
0x1652   :  { %v2257_v16 = vmul.f32 %v6096_v4, %v2255_v17 }
0x16b5   :  { %v2260_v8 = vpop.permute.xlu0 %2259 }
0x16b6   :  { %v2262_v9 = vmul.f32 %v6096_v4, %v2260_v8 }
0x16b8   :  { %2264 = vrot.lane.b32.xlu0 %v2262_v9, %s6536_s19 }
0x172a   :  { %v2265_v27 = vpop.permute.xlu0 %2264 }
0x172b   :  { %v7213_v19 = vadd.f32 %v2265_v27, %v2257_v16 }
0x172d   :  { %6097 = vtanh.f32 %v7213_v19 }
0x1737   :  { %v6098_v32 = vpop.eup %6097 }
0x1738   :  { %2270 = vrot.lane.b32.xlu0 %v6098_v32, %s6525_s21 }
0x17aa   :  { %v2271_v56 = vpop.permute.xlu0 %2270 }
0x17ab   :  { %v7217_v28 = vmul.f32 %v6096_v4, %v2271_v56 }
0x17ad   :  { %v2320_v10 = vpack.c.bf16 %v7217_v28, %v7217_v28 }
0x17af   :  { %v2322_v63 = vrot.slane %v2320_v10, 2 }
0x17b1   :  { %2323 = vrot.lane.b32.xlu1 %v2322_v63, %s6536_s19 }
0x1823   :  { %v7222_v29 = vpop.permute.xlu1 %2323 }
0x1824   :  { %5473 = vmatmul.mubr.msk.bf16.vlgmr.msra.gmra.mrb[36].mxu1 %vm305_vm1, %v7222_v29 }
0x1825   :  { %5746 = vmatpush3.bf16.msra.mxu1 %v6957_v51  ;;  %5749 = vmatprep.mubr.msk.bf16.mxu1 %vm6534_vm5, %v6535_v57 }
0x1826   :  { %5747 = vmatprep.subr.bf16.mxu1 %v6535_v57 }
0x1829   :  { %5748 = vmatpush3.bf16.msra.mxu1 %v6966_v52 }
0x182a   :  { %2917 = vmatprep.subr.bf16.mxu1 %v7181_v12 }
0x18f7   :  { %v2362_v6 = vpop.f32.mrb[36].mxu1 }
0x18f8   :  { %v2364_v30 = vpop.f32.mrb[37].mxu1 }
0x18f9   :  { %v2371_v33 = vcombine.low %v2362_v6, %v2364_v30  ;;  %v2366_v34 = vpop.f32.mrb[38].mxu1 }
0x18fa   :  { %v2367_v35 = vpop.f32.mrb[39].mxu1 }
0x18fb   :  { %v2378_v36 = vrot.slane %v2371_v33, %v6835_v44 }
0x18fd   :  { %v2379_v38 = vcombine.high %v2378_v36, %v2378_v36  ;;  %v2386_v39 = vrot.slane %v2378_v36, %v6835_v44 }
0x18ff   :  { %v2393_v51 = vrot.slane %v2379_v38, %v6835_v44  ;;  %v2397_v46 = vrot.slane %v2386_v39, %v6829_v40  ;;  %v2401_v47 = vrot.slane %v2386_v39, %v6832_v42 }
0x1901   :  { %v2405_v52 = vrot.slane %v2393_v51, %v6829_v40  ;;  %v2409_v48 = vrot.slane %v2393_v51, %v6832_v42  ;;  %v2414_v49 = vadd.f32 %v2397_v46, %v6841_v54  ;;  %v2415_v22 = vadd.f32 %v2401_v47, %v6843_v55 }
0x1902   :  { %v2416_v24 = vadd.f32 %v2397_v46, %v6848_v59  ;;  %v2417_v25 = vadd.f32 %v2401_v47, %v6850_v60 }
0x1903   :  { %v2418_v58 = vadd.f32 %v2405_v52, %v6856_v1  ;;  %6099 = vtanh.f32 %v2414_v49  ;;  %v2419_v61 = vadd.f32 %v2409_v48, %v6859_v3  ;;  %v2420_v62 = vadd.f32 %v2405_v52, %v6862_v5 }
0x1904   :  { %6101 = vtanh.f32 %v2415_v22  ;;  %v2421_v0 = vadd.f32 %v2409_v48, %v6865_v7 }
0x1905   :  { %6103 = vtanh.f32 %v2416_v24 }
0x1906   :  { %6105 = vtanh.f32 %v2417_v25 }
0x1907   :  { %6107 = vtanh.f32 %v2418_v58 }
0x1908   :  { %6109 = vtanh.f32 %v2419_v61 }
0x1909   :  { %6111 = vtanh.f32 %v2420_v62 }
0x190a   :  { %6113 = vtanh.f32 %v2421_v0 }
0x190d   :  { %v6100_v37 = vpop.eup %6099 }
0x190e   :  { %v6102_v2 = vpop.eup %6101  ;;  %v2430_v4 = vmul.f32 %v6100_v37, %v6871_v14 }
0x190f   :  { %v6104_v8 = vpop.eup %6103  ;;  %v2431_v9 = vmul.f32 %v6102_v2, %v6874_v15 }
0x1910   :  { %v6106_v17 = vpop.eup %6105  ;;  %v2432_v16 = vmul.f32 %v6104_v8, %v6871_v14 }
0x1911   :  { %v6108_v27 = vpop.eup %6107  ;;  %v2433_v32 = vmul.f32 %v6106_v17, %v6874_v15  ;;  %v2438_v56 = vadd.f32 %v2431_v9, %v2430_v4 }
0x1912   :  { %v6110_v10 = vpop.eup %6109  ;;  %v2434_v63 = vmul.f32 %v6108_v27, %v6871_v14 }
0x1913   :  { %v6112_v6 = vpop.eup %6111  ;;  %v2441_v30 = vadd.f32 %v2433_v32, %v2432_v16  ;;  %2439 = vadd.xlane.f32.xlu0 %v2438_v56  ;;  %v2435_v33 = vmul.f32 %v6110_v10, %v6874_v15 }
0x1914   :  { %v6114_v34 = vpop.eup %6113  ;;  %v2436_v36 = vmul.f32 %v6112_v6, %v6871_v14 }
0x1915   :  { %2442 = vadd.xlane.f32.xlu1 %v2441_v30  ;;  %v2444_v35 = vadd.f32 %v2435_v33, %v2434_v63  ;;  %v2437_v38 = vmul.f32 %v6114_v34, %v6874_v15 }
0x1917   :  { %2445 = vadd.xlane.f32.xlu0 %v2444_v35  ;;  %v2447_v39 = vadd.f32 %v2437_v38, %v2436_v36 }
0x191b   :  { %2448 = vadd.xlane.f32.xlu0 %v2447_v39 }
0x19a0   :  { %v2440_v51 = vpop.xlane.xlu0 %2439 }
0x19a1   :  { %v2457_v48 = vrot.slane %v2440_v51, %v6889_v53 }
0x19a2   :  { %v2443_v46 = vpop.xlane.xlu1 %2442 }
0x19a3   :  { %v2461_v52 = vrot.slane %v2443_v46, %v6886_v50 }
0x19a4   :  { %v2446_v47 = vpop.xlane.xlu0 %2445 }
0x19a5   :  { %v2466_v22 = vrot.slane %v2446_v47, %v6889_v53  ;;  %v2462_v25 = vsel %vm681_vm2, %v2461_v52, %v2457_v48 }
0x19a8   :  { %v2449_v49 = vpop.xlane.xlu0 %2448 }
0x19a9   :  { %v2470_v24 = vrot.slane %v2449_v49, %v6886_v50 }
0x19ab   :  { %v2471_v58 = vsel %vm681_vm2, %v2470_v24, %v2466_v22 }
0x19ac   :  { %v2472_v61 = vsel %vm692_vm3, %v2471_v58, %v2462_v25 }
0x19ad   :  { %v2474_v62 = vsel %vm695_vm4, %v2472_v61, -inf }
0x19ae   :  { %2475 = vmax.xlane.f32.xlu0 %v2474_v62 }
0x1a3b   :  { %v2476_v0 = vpop.xlane.xlu0 %2475 }
0x1a3c   :  { %v2481_v37 = vrot.slane %v2476_v0, %v6829_v40  ;;  %v2485_v2 = vrot.slane %v2476_v0, %v6832_v42 }
0x1a3e   :  { %v2488_v4 = vsub.f32 %v2440_v51, %v2481_v37  ;;  %v2489_v8 = vsub.f32 %v2443_v46, %v2481_v37  ;;  %v2490_v9 = vsub.f32 %v2446_v47, %v2485_v2  ;;  %v2491_v17 = vsub.f32 %v2449_v49, %v2485_v2 }
0x1a40   :  { %v2492_v16 = vmul.f32 1.442695, %v2488_v4  ;;  %v2494_v27 = vmul.f32 1.442695, %v2489_v8  ;;  %v2496_v32 = vmul.f32 1.442695, %v2490_v9 }
0x1a41   :  { %v2498_v56 = vmul.f32 1.442695, %v2491_v17 }
0x1a42   :  { %6115 = vpow2.f32 %v2492_v16 }
0x1a43   :  { %6117 = vpow2.f32 %v2494_v27 }
0x1a44   :  { %6119 = vpow2.f32 %v2496_v32 }
0x1a45   :  { %6121 = vpow2.f32 %v2498_v56 }
0x1a4c   :  { %v6116_v10 = vpop.eup %6115 }
0x1a4d   :  { %v6118_v63 = vpop.eup %6117  ;;  %2505 = vperm.xlu0 %5968, %v6116_v10  }
0x1a4e   :  { %2508 = vperm.xlu1 %5967, %v6118_v63   ;;  %v6120_v6 = vpop.eup %6119 }
0x1a4f   :  { %v6122_v30 = vpop.eup %6121 }
0x1a51   :  { %2511 = vperm.xlu0 %5968, %v6120_v6  }
0x1a52   :  { %2514 = vperm.xlu1 %5967, %v6122_v30  }
0x1acc   :  { %v2506_v33 = vpop.permute.xlu0 %2505 }
0x1acd   :  { %v2509_v34 = vpop.permute.xlu1 %2508  ;;  %v2519_v36 = vrot.slane %v2506_v33, %v6889_v53 }
0x1ace   :  { %v2523_v35 = vrot.slane %v2509_v34, %v6886_v50 }
0x1ad0   :  { %v2512_v38 = vpop.permute.xlu0 %2511  ;;  %v2524_v47 = vsel %vm681_vm2, %v2523_v35, %v2519_v36 }
0x1ad1   :  { %v2515_v39 = vpop.permute.xlu1 %2514  ;;  %v2528_v51 = vrot.slane %v2512_v38, %v6889_v53 }
0x1ad2   :  { %v2532_v46 = vrot.slane %v2515_v39, %v6886_v50 }
0x1ad4   :  { %v2533_v52 = vsel %vm681_vm2, %v2532_v46, %v2528_v51 }
0x1ad5   :  { %v2534_v48 = vsel %vm692_vm3, %v2533_v52, %v2524_v47 }
0x1ad6   :  { %v2536_v49 = vsel %vm695_vm4, %v2534_v48, 0.0 }
0x1ad7   :  { %2537 = vadd.xlane.f32.xlu0 %v2536_v49 }
0x1b64   :  { %v2538_v22 = vpop.xlane.xlu0 %2537 }
0x1b65   :  { %6123 = vrcp.f32 %v2538_v22 }
0x1b6f   :  { %v6124_v24 = vpop.eup %6123 }
0x1b70   :  { %v2544_v25 = vrot.slane %v6124_v24, %v6829_v40  ;;  %v2548_v62 = vrot.slane %v6124_v24, %v6832_v42 }
0x1b72   :  { %v2551_v58 = vmul.f32 %v6116_v10, %v2544_v25  ;;  %v2552_v61 = vmul.f32 %v6118_v63, %v2544_v25  ;;  %v2553_v0 = vmul.f32 %v6120_v6, %v2548_v62  ;;  %v2554_v37 = vmul.f32 %v6122_v30, %v2548_v62  ;;  %v7289_v63 = vld [vmem:[#allocation14] sm:$0xff]   ;;  %v7295_v6 = vld [vmem:[#allocation14 + $0x8] sm:$0xff]  }
0x1b74   :  { %2558 = vperm.xlu1 %5967, %v2551_v58  }
0x1b78   :  { %2561 = vperm.xlu1 %5967, %v2552_v61  }
0x1b7c   :  { %2647 = vperm.xlu1 %5967, %v2553_v0  }
0x1b80   :  { %2650 = vperm.xlu1 %5967, %v2554_v37  }
0x1bf3   :  { %v2559_v2 = vpop.permute.xlu1 %2558 }
0x1bf4   :  { %v2566_v8 = vrot.slane %v2559_v2, %v6889_v53 }
0x1bf7   :  { %v2562_v4 = vpop.permute.xlu1 %2561 }
0x1bf8   :  { %v2570_v9 = vrot.slane %v2562_v4, %v6886_v50  ;;  %v7315_v4 = vld [vmem:[#allocation16] ss:$0 sm:$0xff] }
0x1bfa   :  { %v2571_v17 = vsel %vm681_vm2, %v2570_v9, %v2566_v8 }
0x1bfb   :  { %2907 = vst.msk [vmem:[#allocation4 + $0x3] sm:$0x1] %vm1143_vm7, %v2571_v17  ;;  %5736 = vmatmul.mubr.msk.f32.vlgmr.msra.gmra.mrb[26].mxu0 %vm794_vm6, %v2571_v17  ;;  %v2648_v16 = vpop.permute.xlu1 %2647 }
0x1bfc   :  { %5920 = vmatpush3.bf16.msra.mxu0 %v6793_v21  ;;  %5742 = vmatprep.mubr.msk.f32.mxu0 %vm6534_vm5, %v6535_v57  ;;  %v2655_v32 = vrot.slane %v2648_v16, %v6889_v53 }
0x1bfd   :  { %5753 = vmatprep.subr.bf16.mxu0 %v6535_v57 }
0x1bff   :  { %v2651_v27 = vpop.permute.xlu1 %2650 }
0x1c00   :  { %v2659_v56 = vrot.slane %v2651_v27, %v6886_v50 }
0x1c02   :  { %v2660_v10 = vsel %vm681_vm2, %v2659_v56, %v2655_v32 }
0x1c03   :  { %2908 = vst.msk [vmem:[#allocation4 + $0xb] sm:$0x1] %vm1143_vm7, %v2660_v10  ;;  %5743 = vmatmul.mubr.msk.f32.vlgmr.msra.gmra.mrb[32].mxu0 %vm794_vm6, %v2660_v10 }
0x1c04   :  { %5754 = vmatpush3.bf16.msra.mxu0 %v7289_v63  ;;  %5757 = vmatprep.mubr.msk.bf16.mxu0 %vm6534_vm5, %v6535_v57 }
0x1c05   :  { %5755 = vmatprep.subr.bf16.mxu0 %v6535_v57 }
0x1c08   :  { %5756 = vmatpush3.bf16.msra.mxu0 %v7295_v6 }
0x1c09   :  { %5921 = vmatprep.subr.bf16.mxu0 %v6532_v26 }
0x1c0b   :  { %5758 = vmatmul.mubr.msk.bf16.vlgmr.msra.gmra.mrb[36].mxu0 %vm305_vm1, %v7222_v29 }
0x1c0c   :  { %5923 = vmatpush3.bf16.msra.mxu0 %v6800_v23  ;;  %5765 = vmatprep.mubr.msk.f32.mxu0 %vm6534_vm5, %v6535_v57 }
0x1c0d   :  { %5775 = vmatprep.subr.bf16.mxu0 %v6535_v57 }
0x1cce   :  { %v2640_v30 = vpop.f32.mrb[26].mxu0 }
0x1ccf   :  { %2903 = vst.msk [vmem:[#allocation3 + $0x3] sm:$0x1] %vm1136_vm8, %v2640_v30  ;;  %v5737_v33 = vpop.f32.mrb[27].mxu0  ;;  %v2733_v35 = vpack.c.bf16 %v2640_v30, %v2640_v30 }
0x1cd1   :  { %v2737_v51 = vunpack.c.l.b16 %v2733_v35 }
0x1cd6   :  { %v2729_v34 = vpop.f32.mrb[32].mxu0 }
0x1cd7   :  { %v2734_v36 = vpack.c.bf16 %v2729_v34, %v2729_v34  ;;  %2904 = vst.msk [vmem:[#allocation3 + $0xb] sm:$0x1] %vm1136_vm8, %v2729_v34  ;;  %v5744_v38 = vpop.f32.mrb[33].mxu0 }
0x1cd9   :  { %v2738_v39 = vunpack.c.l.b16 %v2734_v36 }
0x1cdb   :  { %v2739_v29 = vrot.slane %v2738_v39, 7 }
0x1cdd   :  { %v2740_v46 = vsel %vm692_vm3, %v2739_v29, %v2737_v51 }
0x1cde   :  { %v2741_v47 = vpack.c.b16 %v2740_v46, %v2740_v46  ;;  %v2823_v52 = vpop.f32.mrb[36].mxu0 }
0x1cdf   :  { %v5759_v48 = vpop.f32.mrb[37].mxu0  ;;  %v2830_v62 = vrot.slane %v2823_v52, 2 }
0x1ce0   :  { %v2826_v49 = vpop.f32.mrb[38].mxu0  ;;  %5750 = vmatmul.mubr.msk.bf16.vlgmr.msra.gmra.mrb[40].mxu1 %vm305_vm1, %v2741_v47 }
0x1ce1   :  { %v5760_v22 = vpop.f32.mrb[39].mxu0  ;;  %2918 = vmatpush1.bf16.msra.mxu1 %v7191_v41  ;;  %2949 = vmatprep.mubr.bf16.mxu1 %v6531_v11 }
0x1ce2   :  { %2919 = vmatprep.subr.bf16.mxu1 %v7198_v43 }
0x1ce5   :  { %2920 = vmatpush1.bf16.msra.mxu1 %v7204_v45 }
0x1ce6   :  { %5924 = vmatprep.subr.bf16.mxu1 %v6532_v26 }
0x1db3   :  { %v2779_v24 = vpop.f32.mrb[40].mxu1 }
0x1db4   :  { %v2786_v25 = vrot.slane %v2779_v24, 2  ;;  %v5751_v58 = vpop.f32.mrb[41].mxu1 }
0x1db5   :  { %v2782_v61 = vpop.f32.mrb[42].mxu1 }
0x1db6   :  { %v2788_v0 = vadd.f32 %v2786_v25, %v6979_v18  ;;  %v5752_v37 = vpop.f32.mrb[43].mxu1  ;;  %v2842_v18 = vrot.slane %v7213_v19, 6 }
0x1db8   :  { %v2832_v2 = vadd.f32 %v2830_v62, %v2788_v0 }
0x1dba   :  { %v2833_v8 = vadd.f32 %v7315_v4, %v2832_v2 }
0x1dbc   :  { %6125 = vtanh.f32 %v2833_v8  ;;  %v5478_v17 = vmul.f32 -1.442695, %v2833_v8 }
0x1dbe   :  { %6127 = vpow2.f32 %v5478_v17 }
0x1dc6   :  { %v6126_v9 = vpop.eup %6125 }
0x1dc7   :  { %2846 = vrot.lane.b32.xlu1 %v6126_v9, %s6525_s21 }
0x1dc8   :  { %v6128_v16 = vpop.eup %6127 }
0x1dc9   :  { %v2837_v27 = vadd.f32 1.0, %v6128_v16 }
0x1dcb   :  { %6129 = vrcp.f32 %v2837_v27 }
0x1dd5   :  { %v6130_v32 = vpop.eup %6129 }
0x1dd6   :  { %v2844_v30 = vmul.f32 %v6130_v32, %v2842_v18 }
0x1e39   :  { %v2847_v56 = vpop.permute.xlu1 %2846 }
0x1e3a   :  { %v2849_v10 = vmul.f32 %v6130_v32, %v2847_v56 }
0x1e3c   :  { %2851 = vrot.lane.b32.xlu1 %v2849_v10, %s6536_s19 }
0x1eae   :  { %v2852_v33 = vpop.permute.xlu1 %2851 }
0x1eaf   :  { %v7321_v34 = vadd.f32 %v2852_v33, %v2844_v30 }
0x1eb1   :  { %6131 = vtanh.f32 %v7321_v34 }
0x1ebb   :  { %v6132_v35 = vpop.eup %6131 }
0x1ebc   :  { %2857 = vrot.lane.b32.xlu1 %v6132_v35, %s6525_s21 }
0x1f2e   :  { %v2858_v36 = vpop.permute.xlu1 %2857 }
0x1f2f   :  { %v7325_v38 = vmul.f32 %v6130_v32, %v2858_v36 }
0x1f31   :  { %v2909_v39 = vpack.c.bf16 %v7325_v38, %v7325_v38 }
0x1f33   :  { %v2911_v51 = vrot.slane %v2909_v39, 3 }
0x1f35   :  { %2912 = vrot.lane.b32.xlu0 %v2911_v51, %s6536_s19 }
0x1fa7   :  { %v7330_v29 = vpop.permute.xlu0 %2912 }
0x1fa8   :  { %5479 = vmatmul.mubr.msk.bf16.vlgmr.msra.gmra.mrb[44].mxu1 %vm305_vm1, %v7330_v29 }
0x1fa9   :  { %5926 = vmatpush3.bf16.msra.mxu1 %v6793_v21  ;;  %5772 = vmatprep.mubr.msk.f32.mxu1 %vm6534_vm5, %v6535_v57 }
0x1faa   :  { %5783 = vmatprep.subr.bf16.mxu1 %v6535_v57 }
0x207b   :  { %v2951_v19 = vpop.f32.mrb[44].mxu1 }
0x207c   :  { %v2953_v46 = vpop.f32.mrb[45].mxu1 }
0x207d   :  { %v2960_v47 = vcombine.low %v2951_v19, %v2953_v46  ;;  %v2955_v52 = vpop.f32.mrb[46].mxu1 }
0x207e   :  { %v2956_v48 = vpop.f32.mrb[47].mxu1 }
0x207f   :  { %v2967_v49 = vrot.slane %v2960_v47, %v6835_v44 }
0x2081   :  { %v2968_v22 = vcombine.high %v2967_v49, %v2967_v49  ;;  %v2975_v24 = vrot.slane %v2967_v49, %v6835_v44 }
0x2083   :  { %v2982_v25 = vrot.slane %v2968_v22, %v6835_v44  ;;  %v2986_v58 = vrot.slane %v2975_v24, %v6829_v40  ;;  %v2990_v61 = vrot.slane %v2975_v24, %v6832_v42 }
0x2085   :  { %v2994_v62 = vrot.slane %v2982_v25, %v6829_v40  ;;  %v2998_v0 = vrot.slane %v2982_v25, %v6832_v42  ;;  %v3003_v37 = vadd.f32 %v2986_v58, %v6841_v54  ;;  %v3004_v2 = vadd.f32 %v2990_v61, %v6843_v55 }
0x2086   :  { %v3005_v8 = vadd.f32 %v2986_v58, %v6848_v59  ;;  %v3006_v9 = vadd.f32 %v2990_v61, %v6850_v60 }
0x2087   :  { %v3007_v17 = vadd.f32 %v2994_v62, %v6856_v1  ;;  %6133 = vtanh.f32 %v3003_v37  ;;  %v3008_v16 = vadd.f32 %v2998_v0, %v6859_v3  ;;  %v3009_v27 = vadd.f32 %v2994_v62, %v6862_v5 }
0x2088   :  { %6135 = vtanh.f32 %v3004_v2  ;;  %v3010_v32 = vadd.f32 %v2998_v0, %v6865_v7 }
0x2089   :  { %6137 = vtanh.f32 %v3005_v8 }
0x208a   :  { %6139 = vtanh.f32 %v3006_v9 }
0x208b   :  { %6141 = vtanh.f32 %v3007_v17 }
0x208c   :  { %6143 = vtanh.f32 %v3008_v16 }
0x208d   :  { %6145 = vtanh.f32 %v3009_v27 }
0x208e   :  { %6147 = vtanh.f32 %v3010_v32 }
0x2091   :  { %v6134_v56 = vpop.eup %6133 }
0x2092   :  { %v6136_v10 = vpop.eup %6135  ;;  %v3019_v18 = vmul.f32 %v6134_v56, %v6871_v14 }
0x2093   :  { %v6138_v30 = vpop.eup %6137  ;;  %v3020_v33 = vmul.f32 %v6136_v10, %v6874_v15 }
0x2094   :  { %v6140_v35 = vpop.eup %6139  ;;  %v3021_v36 = vmul.f32 %v6138_v30, %v6871_v14 }
0x2095   :  { %v6142_v39 = vpop.eup %6141  ;;  %v3022_v51 = vmul.f32 %v6140_v35, %v6874_v15  ;;  %v3027_v19 = vadd.f32 %v3020_v33, %v3019_v18 }
0x2096   :  { %v6144_v46 = vpop.eup %6143  ;;  %v3023_v47 = vmul.f32 %v6142_v39, %v6871_v14 }
0x2097   :  { %v6146_v52 = vpop.eup %6145  ;;  %v3030_v48 = vadd.f32 %v3022_v51, %v3021_v36  ;;  %3028 = vadd.xlane.f32.xlu1 %v3027_v19  ;;  %v3024_v49 = vmul.f32 %v6144_v46, %v6874_v15 }
0x2098   :  { %v6148_v22 = vpop.eup %6147  ;;  %v3025_v25 = vmul.f32 %v6146_v52, %v6871_v14 }
0x2099   :  { %3031 = vadd.xlane.f32.xlu0 %v3030_v48  ;;  %v3033_v24 = vadd.f32 %v3024_v49, %v3023_v47  ;;  %v3026_v58 = vmul.f32 %v6148_v22, %v6874_v15 }
0x209b   :  { %3034 = vadd.xlane.f32.xlu1 %v3033_v24  ;;  %v3036_v61 = vadd.f32 %v3026_v58, %v3025_v25 }
0x209f   :  { %3037 = vadd.xlane.f32.xlu1 %v3036_v61 }
0x2124   :  { %v3029_v62 = vpop.xlane.xlu1 %3028 }
0x2125   :  { %v3046_v8 = vrot.slane %v3029_v62, %v6889_v53 }
0x2126   :  { %v3032_v0 = vpop.xlane.xlu0 %3031 }
0x2127   :  { %v3050_v2 = vrot.slane %v3032_v0, %v6886_v50 }
0x2128   :  { %v3035_v37 = vpop.xlane.xlu1 %3034 }
0x2129   :  { %v3055_v17 = vrot.slane %v3035_v37, %v6889_v53  ;;  %v3051_v27 = vsel %vm681_vm2, %v3050_v2, %v3046_v8 }
0x212c   :  { %v3038_v9 = vpop.xlane.xlu1 %3037 }
0x212d   :  { %v3059_v16 = vrot.slane %v3038_v9, %v6886_v50 }
0x212f   :  { %v3060_v32 = vsel %vm681_vm2, %v3059_v16, %v3055_v17 }
0x2130   :  { %v3061_v56 = vsel %vm692_vm3, %v3060_v32, %v3051_v27 }
0x2131   :  { %v3063_v10 = vsel %vm695_vm4, %v3061_v56, -inf }
0x2132   :  { %3064 = vmax.xlane.f32.xlu1 %v3063_v10 }
0x21bf   :  { %v3065_v18 = vpop.xlane.xlu1 %3064 }
0x21c0   :  { %v3070_v30 = vrot.slane %v3065_v18, %v6829_v40  ;;  %v3074_v33 = vrot.slane %v3065_v18, %v6832_v42 }
0x21c2   :  { %v3077_v35 = vsub.f32 %v3029_v62, %v3070_v30  ;;  %v3078_v36 = vsub.f32 %v3032_v0, %v3070_v30  ;;  %v3079_v39 = vsub.f32 %v3035_v37, %v3074_v33  ;;  %v3080_v46 = vsub.f32 %v3038_v9, %v3074_v33 }
0x21c4   :  { %v3081_v51 = vmul.f32 1.442695, %v3077_v35  ;;  %v3083_v19 = vmul.f32 1.442695, %v3078_v36  ;;  %v3085_v47 = vmul.f32 1.442695, %v3079_v39 }
0x21c5   :  { %v3087_v52 = vmul.f32 1.442695, %v3080_v46 }
0x21c6   :  { %6149 = vpow2.f32 %v3081_v51 }
0x21c7   :  { %6151 = vpow2.f32 %v3083_v19 }
0x21c8   :  { %6153 = vpow2.f32 %v3085_v47 }
0x21c9   :  { %6155 = vpow2.f32 %v3087_v52 }
0x21d0   :  { %v6150_v48 = vpop.eup %6149 }
0x21d1   :  { %v6152_v49 = vpop.eup %6151  ;;  %3094 = vperm.xlu1 %5967, %v6150_v48  }
0x21d2   :  { %3097 = vperm.xlu0 %5968, %v6152_v49   ;;  %v6154_v22 = vpop.eup %6153 }
0x21d3   :  { %v6156_v24 = vpop.eup %6155 }
0x21d5   :  { %3100 = vperm.xlu1 %5967, %v6154_v22  }
0x21d9   :  { %3103 = vperm.xlu1 %5967, %v6156_v24  }
0x2250   :  { %v3095_v25 = vpop.permute.xlu1 %3094 }
0x2251   :  { %v3098_v58 = vpop.permute.xlu0 %3097  ;;  %v3108_v0 = vrot.slane %v3095_v25, %v6889_v53  ;;  %v7403_v25 = vld [vmem:[%s7939_s9] sm:$0xff]  }
0x2252   :  { %v3112_v62 = vrot.slane %v3098_v58, %v6886_v50 }
0x2254   :  { %v3101_v61 = vpop.permute.xlu1 %3100  ;;  %v3113_v9 = vsel %vm681_vm2, %v3112_v62, %v3108_v0 }
0x2255   :  { %v3117_v2 = vrot.slane %v3101_v61, %v6889_v53 }
0x2258   :  { %v3104_v37 = vpop.permute.xlu1 %3103 }
0x2259   :  { %v3121_v8 = vrot.slane %v3104_v37, %v6886_v50 }
0x225b   :  { %v3122_v17 = vsel %vm681_vm2, %v3121_v8, %v3117_v2 }
0x225c   :  { %v3123_v16 = vsel %vm692_vm3, %v3122_v17, %v3113_v9 }
0x225d   :  { %v3125_v27 = vsel %vm695_vm4, %v3123_v16, 0.0 }
0x225e   :  { %3126 = vadd.xlane.f32.xlu1 %v3125_v27 }
0x22eb   :  { %v3127_v32 = vpop.xlane.xlu1 %3126 }
0x22ec   :  { %6157 = vrcp.f32 %v3127_v32 }
0x22f6   :  { %v6158_v56 = vpop.eup %6157 }
0x22f7   :  { %v3137_v10 = vrot.slane %v6158_v56, %v6832_v42  ;;  %v3133_v33 = vrot.slane %v6158_v56, %v6829_v40 }
0x22f9   :  { %v3142_v18 = vmul.f32 %v6154_v22, %v3137_v10  ;;  %v3143_v30 = vmul.f32 %v6156_v24, %v3137_v10  ;;  %v3140_v35 = vmul.f32 %v6150_v48, %v3133_v33  ;;  %v3141_v36 = vmul.f32 %v6152_v49, %v3133_v33 }
0x22fb   :  { %3236 = vperm.xlu0 %5968, %v3142_v18  }
0x22ff   :  { %3239 = vperm.xlu0 %5968, %v3143_v30  }
0x2303   :  { %3147 = vperm.xlu0 %5968, %v3140_v35  }
0x2307   :  { %3150 = vperm.xlu0 %5968, %v3141_v36  }
0x237a   :  { %v3237_v39 = vpop.permute.xlu0 %3236 }
0x237b   :  { %v3244_v19 = vrot.slane %v3237_v39, %v6889_v53 }
0x237e   :  { %v3240_v51 = vpop.permute.xlu0 %3239 }
0x237f   :  { %v3248_v46 = vrot.slane %v3240_v51, %v6886_v50 }
0x2381   :  { %v3249_v47 = vsel %vm681_vm2, %v3248_v46, %v3244_v19 }
0x2382   :  { %3488 = vst.msk [vmem:[#allocation4 + $0xc] sm:$0x1] %vm1143_vm7, %v3249_v47  ;;  %5773 = vmatmul.mubr.msk.f32.vlgmr.msra.gmra.mrb[30].mxu1 %vm794_vm6, %v3249_v47  ;;  %v3148_v52 = vpop.permute.xlu0 %3147 }
0x2383   :  { %5784 = vmatpush3.bf16.msra.mxu1 %v7289_v63  ;;  %5787 = vmatprep.mubr.msk.bf16.mxu1 %vm6534_vm5, %v6535_v57  ;;  %v3155_v49 = vrot.slane %v3148_v52, %v6889_v53 }
0x2384   :  { %5785 = vmatprep.subr.bf16.mxu1 %v6535_v57 }
0x2386   :  { %v3151_v48 = vpop.permute.xlu0 %3150 }
0x2387   :  { %5786 = vmatpush3.bf16.msra.mxu1 %v7295_v6  ;;  %v3159_v22 = vrot.slane %v3151_v48, %v6886_v50 }
0x2388   :  { %5927 = vmatprep.subr.bf16.mxu1 %v6532_v26 }
0x2389   :  { %v3160_v24 = vsel %vm681_vm2, %v3159_v22, %v3155_v49  ;;  %v3425_v49 = vrot.slane %v7321_v34, 6 }
0x238a   :  { %3487 = vst.msk [vmem:[#allocation4 + $0x4] sm:$0x1] %vm1143_vm7, %v3160_v24  ;;  %5788 = vmatmul.mubr.msk.bf16.vlgmr.msra.gmra.mrb[48].mxu1 %vm305_vm1, %v7330_v29  ;;  %5766 = vmatmul.mubr.msk.f32.vlgmr.msra.gmra.mrb[34].mxu0 %vm794_vm6, %v3160_v24  ;;  %v7415_v29 = vld [vmem:[%s7939_s9 + $0x8] sm:$0xff]  }
0x238b   :  { %5929 = vmatpush3.bf16.msra.mxu1 %v6800_v23  ;;  %5776 = vmatpush3.bf16.msra.mxu0 %v7403_v25 }
0x238c   :  { %5777 = vmatprep.subr.bf16.mxu0 %v6535_v57  ;;  %5779 = vmatprep.mubr.msk.bf16.mxu0 %vm6534_vm5, %v6535_v57 }
0x238d   :  { %5795 = vmatprep.mubr.msk.f32.mxu1 %vm6534_vm5, %v6535_v57  ;;  %5930 = vmatprep.subr.bf16.mxu1 %v6532_v26 }
0x238f   :  { %5778 = vmatpush3.bf16.msra.mxu0 %v7415_v29 }
0x2390   :  { %3496 = vmatprep.subr.bf16.mxu0 %v7181_v12 }
0x2455   :  { %v3318_v58 = vpop.f32.mrb[30].mxu1 }
0x2456   :  { %3484 = vst.msk [vmem:[#allocation3 + $0xc] sm:$0x1] %vm1136_vm8, %v3318_v58  ;;  %v5774_v61 = vpop.f32.mrb[31].mxu1  ;;  %v3323_v62 = vpack.c.bf16 %v3318_v58, %v3318_v58 }
0x2458   :  { %v3327_v0 = vunpack.c.l.b16 %v3323_v62 }
0x245a   :  { %v3328_v27 = vrot.slane %v3327_v0, 7 }
0x245d   :  { %v3409_v37 = vpop.f32.mrb[48].mxu1  ;;  %v3229_v2 = vpop.f32.mrb[34].mxu0 }
0x245e   :  { %v3322_v8 = vpack.c.bf16 %v3229_v2, %v3229_v2  ;;  %3483 = vst.msk [vmem:[#allocation3 + $0x4] sm:$0x1] %vm1136_vm8, %v3229_v2  ;;  %v5789_v9 = vpop.f32.mrb[49].mxu1  ;;  %v5767_v17 = vpop.f32.mrb[35].mxu0 }
0x245f   :  { %v3412_v16 = vpop.f32.mrb[50].mxu1 }
0x2460   :  { %v3326_v32 = vunpack.c.l.b16 %v3322_v8  ;;  %v5790_v56 = vpop.f32.mrb[51].mxu1 }
0x2462   :  { %v3329_v10 = vsel %vm692_vm3, %v3328_v27, %v3326_v32 }
0x2463   :  { %v3330_v18 = vpack.c.b16 %v3329_v10, %v3329_v10 }
0x2465   :  { %5780 = vmatmul.mubr.msk.bf16.vlgmr.msra.gmra.mrb[40].mxu0 %vm305_vm1, %v3330_v18 }
0x2466   :  { %3497 = vmatpush1.bf16.msra.mxu0 %v7191_v41  ;;  %3528 = vmatprep.mubr.bf16.mxu0 %v6531_v11 }
0x2467   :  { %3498 = vmatprep.subr.bf16.mxu0 %v7198_v43 }
0x246a   :  { %3499 = vmatpush1.bf16.msra.mxu0 %v7204_v45 }
0x246b   :  { %5805 = vmatprep.subr.bf16.mxu0 %v6535_v57 }
0x2538   :  { %v3368_v30 = vpop.f32.mrb[40].mxu0 }
0x2539   :  { %v3374_v33 = vadd.f32 %v3368_v30, %v6981_v20  ;;  %v5781_v35 = vpop.f32.mrb[41].mxu0 }
0x253a   :  { %v3371_v36 = vpop.f32.mrb[42].mxu0 }
0x253b   :  { %v3415_v39 = vadd.f32 %v3409_v37, %v3374_v33  ;;  %v5782_v51 = vpop.f32.mrb[43].mxu0 }
0x253d   :  { %v3416_v19 = vadd.f32 %v7315_v4, %v3415_v39 }
0x253f   :  { %6159 = vtanh.f32 %v3416_v19  ;;  %v5484_v41 = vmul.f32 -1.442695, %v3416_v19 }
0x2541   :  { %6161 = vpow2.f32 %v5484_v41 }
0x2549   :  { %v6160_v46 = vpop.eup %6159 }
0x254a   :  { %3429 = vrot.lane.b32.xlu0 %v6160_v46, %s6525_s21 }
0x254b   :  { %v6162_v43 = vpop.eup %6161 }
0x254c   :  { %v3420_v47 = vadd.f32 1.0, %v6162_v43 }
0x254e   :  { %6163 = vrcp.f32 %v3420_v47 }
0x2558   :  { %v6164_v45 = vpop.eup %6163 }
0x2559   :  { %v3427_v22 = vmul.f32 %v6164_v45, %v3425_v49 }
0x25bc   :  { %v3430_v52 = vpop.permute.xlu0 %3429 }
0x25bd   :  { %v3432_v48 = vmul.f32 %v6164_v45, %v3430_v52 }
0x25bf   :  { %3434 = vrot.lane.b32.xlu0 %v3432_v48, %s6536_s19 }
0x2631   :  { %v3435_v24 = vpop.permute.xlu0 %3434 }
0x2632   :  { %v7433_v58 = vadd.f32 %v3435_v24, %v3427_v22 }
0x2634   :  { %6165 = vtanh.f32 %v7433_v58 }
0x263e   :  { %v6166_v61 = vpop.eup %6165 }
0x263f   :  { %3440 = vrot.lane.b32.xlu0 %v6166_v61, %s6525_s21 }
0x26b1   :  { %v3441_v62 = vpop.permute.xlu0 %3440 }
0x26b2   :  { %v7437_v0 = vmul.f32 %v6164_v45, %v3441_v62 }
0x26b4   :  { %v3489_v37 = vpack.c.bf16 %v7437_v0, %v7437_v0 }
0x26b6   :  { %3491 = vrot.lane.b32.xlu0 %v3489_v37, %s6536_s19 }
0x2728   :  { %v7442_v2 = vpop.permute.xlu0 %3491 }
0x2729   :  { %5485 = vmatmul.mubr.msk.bf16.vlgmr.msra.gmra.mrb[44].mxu0 %vm305_vm1, %v7442_v2 }
0x272a   :  { %5806 = vmatpush3.bf16.msra.mxu0 %v7403_v25  ;;  %5809 = vmatprep.mubr.msk.bf16.mxu0 %vm6534_vm5, %v6535_v57 }
0x272b   :  { %5807 = vmatprep.subr.bf16.mxu0 %v6535_v57 }
0x272e   :  { %5808 = vmatpush3.bf16.msra.mxu0 %v7415_v29 }
0x272f   :  { %4084 = vmatprep.subr.bf16.mxu0 %v7181_v12 }
0x27fc   :  { %v3530_v34 = vpop.f32.mrb[44].mxu0 }
0x27fd   :  { %v3532_v8 = vpop.f32.mrb[45].mxu0 }
0x27fe   :  { %v3539_v9 = vcombine.low %v3530_v34, %v3532_v8  ;;  %v3534_v17 = vpop.f32.mrb[46].mxu0 }
0x27ff   :  { %v3535_v16 = vpop.f32.mrb[47].mxu0 }
0x2800   :  { %v3546_v27 = vrot.slane %v3539_v9, %v6835_v44 }
0x2802   :  { %v3547_v32 = vcombine.high %v3546_v27, %v3546_v27  ;;  %v3554_v56 = vrot.slane %v3546_v27, %v6835_v44 }
0x2804   :  { %v3561_v10 = vrot.slane %v3547_v32, %v6835_v44  ;;  %v3565_v18 = vrot.slane %v3554_v56, %v6829_v40  ;;  %v3569_v30 = vrot.slane %v3554_v56, %v6832_v42 }
0x2806   :  { %v3573_v33 = vrot.slane %v3561_v10, %v6829_v40  ;;  %v3577_v12 = vrot.slane %v3561_v10, %v6832_v42  ;;  %v3582_v35 = vadd.f32 %v3565_v18, %v6841_v54  ;;  %v3583_v36 = vadd.f32 %v3569_v30, %v6843_v55 }
0x2807   :  { %v3584_v39 = vadd.f32 %v3565_v18, %v6848_v59  ;;  %v3585_v51 = vadd.f32 %v3569_v30, %v6850_v60 }
0x2808   :  { %v3586_v19 = vadd.f32 %v3573_v33, %v6856_v1  ;;  %6167 = vtanh.f32 %v3582_v35  ;;  %v3587_v46 = vadd.f32 %v3577_v12, %v6859_v3  ;;  %v3588_v41 = vadd.f32 %v3573_v33, %v6862_v5 }
0x2809   :  { %6169 = vtanh.f32 %v3583_v36  ;;  %v3589_v43 = vadd.f32 %v3577_v12, %v6865_v7 }
0x280a   :  { %6171 = vtanh.f32 %v3584_v39 }
0x280b   :  { %6173 = vtanh.f32 %v3585_v51 }
0x280c   :  { %6175 = vtanh.f32 %v3586_v19 }
0x280d   :  { %6177 = vtanh.f32 %v3587_v46 }
0x280e   :  { %6179 = vtanh.f32 %v3588_v41 }
0x280f   :  { %6181 = vtanh.f32 %v3589_v43 }
0x2812   :  { %v6168_v47 = vpop.eup %6167 }
0x2813   :  { %v6170_v45 = vpop.eup %6169  ;;  %v3598_v52 = vmul.f32 %v6168_v47, %v6871_v14 }
0x2814   :  { %v6172_v48 = vpop.eup %6171  ;;  %v3599_v49 = vmul.f32 %v6170_v45, %v6874_v15 }
0x2815   :  { %v6174_v22 = vpop.eup %6173  ;;  %v3600_v24 = vmul.f32 %v6172_v48, %v6871_v14 }
0x2816   :  { %v6176_v61 = vpop.eup %6175  ;;  %v3601_v62 = vmul.f32 %v6174_v22, %v6874_v15  ;;  %v3606_v37 = vadd.f32 %v3599_v49, %v3598_v52 }
0x2817   :  { %v6178_v34 = vpop.eup %6177  ;;  %v3602_v17 = vmul.f32 %v6176_v61, %v6871_v14 }
0x2818   :  { %v6180_v8 = vpop.eup %6179  ;;  %v3609_v9 = vadd.f32 %v3601_v62, %v3600_v24  ;;  %3607 = vadd.xlane.f32.xlu0 %v3606_v37  ;;  %v3603_v16 = vmul.f32 %v6178_v34, %v6874_v15 }
0x2819   :  { %v6182_v27 = vpop.eup %6181  ;;  %v3604_v56 = vmul.f32 %v6180_v8, %v6871_v14 }
0x281a   :  { %3610 = vadd.xlane.f32.xlu1 %v3609_v9  ;;  %v3612_v32 = vadd.f32 %v3603_v16, %v3602_v17  ;;  %v3605_v10 = vmul.f32 %v6182_v27, %v6874_v15 }
0x281c   :  { %v3615_v18 = vadd.f32 %v3605_v10, %v3604_v56 }
0x281e   :  { %3613 = vadd.xlane.f32.xlu1 %v3612_v32 }
0x2822   :  { %3616 = vadd.xlane.f32.xlu1 %v3615_v18 }
0x28a5   :  { %v3608_v33 = vpop.xlane.xlu0 %3607 }
0x28a6   :  { %v3625_v36 = vrot.slane %v3608_v33, %v6889_v53 }
0x28a7   :  { %v3611_v30 = vpop.xlane.xlu1 %3610 }
0x28a8   :  { %v3629_v35 = vrot.slane %v3611_v30, %v6886_v50 }
0x28aa   :  { %v3630_v46 = vsel %vm681_vm2, %v3629_v35, %v3625_v36 }
0x28ab   :  { %v3614_v12 = vpop.xlane.xlu1 %3613 }
0x28ac   :  { %v3634_v51 = vrot.slane %v3614_v12, %v6889_v53 }
0x28af   :  { %v3617_v39 = vpop.xlane.xlu1 %3616 }
0x28b0   :  { %v3638_v19 = vrot.slane %v3617_v39, %v6886_v50 }
0x28b2   :  { %v3639_v41 = vsel %vm681_vm2, %v3638_v19, %v3634_v51 }
0x28b3   :  { %v3640_v43 = vsel %vm692_vm3, %v3639_v41, %v3630_v46 }
0x28b4   :  { %v3642_v47 = vsel %vm695_vm4, %v3640_v43, -inf }
0x28b5   :  { %3643 = vmax.xlane.f32.xlu1 %v3642_v47 }
0x2942   :  { %v3644_v45 = vpop.xlane.xlu1 %3643 }
0x2943   :  { %v3649_v52 = vrot.slane %v3644_v45, %v6829_v40  ;;  %v3653_v48 = vrot.slane %v3644_v45, %v6832_v42 }
0x2945   :  { %v3656_v49 = vsub.f32 %v3608_v33, %v3649_v52  ;;  %v3657_v22 = vsub.f32 %v3611_v30, %v3649_v52  ;;  %v3658_v24 = vsub.f32 %v3614_v12, %v3653_v48  ;;  %v3659_v37 = vsub.f32 %v3617_v39, %v3653_v48 }
0x2947   :  { %v3660_v61 = vmul.f32 1.442695, %v3656_v49  ;;  %v3662_v62 = vmul.f32 1.442695, %v3657_v22  ;;  %v3664_v34 = vmul.f32 1.442695, %v3658_v24 }
0x2948   :  { %v3666_v8 = vmul.f32 1.442695, %v3659_v37 }
0x2949   :  { %6183 = vpow2.f32 %v3660_v61 }
0x294a   :  { %6185 = vpow2.f32 %v3662_v62 }
0x294b   :  { %6187 = vpow2.f32 %v3664_v34 }
0x294c   :  { %6189 = vpow2.f32 %v3666_v8 }
0x2953   :  { %v6184_v9 = vpop.eup %6183 }
0x2954   :  { %v6186_v17 = vpop.eup %6185  ;;  %3673 = vperm.xlu1 %5967, %v6184_v9  }
0x2955   :  { %3676 = vperm.xlu0 %5968, %v6186_v17   ;;  %v6188_v16 = vpop.eup %6187 }
0x2956   :  { %v6190_v27 = vpop.eup %6189 }
0x2958   :  { %3679 = vperm.xlu1 %5967, %v6188_v16  }
0x295c   :  { %3682 = vperm.xlu1 %5967, %v6190_v27  }
0x29d3   :  { %v3674_v32 = vpop.permute.xlu1 %3673 }
0x29d4   :  { %v3677_v56 = vpop.permute.xlu0 %3676  ;;  %v3687_v30 = vrot.slane %v3674_v32, %v6889_v53 }
0x29d5   :  { %v3691_v18 = vrot.slane %v3677_v56, %v6886_v50 }
0x29d7   :  { %v3680_v10 = vpop.permute.xlu1 %3679  ;;  %v3692_v36 = vsel %vm681_vm2, %v3691_v18, %v3687_v30 }
0x29d8   :  { %v3696_v12 = vrot.slane %v3680_v10, %v6889_v53 }
0x29db   :  { %v3683_v33 = vpop.permute.xlu1 %3682 }
0x29dc   :  { %v3700_v35 = vrot.slane %v3683_v33, %v6886_v50 }
0x29de   :  { %v3701_v39 = vsel %vm681_vm2, %v3700_v35, %v3696_v12 }
0x29df   :  { %v3702_v51 = vsel %vm692_vm3, %v3701_v39, %v3692_v36 }
0x29e0   :  { %v3704_v19 = vsel %vm695_vm4, %v3702_v51, 0.0 }
0x29e1   :  { %3705 = vadd.xlane.f32.xlu1 %v3704_v19  ;;  %v7528_v19 = vld [vmem:[%s7935_s5] ss:$8 sps:$4 sm:$0xff]  }
0x2a6e   :  { %v3706_v46 = vpop.xlane.xlu1 %3705 }
0x2a6f   :  { %6191 = vrcp.f32 %v3706_v46  ;;  %v7535_v46 = vld [vmem:[%s7935_s5 + $0x14] ss:$8 sps:$4 sm:$0xff]  }
0x2a79   :  { %v6192_v41 = vpop.eup %6191 }
0x2a7a   :  { %v3712_v43 = vrot.slane %v6192_v41, %v6829_v40  ;;  %v3716_v52 = vrot.slane %v6192_v41, %v6832_v42  ;;  %v7541_v41 = vld [vmem:[%s7935_s5 + $0x10] ss:$8 sps:$4 sm:$0xff]  }
0x2a7c   :  { %v3719_v47 = vmul.f32 %v6184_v9, %v3712_v43  ;;  %v3720_v45 = vmul.f32 %v6186_v17, %v3712_v43  ;;  %v3721_v48 = vmul.f32 %v6188_v16, %v3716_v52  ;;  %v3722_v49 = vmul.f32 %v6190_v27, %v3716_v52 }
0x2a7e   :  { %3726 = vperm.xlu0 %5968, %v3719_v47  }
0x2a82   :  { %3729 = vperm.xlu0 %5968, %v3720_v45  }
0x2a86   :  { %3815 = vperm.xlu0 %5968, %v3721_v48  }
0x2a8a   :  { %3818 = vperm.xlu0 %5968, %v3722_v49  }
0x2afd   :  { %v3727_v22 = vpop.permute.xlu0 %3726 }
0x2afe   :  { %v3734_v61 = vrot.slane %v3727_v22, %v6889_v53 }
0x2b01   :  { %v3730_v24 = vpop.permute.xlu0 %3729 }
0x2b02   :  { %v3738_v62 = vrot.slane %v3730_v24, %v6886_v50 }
0x2b04   :  { %v3739_v37 = vsel %vm681_vm2, %v3738_v62, %v3734_v61 }
0x2b05   :  { %4074 = vst.msk [vmem:[#allocation4 + $0x5] sm:$0x1] %vm1143_vm7, %v3739_v37  ;;  %5796 = vmatmul.mubr.msk.f32.vlgmr.msra.gmra.mrb[52].mxu1 %vm794_vm6, %v3739_v37  ;;  %v3816_v34 = vpop.permute.xlu0 %3815 }
0x2b06   :  { %5932 = vmatpush3.bf16.msra.mxu1 %v6793_v21  ;;  %5802 = vmatprep.mubr.msk.f32.mxu1 %vm6534_vm5, %v6535_v57  ;;  %v3823_v9 = vrot.slane %v3816_v34, %v6889_v53 }
0x2b07   :  { %5813 = vmatprep.subr.bf16.mxu1 %v6535_v57 }
0x2b09   :  { %v3819_v8 = vpop.permute.xlu0 %3818 }
0x2b0a   :  { %v3827_v17 = vrot.slane %v3819_v8, %v6886_v50 }
0x2b0c   :  { %v3828_v16 = vsel %vm681_vm2, %v3827_v17, %v3823_v9 }
0x2b0d   :  { %4075 = vst.msk [vmem:[#allocation4 + $0xd] sm:$0x1] %vm1143_vm7, %v3828_v16  ;;  %5803 = vmatmul.mubr.msk.f32.vlgmr.msra.gmra.mrb[54].mxu1 %vm794_vm6, %v3828_v16 }
0x2b0e   :  { %5814 = vmatpush3.bf16.msra.mxu1 %v7289_v63  ;;  %5817 = vmatprep.mubr.msk.bf16.mxu1 %vm6534_vm5, %v6535_v57 }
0x2b0f   :  { %5815 = vmatprep.subr.bf16.mxu1 %v6535_v57 }
0x2b12   :  { %5816 = vmatpush3.bf16.msra.mxu1 %v7295_v6 }
0x2b13   :  { %5933 = vmatprep.subr.bf16.mxu1 %v6532_v26 }
0x2b15   :  { %5818 = vmatmul.mubr.msk.bf16.vlgmr.msra.gmra.mrb[56].mxu1 %vm305_vm1, %v7442_v2 }
0x2b16   :  { %5935 = vmatpush3.bf16.msra.mxu1 %v6800_v23  ;;  %5825 = vmatprep.mubr.msk.f32.mxu1 %vm6534_vm5, %v6535_v57 }
0x2b17   :  { %5835 = vmatprep.subr.bf16.mxu1 %v6535_v57 }
0x2bd8   :  { %v3808_v63 = vpop.f32.mrb[52].mxu1 }
0x2bd9   :  { %4070 = vst.msk [vmem:[#allocation3 + $0x5] sm:$0x1] %vm1136_vm8, %v3808_v63  ;;  %v5797_v27 = vpop.f32.mrb[53].mxu1  ;;  %v3901_v56 = vpack.c.bf16 %v3808_v63, %v3808_v63  ;;  %v4010_v63 = vrot.slane %v7433_v58, 6 }
0x2bdb   :  { %v3905_v30 = vunpack.c.l.b16 %v3901_v56 }
0x2be0   :  { %v3897_v32 = vpop.f32.mrb[54].mxu1 }
0x2be1   :  { %v3902_v10 = vpack.c.bf16 %v3897_v32, %v3897_v32  ;;  %4071 = vst.msk [vmem:[#allocation3 + $0xd] sm:$0x1] %vm1136_vm8, %v3897_v32  ;;  %v5804_v6 = vpop.f32.mrb[55].mxu1 }
0x2be3   :  { %v3906_v18 = vunpack.c.l.b16 %v3902_v10 }
0x2be5   :  { %v3907_v2 = vrot.slane %v3906_v18, 7 }
0x2be7   :  { %v3908_v33 = vsel %vm692_vm3, %v3907_v2, %v3905_v30 }
0x2be8   :  { %v3909_v12 = vpack.c.b16 %v3908_v33, %v3908_v33  ;;  %v3991_v35 = vpop.f32.mrb[56].mxu1 }
0x2be9   :  { %v5819_v36 = vpop.f32.mrb[57].mxu1  ;;  %v3998_v48 = vrot.slane %v3991_v35, 6 }
0x2bea   :  { %v3994_v39 = vpop.f32.mrb[58].mxu1  ;;  %5810 = vmatmul.mubr.msk.bf16.vlgmr.msra.gmra.mrb[48].mxu0 %vm305_vm1, %v3909_v12 }
0x2beb   :  { %v5820_v51 = vpop.f32.mrb[59].mxu1  ;;  %4085 = vmatpush1.bf16.msra.mxu0 %v7528_v19  ;;  %4116 = vmatprep.mubr.bf16.mxu0 %v6531_v11 }
0x2bec   :  { %4086 = vmatprep.subr.bf16.mxu0 %v7535_v46 }
0x2bef   :  { %4087 = vmatpush1.bf16.msra.mxu0 %v7541_v41 }
0x2bf0   :  { %5936 = vmatprep.subr.bf16.mxu0 %v6532_v26 }
0x2cbd   :  { %v3947_v43 = vpop.f32.mrb[48].mxu0 }
0x2cbe   :  { %v3954_v47 = vrot.slane %v3947_v43, 6  ;;  %v5811_v45 = vpop.f32.mrb[49].mxu0 }
0x2cbf   :  { %v3950_v52 = vpop.f32.mrb[50].mxu0 }
0x2cc0   :  { %v3956_v49 = vadd.f32 %v3954_v47, %v6981_v20  ;;  %v5812_v22 = vpop.f32.mrb[51].mxu0 }
0x2cc2   :  { %v4000_v24 = vadd.f32 %v3998_v48, %v3956_v49 }
0x2cc4   :  { %v4001_v61 = vadd.f32 %v7315_v4, %v4000_v24 }
0x2cc6   :  { %6193 = vtanh.f32 %v4001_v61  ;;  %v5490_v37 = vmul.f32 -1.442695, %v4001_v61 }
0x2cc8   :  { %6195 = vpow2.f32 %v5490_v37 }
0x2cd0   :  { %v6194_v62 = vpop.eup %6193 }
0x2cd1   :  { %4014 = vrot.lane.b32.xlu0 %v6194_v62, %s6525_s21 }
0x2cd2   :  { %v6196_v34 = vpop.eup %6195 }
0x2cd3   :  { %v4005_v8 = vadd.f32 1.0, %v6196_v34 }
0x2cd5   :  { %6197 = vrcp.f32 %v4005_v8 }
0x2cdf   :  { %v6198_v9 = vpop.eup %6197 }
0x2ce0   :  { %v4012_v27 = vmul.f32 %v6198_v9, %v4010_v63 }
0x2d43   :  { %v4015_v17 = vpop.permute.xlu0 %4014 }
0x2d44   :  { %v4017_v16 = vmul.f32 %v6198_v9, %v4015_v17 }
0x2d46   :  { %4019 = vrot.lane.b32.xlu0 %v4017_v16, %s6536_s19 }
0x2db8   :  { %v4020_v32 = vpop.permute.xlu0 %4019 }
0x2db9   :  { %v7550_v56 = vadd.f32 %v4020_v32, %v4012_v27 }
0x2dbb   :  { %6199 = vtanh.f32 %v7550_v56 }
0x2dc5   :  { %v6200_v4 = vpop.eup %6199 }
0x2dc6   :  { %4025 = vrot.lane.b32.xlu0 %v6200_v4, %s6525_s21 }
0x2e38   :  { %v4026_v10 = vpop.permute.xlu0 %4025 }
0x2e39   :  { %v7554_v6 = vmul.f32 %v6198_v9, %v4026_v10 }
0x2e3b   :  { %v4076_v18 = vpack.c.bf16 %v7554_v6, %v7554_v6 }
0x2e3d   :  { %v4078_v30 = vrot.slane %v4076_v18, 1 }
0x2e3f   :  { %4079 = vrot.lane.b32.xlu1 %v4078_v30, %s6536_s19 }
0x2eb1   :  { %v7559_v2 = vpop.permute.xlu1 %4079 }
0x2eb2   :  { %5491 = vmatmul.mubr.msk.bf16.vlgmr.msra.gmra.mrb[52].mxu0 %vm305_vm1, %v7559_v2 }
0x2eb3   :  { %5938 = vmatpush3.bf16.msra.mxu0 %v6793_v21  ;;  %5832 = vmatprep.mubr.msk.f32.mxu0 %vm6534_vm5, %v6535_v57 }
0x2eb4   :  { %5843 = vmatprep.subr.bf16.mxu0 %v6535_v57 }
0x2f85   :  { %v4118_v58 = vpop.f32.mrb[52].mxu0 }
0x2f86   :  { %v4120_v33 = vpop.f32.mrb[53].mxu0 }
0x2f87   :  { %v4127_v12 = vcombine.low %v4118_v58, %v4120_v33  ;;  %v4122_v35 = vpop.f32.mrb[54].mxu0 }
0x2f88   :  { %v4123_v36 = vpop.f32.mrb[55].mxu0 }
0x2f89   :  { %v4134_v39 = vrot.slane %v4127_v12, %v6835_v44 }
0x2f8b   :  { %v4135_v51 = vcombine.high %v4134_v39, %v4134_v39  ;;  %v4142_v43 = vrot.slane %v4134_v39, %v6835_v44 }
0x2f8d   :  { %v4149_v47 = vrot.slane %v4135_v51, %v6835_v44  ;;  %v4153_v45 = vrot.slane %v4142_v43, %v6829_v40  ;;  %v4157_v52 = vrot.slane %v4142_v43, %v6832_v42 }
0x2f8f   :  { %v4161_v48 = vrot.slane %v4149_v47, %v6829_v40  ;;  %v4165_v49 = vrot.slane %v4149_v47, %v6832_v42  ;;  %v4170_v22 = vadd.f32 %v4153_v45, %v6841_v54  ;;  %v4171_v24 = vadd.f32 %v4157_v52, %v6843_v55 }
0x2f90   :  { %v4172_v61 = vadd.f32 %v4153_v45, %v6848_v59  ;;  %v4173_v62 = vadd.f32 %v4157_v52, %v6850_v60 }
0x2f91   :  { %v4174_v37 = vadd.f32 %v4161_v48, %v6856_v1  ;;  %6201 = vtanh.f32 %v4170_v22  ;;  %v4175_v34 = vadd.f32 %v4165_v49, %v6859_v3  ;;  %v4176_v8 = vadd.f32 %v4161_v48, %v6862_v5 }
0x2f92   :  { %6203 = vtanh.f32 %v4171_v24  ;;  %v4177_v9 = vadd.f32 %v4165_v49, %v6865_v7 }
0x2f93   :  { %6205 = vtanh.f32 %v4172_v61 }
0x2f94   :  { %6207 = vtanh.f32 %v4173_v62 }
0x2f95   :  { %6209 = vtanh.f32 %v4174_v37 }
0x2f96   :  { %6211 = vtanh.f32 %v4175_v34 }
0x2f97   :  { %6213 = vtanh.f32 %v4176_v8 }
0x2f98   :  { %6215 = vtanh.f32 %v4177_v9 }
0x2f9b   :  { %v6202_v17 = vpop.eup %6201 }
0x2f9c   :  { %v6204_v16 = vpop.eup %6203  ;;  %v4186_v63 = vmul.f32 %v6202_v17, %v6871_v14 }
0x2f9d   :  { %v6206_v27 = vpop.eup %6205  ;;  %v4187_v32 = vmul.f32 %v6204_v16, %v6874_v15 }
0x2f9e   :  { %v6208_v4 = vpop.eup %6207  ;;  %v4188_v10 = vmul.f32 %v6206_v27, %v6871_v14 }
0x2f9f   :  { %v6210_v18 = vpop.eup %6209  ;;  %v4189_v30 = vmul.f32 %v6208_v4, %v6874_v15  ;;  %v4194_v58 = vadd.f32 %v4187_v32, %v4186_v63 }
0x2fa0   :  { %v6212_v33 = vpop.eup %6211  ;;  %v4190_v12 = vmul.f32 %v6210_v18, %v6871_v14 }
0x2fa1   :  { %v6214_v35 = vpop.eup %6213  ;;  %v4197_v36 = vadd.f32 %v4189_v30, %v4188_v10  ;;  %4195 = vadd.xlane.f32.xlu0 %v4194_v58  ;;  %v4191_v39 = vmul.f32 %v6212_v33, %v6874_v15 }
0x2fa2   :  { %v6216_v51 = vpop.eup %6215  ;;  %v4192_v47 = vmul.f32 %v6214_v35, %v6871_v14 }
0x2fa3   :  { %4198 = vadd.xlane.f32.xlu1 %v4197_v36  ;;  %v4200_v43 = vadd.f32 %v4191_v39, %v4190_v12  ;;  %v4193_v45 = vmul.f32 %v6216_v51, %v6874_v15 }
0x2fa5   :  { %4201 = vadd.xlane.f32.xlu0 %v4200_v43  ;;  %v4203_v52 = vadd.f32 %v4193_v45, %v4192_v47 }
0x2fa9   :  { %4204 = vadd.xlane.f32.xlu0 %v4203_v52 }
0x302e   :  { %v4196_v48 = vpop.xlane.xlu0 %4195 }
0x302f   :  { %v4213_v61 = vrot.slane %v4196_v48, %v6889_v53 }
0x3030   :  { %v4199_v49 = vpop.xlane.xlu1 %4198 }
0x3031   :  { %v4217_v24 = vrot.slane %v4199_v49, %v6886_v50 }
0x3032   :  { %v4202_v22 = vpop.xlane.xlu0 %4201 }
0x3033   :  { %v4222_v37 = vrot.slane %v4202_v22, %v6889_v53  ;;  %v4218_v8 = vsel %vm681_vm2, %v4217_v24, %v4213_v61 }
0x3036   :  { %v4205_v62 = vpop.xlane.xlu0 %4204 }
0x3037   :  { %v4226_v34 = vrot.slane %v4205_v62, %v6886_v50 }
0x3039   :  { %v4227_v9 = vsel %vm681_vm2, %v4226_v34, %v4222_v37 }
0x303a   :  { %v4228_v17 = vsel %vm692_vm3, %v4227_v9, %v4218_v8 }
0x303b   :  { %v4230_v16 = vsel %vm695_vm4, %v4228_v17, -inf }
0x303c   :  { %4231 = vmax.xlane.f32.xlu0 %v4230_v16 }
0x30c9   :  { %v4232_v63 = vpop.xlane.xlu0 %4231 }
0x30ca   :  { %v4237_v27 = vrot.slane %v4232_v63, %v6829_v40  ;;  %v4241_v32 = vrot.slane %v4232_v63, %v6832_v42 }
0x30cc   :  { %v4244_v4 = vsub.f32 %v4196_v48, %v4237_v27  ;;  %v4245_v10 = vsub.f32 %v4199_v49, %v4237_v27  ;;  %v4246_v18 = vsub.f32 %v4202_v22, %v4241_v32  ;;  %v4247_v30 = vsub.f32 %v4205_v62, %v4241_v32 }
0x30ce   :  { %v4248_v58 = vmul.f32 1.442695, %v4244_v4  ;;  %v4250_v33 = vmul.f32 1.442695, %v4245_v10  ;;  %v4252_v12 = vmul.f32 1.442695, %v4246_v18 }
0x30cf   :  { %v4254_v35 = vmul.f32 1.442695, %v4247_v30 }
0x30d0   :  { %6217 = vpow2.f32 %v4248_v58 }
0x30d1   :  { %6219 = vpow2.f32 %v4250_v33 }
0x30d2   :  { %6221 = vpow2.f32 %v4252_v12 }
0x30d3   :  { %6223 = vpow2.f32 %v4254_v35 }
0x30da   :  { %v6218_v36 = vpop.eup %6217 }
0x30db   :  { %v6220_v39 = vpop.eup %6219  ;;  %4261 = vperm.xlu0 %5968, %v6218_v36  }
0x30dc   :  { %4264 = vperm.xlu1 %5967, %v6220_v39   ;;  %v6222_v51 = vpop.eup %6221 }
0x30dd   :  { %v6224_v43 = vpop.eup %6223 }
0x30df   :  { %4267 = vperm.xlu0 %5968, %v6222_v51  }
0x30e0   :  { %4270 = vperm.xlu1 %5967, %v6224_v43  }
0x315a   :  { %v4262_v47 = vpop.permute.xlu0 %4261 }
0x315b   :  { %v4265_v45 = vpop.permute.xlu1 %4264  ;;  %v4275_v48 = vrot.slane %v4262_v47, %v6889_v53 }
0x315c   :  { %v4279_v52 = vrot.slane %v4265_v45, %v6886_v50 }
0x315e   :  { %v4268_v49 = vpop.permute.xlu0 %4267  ;;  %v4280_v62 = vsel %vm681_vm2, %v4279_v52, %v4275_v48 }
0x315f   :  { %v4271_v22 = vpop.permute.xlu1 %4270  ;;  %v4284_v24 = vrot.slane %v4268_v49, %v6889_v53 }
0x3160   :  { %v4288_v61 = vrot.slane %v4271_v22, %v6886_v50 }
0x3162   :  { %v4289_v37 = vsel %vm681_vm2, %v4288_v61, %v4284_v24 }
0x3163   :  { %v4290_v34 = vsel %vm692_vm3, %v4289_v37, %v4280_v62 }
0x3164   :  { %v4292_v8 = vsel %vm695_vm4, %v4290_v34, 0.0 }
0x3165   :  { %4293 = vadd.xlane.f32.xlu0 %v4292_v8 }
0x31f2   :  { %v4294_v9 = vpop.xlane.xlu0 %4293 }
0x31f3   :  { %6225 = vrcp.f32 %v4294_v9 }
0x31fd   :  { %v6226_v17 = vpop.eup %6225 }
0x31fe   :  { %v4304_v16 = vrot.slane %v6226_v17, %v6832_v42  ;;  %v4300_v32 = vrot.slane %v6226_v17, %v6829_v40 }
0x3200   :  { %v4309_v63 = vmul.f32 %v6222_v51, %v4304_v16  ;;  %v4310_v27 = vmul.f32 %v6224_v43, %v4304_v16  ;;  %v4307_v4 = vmul.f32 %v6218_v36, %v4300_v32  ;;  %v4308_v10 = vmul.f32 %v6220_v39, %v4300_v32  ;;  %v7615_v51 = vld [vmem:[#allocation14] sm:$0xff]   ;;  %v7622_v43 = vld [vmem:[#allocation14 + $0x8] sm:$0xff]  }
0x3202   :  { %4403 = vperm.xlu1 %5967, %v4309_v63  }
0x3206   :  { %4406 = vperm.xlu1 %5967, %v4310_v27  }
0x320a   :  { %4314 = vperm.xlu1 %5967, %v4307_v4  }
0x320e   :  { %4317 = vperm.xlu1 %5967, %v4308_v10  }
0x3281   :  { %v4404_v18 = vpop.permute.xlu1 %4403 }
0x3282   :  { %v4411_v58 = vrot.slane %v4404_v18, %v6889_v53 }
0x3285   :  { %v4407_v30 = vpop.permute.xlu1 %4406 }
0x3286   :  { %v4415_v33 = vrot.slane %v4407_v30, %v6886_v50 }
0x3288   :  { %v4416_v12 = vsel %vm681_vm2, %v4415_v33, %v4411_v58  ;;  %v7654_v33 = vld [vmem:[#allocation16] ss:$0 sm:$0xff] }
0x3289   :  { %4662 = vst.msk [vmem:[#allocation4 + $0xe] sm:$0x1] %vm1143_vm7, %v4416_v12  ;;  %5833 = vmatmul.mubr.msk.f32.vlgmr.msra.gmra.mrb[56].mxu0 %vm794_vm6, %v4416_v12  ;;  %v4315_v35 = vpop.permute.xlu1 %4314 }
0x328a   :  { %5844 = vmatpush3.bf16.msra.mxu0 %v7615_v51  ;;  %5847 = vmatprep.mubr.msk.bf16.mxu0 %vm6534_vm5, %v6535_v57  ;;  %v4322_v39 = vrot.slane %v4315_v35, %v6889_v53 }
0x328b   :  { %5845 = vmatprep.subr.bf16.mxu0 %v6535_v57 }
0x328d   :  { %v4318_v36 = vpop.permute.xlu1 %4317 }
0x328e   :  { %5846 = vmatpush3.bf16.msra.mxu0 %v7622_v43  ;;  %v4326_v47 = vrot.slane %v4318_v36, %v6886_v50 }
0x328f   :  { %5939 = vmatprep.subr.bf16.mxu0 %v6532_v26 }
0x3290   :  { %v4327_v45 = vsel %vm681_vm2, %v4326_v47, %v4322_v39  ;;  %v4598_v47 = vrot.slane %v7550_v56, 6 }
0x3291   :  { %4661 = vst.msk [vmem:[#allocation4 + $0x6] sm:$0x1] %vm1143_vm7, %v4327_v45  ;;  %5848 = vmatmul.mubr.msk.bf16.vlgmr.msra.gmra.mrb[60].mxu0 %vm305_vm1, %v7559_v2  ;;  %5826 = vmatmul.mubr.msk.f32.vlgmr.msra.gmra.mrb[60].mxu1 %vm794_vm6, %v4327_v45  ;;  %v6283_v2 = vld [vmem:[%s7935_s5 + $0x4] ss:$8 sps:$4 sm:$0xff]  }
0x3292   :  { %5941 = vmatpush3.bf16.msra.mxu0 %v6800_v23  ;;  %5836 = vmatpush3.bf16.msra.mxu1 %v7403_v25 }
0x3293   :  { %5837 = vmatprep.subr.bf16.mxu1 %v6535_v57  ;;  %5839 = vmatprep.mubr.msk.bf16.mxu1 %vm6534_vm5, %v6535_v57 }
0x3294   :  { %5855 = vmatprep.mubr.msk.f32.mxu0 %vm6534_vm5, %v6535_v57  ;;  %5942 = vmatprep.subr.bf16.mxu0 %v6532_v26 }
0x3296   :  { %5838 = vmatpush3.bf16.msra.mxu1 %v7415_v29 }
0x3297   :  { %4671 = vmatprep.subr.bf16.mxu1 %v6283_v2 }
0x335c   :  { %v4485_v23 = vpop.f32.mrb[56].mxu0 }
0x335d   :  { %4658 = vst.msk [vmem:[#allocation3 + $0xe] sm:$0x1] %vm1136_vm8, %v4485_v23  ;;  %v5834_v52 = vpop.f32.mrb[57].mxu0  ;;  %v4490_v48 = vpack.c.bf16 %v4485_v23, %v4485_v23 }
0x335f   :  { %v4494_v49 = vunpack.c.l.b16 %v4490_v48 }
0x3361   :  { %v4495_v34 = vrot.slane %v4494_v49, 7 }
0x3364   :  { %v4579_v22 = vpop.f32.mrb[60].mxu0  ;;  %v4396_v24 = vpop.f32.mrb[60].mxu1 }
0x3365   :  { %v4489_v61 = vpack.c.bf16 %v4396_v24, %v4396_v24  ;;  %4657 = vst.msk [vmem:[#allocation3 + $0x6] sm:$0x1] %vm1136_vm8, %v4396_v24  ;;  %v5849_v62 = vpop.f32.mrb[61].mxu0  ;;  %v5827_v26 = vpop.f32.mrb[61].mxu1  ;;  %v4586_v10 = vrot.slane %v4579_v22, 4 }
0x3366   :  { %v4582_v37 = vpop.f32.mrb[62].mxu0 }
0x3367   :  { %v4493_v8 = vunpack.c.l.b16 %v4489_v61  ;;  %v5850_v9 = vpop.f32.mrb[63].mxu0 }
0x3369   :  { %v4496_v17 = vsel %vm692_vm3, %v4495_v34, %v4493_v8 }
0x336a   :  { %v4497_v16 = vpack.c.b16 %v4496_v17, %v4496_v17 }
0x336c   :  { %5840 = vmatmul.mubr.msk.bf16.vlgmr.msra.gmra.mrb[64].mxu1 %vm305_vm1, %v4497_v16 }
0x336d   :  { %4672 = vmatpush1.bf16.msra.mxu1 %v7528_v19  ;;  %4703 = vmatprep.mubr.bf16.mxu1 %v6531_v11 }
0x336e   :  { %4673 = vmatprep.subr.bf16.mxu1 %v7535_v46 }
0x3371   :  { %4674 = vmatpush1.bf16.msra.mxu1 %v7541_v41 }
0x3372   :  { %5865 = vmatprep.subr.bf16.mxu1 %v6535_v57 }
0x343f   :  { %v4535_v63 = vpop.f32.mrb[64].mxu1 }
0x3440   :  { %v4542_v27 = vrot.slane %v4535_v63, 4  ;;  %v5841_v32 = vpop.f32.mrb[65].mxu1 }
0x3441   :  { %v4538_v4 = vpop.f32.mrb[66].mxu1 }
0x3442   :  { %v4544_v18 = vadd.f32 %v4542_v27, %v6981_v20  ;;  %v5842_v30 = vpop.f32.mrb[67].mxu1 }
0x3444   :  { %v4588_v58 = vadd.f32 %v4586_v10, %v4544_v18 }
0x3446   :  { %v4589_v19 = vadd.f32 %v7654_v33, %v4588_v58 }
0x3448   :  { %6227 = vtanh.f32 %v4589_v19  ;;  %v5496_v46 = vmul.f32 -1.442695, %v4589_v19 }
0x344a   :  { %6229 = vpow2.f32 %v5496_v46 }
0x3452   :  { %v6228_v11 = vpop.eup %6227 }
0x3453   :  { %4602 = vrot.lane.b32.xlu1 %v6228_v11, %s6525_s21 }
0x3454   :  { %v6230_v41 = vpop.eup %6229 }
0x3455   :  { %v4593_v12 = vadd.f32 1.0, %v6230_v41 }
0x3457   :  { %6231 = vrcp.f32 %v4593_v12 }
0x3461   :  { %v6232_v35 = vpop.eup %6231 }
0x3462   :  { %v4600_v45 = vmul.f32 %v6232_v35, %v4598_v47 }
0x34c5   :  { %v4603_v36 = vpop.permute.xlu1 %4602 }
0x34c6   :  { %v4605_v39 = vmul.f32 %v6232_v35, %v4603_v36 }
0x34c8   :  { %4607 = vrot.lane.b32.xlu1 %v4605_v39, %s6536_s19 }
0x353a   :  { %v4608_v2 = vpop.permute.xlu1 %4607 }
0x353b   :  { %v7660_v23 = vadd.f32 %v4608_v2, %v4600_v45 }
0x353d   :  { %6233 = vtanh.f32 %v7660_v23 }
0x3547   :  { %v6234_v52 = vpop.eup %6233 }
0x3548   :  { %4613 = vrot.lane.b32.xlu1 %v6234_v52, %s6525_s21 }
0x35ba   :  { %v4614_v48 = vpop.permute.xlu1 %4613 }
0x35bb   :  { %v7664_v49 = vmul.f32 %v6232_v35, %v4614_v48 }
0x35bd   :  { %v4663_v22 = vpack.c.bf16 %v7664_v49, %v7664_v49 }
0x35bf   :  { %v4665_v24 = vrot.slane %v4663_v22, 2 }
0x35c1   :  { %4666 = vrot.lane.b32.xlu0 %v4665_v24, %s6536_s19 }
0x3633   :  { %v7669_v61 = vpop.permute.xlu0 %4666 }
0x3634   :  { %5497 = vmatmul.mubr.msk.bf16.vlgmr.msra.gmra.mrb[68].mxu1 %vm305_vm1, %v7669_v61 }
0x3635   :  { %5866 = vmatpush3.bf16.msra.mxu1 %v7403_v25  ;;  %5869 = vmatprep.mubr.msk.bf16.mxu1 %vm6534_vm5, %v6535_v57 }
0x3636   :  { %5867 = vmatprep.subr.bf16.mxu1 %v6535_v57 }
0x3639   :  { %5868 = vmatpush3.bf16.msra.mxu1 %v7415_v29 }
0x363a   :  { %5881 = vmatprep.subr.bf16.mxu1 %v6535_v57 }
0x3707   :  { %v4705_v56 = vpop.f32.mrb[68].mxu1 }
0x3708   :  { %v4707_v62 = vpop.f32.mrb[69].mxu1 }
0x3709   :  { %v4714_v26 = vcombine.low %v4705_v56, %v4707_v62  ;;  %v4709_v37 = vpop.f32.mrb[70].mxu1 }
0x370a   :  { %v4710_v34 = vpop.f32.mrb[71].mxu1 }
0x370b   :  { %v4721_v8 = vrot.slane %v4714_v26, %v6835_v44 }
0x370d   :  { %v4722_v9 = vcombine.high %v4721_v8, %v4721_v8  ;;  %v4729_v17 = vrot.slane %v4721_v8, %v6835_v44 }
0x370f   :  { %v4736_v25 = vrot.slane %v4722_v9, %v6835_v44  ;;  %v4740_v16 = vrot.slane %v4729_v17, %v6829_v40  ;;  %v4744_v63 = vrot.slane %v4729_v17, %v6832_v42 }
0x3711   :  { %v4748_v29 = vrot.slane %v4736_v25, %v6829_v40  ;;  %v4752_v27 = vrot.slane %v4736_v25, %v6832_v42  ;;  %v4757_v32 = vadd.f32 %v4740_v16, %v6841_v54  ;;  %v4758_v4 = vadd.f32 %v4744_v63, %v6843_v55 }
0x3712   :  { %v4759_v10 = vadd.f32 %v4740_v16, %v6848_v59  ;;  %v4760_v18 = vadd.f32 %v4744_v63, %v6850_v60 }
0x3713   :  { %v4761_v30 = vadd.f32 %v4748_v29, %v6856_v1  ;;  %6235 = vtanh.f32 %v4757_v32  ;;  %v4762_v58 = vadd.f32 %v4752_v27, %v6859_v3  ;;  %v4763_v19 = vadd.f32 %v4748_v29, %v6862_v5 }
0x3714   :  { %6237 = vtanh.f32 %v4758_v4  ;;  %v4764_v11 = vadd.f32 %v4752_v27, %v6865_v7 }
0x3715   :  { %6239 = vtanh.f32 %v4759_v10 }
0x3716   :  { %6241 = vtanh.f32 %v4760_v18 }
0x3717   :  { %6243 = vtanh.f32 %v4761_v30 }
0x3718   :  { %6245 = vtanh.f32 %v4762_v58 }
0x3719   :  { %6247 = vtanh.f32 %v4763_v19 }
0x371a   :  { %6249 = vtanh.f32 %v4764_v11 }
0x371d   :  { %v6236_v54 = vpop.eup %6235 }
0x371e   :  { %v6238_v55 = vpop.eup %6237  ;;  %v4773_v59 = vmul.f32 %v6236_v54, %v6871_v14 }
0x371f   :  { %v6240_v60 = vpop.eup %6239  ;;  %v4774_v1 = vmul.f32 %v6238_v55, %v6874_v15 }
0x3720   :  { %v6242_v46 = vpop.eup %6241  ;;  %v4775_v3 = vmul.f32 %v6240_v60, %v6871_v14 }
0x3721   :  { %v6244_v41 = vpop.eup %6243  ;;  %v4776_v5 = vmul.f32 %v6242_v46, %v6874_v15  ;;  %v4781_v12 = vadd.f32 %v4774_v1, %v4773_v59 }
0x3722   :  { %v6246_v7 = vpop.eup %6245  ;;  %v4777_v35 = vmul.f32 %v6244_v41, %v6871_v14 }
0x3723   :  { %v6248_v36 = vpop.eup %6247  ;;  %v4784_v39 = vadd.f32 %v4776_v5, %v4775_v3  ;;  %4782 = vadd.xlane.f32.xlu1 %v4781_v12  ;;  %v4778_v47 = vmul.f32 %v6246_v7, %v6874_v15 }
0x3724   :  { %v6250_v45 = vpop.eup %6249  ;;  %v4779_v52 = vmul.f32 %v6248_v36, %v6871_v14 }
0x3725   :  { %4785 = vadd.xlane.f32.xlu0 %v4784_v39  ;;  %v4787_v2 = vadd.f32 %v4778_v47, %v4777_v35  ;;  %v4780_v48 = vmul.f32 %v6250_v45, %v6874_v15  ;;  %v2862_v47 = vcombine.high %v7325_v38, %v7325_v38  ;;  %v7745_v38 = vrot.slane %v7437_v0, %v6835_v44 }
0x3727   :  { %4788 = vadd.xlane.f32.xlu1 %v4787_v2  ;;  %v4790_v22 = vadd.f32 %v4780_v48, %v4779_v52  ;;  %v7733_v2 = vrot.slane %v7095_v13, %v6835_v44  ;;  %v7736_v52 = vrot.slane %v2862_v47, %v6835_v44  ;;  %v7749_v13 = vrot.slane %v7554_v6, %v6835_v44 }
0x3729   :  { %v1701_v48 = vrot.slane %v7733_v2, %v6835_v44 }
0x372b   :  { %4791 = vadd.xlane.f32.xlu1 %v4790_v22  ;;  %v2870_v22 = vcombine.high %v7736_v52, %v7736_v52 }
0x37b0   :  { %v4783_v24 = vpop.xlane.xlu1 %4782 }
0x37b1   :  { %v4800_v37 = vrot.slane %v4783_v24, %v6889_v53 }
0x37b2   :  { %v4786_v56 = vpop.xlane.xlu0 %4785 }
0x37b3   :  { %v4804_v26 = vrot.slane %v4786_v56, %v6886_v50 }
0x37b4   :  { %v4789_v62 = vpop.xlane.xlu1 %4788 }
0x37b5   :  { %v4809_v8 = vrot.slane %v4789_v62, %v6889_v53  ;;  %v4805_v17 = vsel %vm681_vm2, %v4804_v26, %v4800_v37  ;;  %v3452_v37 = vcombine.high %v7745_v38, %v7745_v38 }
0x37b7   :  { %v3466_v0 = vrot.slane %v3452_v37, %v6835_v44 }
0x37b8   :  { %v4792_v34 = vpop.xlane.xlu1 %4791 }
0x37b9   :  { %v4813_v9 = vrot.slane %v4792_v34, %v6886_v50 }
0x37bb   :  { %v4814_v14 = vsel %vm681_vm2, %v4813_v9, %v4809_v8  ;;  %v4618_v8 = vcombine.high %v7664_v49, %v7664_v49 }
0x37bc   :  { %v4815_v15 = vsel %vm692_vm3, %v4814_v14, %v4805_v17 }
0x37bd   :  { %v4817_v25 = vsel %vm695_vm4, %v4815_v15, -inf  ;;  %v7762_v6 = vrot.slane %v4618_v8, %v6835_v44  ;;  %v5994_v8 = vld [vmem:[%s7943_s13 + $0x8] sm:$0xff]  }
0x37be   :  { %4818 = vmax.xlane.f32.xlu1 %v4817_v25  ;;  %v3474_v25 = vrot.slane %v3466_v0, %v6829_v40 }
0x37bf   :  { %v4626_v15 = vcombine.high %v7762_v6, %v7762_v6 }
0x37c1   :  { %v4640_v49 = vrot.slane %v4626_v15, %v6835_v44 }
0x384b   :  { %v4819_v16 = vpop.xlane.xlu1 %4818 }
0x384c   :  { %v4824_v63 = vrot.slane %v4819_v16, %v6829_v40  ;;  %v4828_v29 = vrot.slane %v4819_v16, %v6832_v42 }
0x384e   :  { %v4831_v27 = vsub.f32 %v4783_v24, %v4824_v63  ;;  %v4832_v32 = vsub.f32 %v4786_v56, %v4824_v63  ;;  %v4833_v4 = vsub.f32 %v4789_v62, %v4828_v29  ;;  %v4834_v30 = vsub.f32 %v4792_v34, %v4828_v29 }
0x384f   :  { %v1709_v24 = vcombine.high %v1701_v48, %v1701_v48  ;;  %v2884_v56 = vrot.slane %v2870_v22, %v6835_v44  ;;  %v4037_v34 = vcombine.high %v7749_v13, %v7749_v13  ;;  %v4648_v63 = vrot.slane %v4640_v49, %v6829_v40 }
0x3850   :  { %v4835_v10 = vmul.f32 1.442695, %v4831_v27  ;;  %v4837_v18 = vmul.f32 1.442695, %v4832_v32  ;;  %v4839_v58 = vmul.f32 1.442695, %v4833_v4 }
0x3851   :  { %v4841_v19 = vmul.f32 1.442695, %v4834_v30  ;;  %v1714_v62 = vrot.slane %v1709_v24, %v6829_v40  ;;  %v2886_v26 = vcombine.high %v2884_v56, %v2884_v56  ;;  %v4051_v9 = vrot.slane %v4037_v34, %v6835_v44  ;;  %v5993_v24 = vld [vmem:[%s7943_s13] sm:$0xff]   ;;  %s6537_s13 = smov [#allocation20]  }
0x3852   :  { %6251 = vpow2.f32 %v4835_v10 }
0x3853   :  { %6253 = vpow2.f32 %v4837_v18  ;;  %v2894_v17 = vrot.slane %v2886_v26, %v6829_v40  ;;  %v4053_v14 = vcombine.high %v4051_v9, %v4051_v9 }
0x3854   :  { %6255 = vpow2.f32 %v4839_v58 }
0x3855   :  { %6257 = vpow2.f32 %v4841_v19  ;;  %v4061_v16 = vrot.slane %v4053_v14, %v6829_v40 }
0x385c   :  { %v6252_v11 = vpop.eup %6251 }
0x385d   :  { %v7712_v54 = vpop.eup %6253  ;;  %4848 = vperm.xlu1 %5967, %v6252_v11  }
0x385e   :  { %4851 = vperm.xlu0 %5968, %v7712_v54   ;;  %v7715_v55 = vpop.eup %6255 }
0x385f   :  { %v7718_v59 = vpop.eup %6257 }
0x3861   :  { %4854 = vperm.xlu1 %5967, %v7715_v55  }
0x3865   :  { %4857 = vperm.xlu1 %5967, %v7718_v59  }
0x38dc   :  { %v4849_v60 = vpop.permute.xlu1 %4848 }
0x38dd   :  { %v4852_v1 = vpop.permute.xlu0 %4851  ;;  %v4862_v41 = vrot.slane %v4849_v60, %v6889_v53 }
0x38de   :  { %v4866_v3 = vrot.slane %v4852_v1, %v6886_v50 }
0x38e0   :  { %v4855_v46 = vpop.permute.xlu1 %4854  ;;  %v4867_v35 = vsel %vm681_vm2, %v4866_v3, %v4862_v41 }
0x38e1   :  { %v4871_v12 = vrot.slane %v4855_v46, %v6889_v53 }
0x38e4   :  { %v4858_v5 = vpop.permute.xlu1 %4857 }
0x38e5   :  { %v4875_v7 = vrot.slane %v4858_v5, %v6886_v50 }
0x38e7   :  { %v4876_v36 = vsel %vm681_vm2, %v4875_v7, %v4871_v12 }
0x38e8   :  { %v4877_v39 = vsel %vm692_vm3, %v4876_v36, %v4867_v35 }
0x38e9   :  { %v4879_v45 = vsel %vm695_vm4, %v4877_v39, 0.0 }
0x38ea   :  { %4880 = vadd.xlane.f32.xlu1 %v4879_v45 }
0x38fb   :  { %1719 = vrot.lane.b32.xlu1 %v1714_v62, %s6536_s19 }
0x38ff   :  { %2897 = vrot.lane.b32.xlu1 %v2894_v17, %s6536_s19 }
0x3903   :  { %3477 = vrot.lane.b32.xlu1 %v3474_v25, %s6536_s19 }
0x3907   :  { %4064 = vrot.lane.b32.xlu1 %v4061_v16, %s6536_s19 }
0x390b   :  { %4651 = vrot.lane.b32.xlu1 %v4648_v63, %s6536_s19 }
0x3977   :  { %v4881_v29 = vpop.xlane.xlu1 %4880 }
0x3978   :  { %6259 = vrcp.f32 %v4881_v29 }
0x397b   :  { %v1720_v27 = vpop.permute.xlu1 %1719 }
0x397c   :  { %1725 = vst.msk [vmem:[#allocation2 + $0x1] sm:$0x1] %vm1136_vm8, %v1720_v27 }
0x397f   :  { %v2898_v32 = vpop.permute.xlu1 %2897 }
0x3980   :  { %2902 = vst.msk [vmem:[#allocation2 + $0xb] sm:$0x1] %vm1136_vm8, %v2898_v32 }
0x3982   :  { %v6260_v4 = vpop.eup %6259 }
0x3983   :  { %v3478_v10 = vpop.permute.xlu1 %3477  ;;  %v4887_v18 = vrot.slane %v6260_v4, %v6829_v40  ;;  %v4891_v60 = vrot.slane %v6260_v4, %v6832_v42 }
0x3984   :  { %3482 = vst.msk [vmem:[#allocation2 + $0xc] sm:$0x1] %vm1136_vm8, %v3478_v10 }
0x3985   :  { %v4894_v30 = vmul.f32 %v6252_v11, %v4887_v18  ;;  %v4895_v19 = vmul.f32 %v7712_v54, %v4887_v18  ;;  %v4896_v46 = vmul.f32 %v7715_v55, %v4891_v60  ;;  %v4897_v3 = vmul.f32 %v7718_v59, %v4891_v60 }
0x3987   :  { %4901 = vperm.xlu0 %5968, %v4894_v30   ;;  %v4065_v58 = vpop.permute.xlu1 %4064 }
0x3988   :  { %4069 = vst.msk [vmem:[#allocation2 + $0xd] sm:$0x1] %vm1136_vm8, %v4065_v58 }
0x398b   :  { %4904 = vperm.xlu0 %5968, %v4895_v19   ;;  %v4652_v1 = vpop.permute.xlu1 %4651 }
0x398c   :  { %4656 = vst.msk [vmem:[#allocation2 + $0xe] sm:$0x1] %vm1136_vm8, %v4652_v1 }
0x398f   :  { %4990 = vperm.xlu0 %5968, %v4896_v46  }
0x3993   :  { %4993 = vperm.xlu0 %5968, %v4897_v3  }
0x3a06   :  { %v4902_v41 = vpop.permute.xlu0 %4901 }
0x3a07   :  { %v4909_v5 = vrot.slane %v4902_v41, %v6889_v53 }
0x3a0a   :  { %v4905_v11 = vpop.permute.xlu0 %4904 }
0x3a0b   :  { %v4913_v12 = vrot.slane %v4905_v11, %v6886_v50 }
0x3a0d   :  { %v4914_v54 = vsel %vm681_vm2, %v4913_v12, %v4909_v5  ;;  %v1106_v12 = vrot.slane %v6993_v31, %v6835_v44 }
0x3a0e   :  { %5250 = vst.msk [vmem:[#allocation4 + $0x7] sm:$0x1] %vm1143_vm7, %v4914_v54  ;;  %5856 = vmatmul.mubr.msk.f32.vlgmr.msra.gmra.mrb[58].mxu0 %vm794_vm6, %v4914_v54  ;;  %v4991_v42 = vpop.permute.xlu0 %4990 }
0x3a0f   :  { %5944 = vmatpush3.bf16.msra.mxu0 %v6793_v21  ;;  %5862 = vmatprep.mubr.msk.f32.mxu0 %vm6534_vm5, %v6535_v57  ;;  %v4998_v59 = vrot.slane %v4991_v42, %v6889_v53  ;;  %v1107_v54 = vcombine.high %v1106_v12, %v1106_v12  ;;  %v1114_v42 = vrot.slane %v1106_v12, %v6835_v44 }
0x3a10   :  { %5873 = vmatprep.subr.bf16.mxu0 %v6535_v57 }
0x3a12   :  { %v4994_v55 = vpop.permute.xlu0 %4993 }
0x3a13   :  { %v5002_v7 = vrot.slane %v4994_v55, %v6886_v50  ;;  %v1694_v55 = vcombine.high %v7733_v2, %v7733_v2 }
0x3a15   :  { %v5003_v35 = vsel %vm681_vm2, %v5002_v7, %v4998_v59  ;;  %v5389_v36 = vld [vmem:[#allocation4] sm:$0xff]  ;;  %v1121_v7 = vrot.slane %v1107_v54, %v6835_v44 }
0x3a16   :  { %5251 = vst.msk [vmem:[#allocation4 + $0xf] sm:$0x1] %vm1143_vm7, %v5003_v35  ;;  %5863 = vmatmul.mubr.msk.f32.vlgmr.msra.gmra.mrb[64].mxu0 %vm794_vm6, %v5003_v35  ;;  %v2275_v35 = vcombine.high %v7217_v28, %v7217_v28  ;;  %v2877_v28 = vrot.slane %v7736_v52, %v6835_v44 }
0x3a17   :  { %5391 = vst.msk [vmem:[#allocation20] sm:$0xff] %vm794_vm6, %v5389_v36  ;;  %5874 = vmatpush3.bf16.msra.mxu0 %v7615_v51  ;;  %5877 = vmatprep.mubr.msk.bf16.mxu0 %vm6534_vm5, %v6535_v57  ;;  %v1125_v36 = vrot.slane %v1114_v42, %v6829_v40 }
0x3a18   :  { %5875 = vmatprep.subr.bf16.mxu0 %v6535_v57 }
0x3a1b   :  { %5876 = vmatpush3.bf16.msra.mxu0 %v7622_v43 }
0x3a1c   :  { %5889 = vmatprep.subr.bf16.mxu0 %v6535_v57 }
0x3a1d   :  { %v5390_v21 = vld [vmem:[#allocation4 + $0x8] sm:$0xff] }
0x3a1e   :  { %5878 = vmatmul.mubr.msk.bf16.vlgmr.msra.gmra.mrb[68].mxu0 %vm305_vm1, %v7669_v61  ;;  %5392 = vst.msk [vmem:[#allocation20 + $0x8] sm:$0xff] %vm794_vm6, %v5390_v21  ;;  %v2282_v21 = vrot.slane %v2275_v35, %v6835_v44 }
0x3a1f   :  { %5893 = vmatprep.mubr.msk.bf16.mxu0 %vm6534_vm5, %v6535_v57 }
0x3a20   :  { %v2283_v2 = vcombine.high %v2282_v21, %v2282_v21 }
0x3ae1   :  { %v4983_v50 = vpop.f32.mrb[58].mxu0 }
0x3ae2   :  { %5246 = vst.msk [vmem:[#allocation3 + $0x7] sm:$0x1] %vm1136_vm8, %v4983_v50  ;;  %v5857_v53 = vpop.f32.mrb[59].mxu0  ;;  %v5076_v39 = vpack.c.bf16 %v4983_v50, %v4983_v50  ;;  %v1129_v50 = vrot.slane %v1121_v7, %v6829_v40 }
0x3ae3   :  { %v2290_v53 = vrot.slane %v2282_v21, %v6835_v44 }
0x3ae4   :  { %v5080_v48 = vunpack.c.l.b16 %v5076_v39 }
0x3ae5   :  { %v2301_v39 = vrot.slane %v2290_v53, %v6829_v40 }
0x3ae9   :  { %v5072_v51 = vpop.f32.mrb[64].mxu0  ;;  %v5255_v9 = vld [vmem:[#allocation3] sm:$0xff] }
0x3aea   :  { %v5077_v47 = vpack.c.bf16 %v5072_v51, %v5072_v51  ;;  %5247 = vst.msk [vmem:[#allocation3 + $0xf] sm:$0x1] %vm1136_vm8, %v5072_v51  ;;  %v5864_v43 = vpop.f32.mrb[65].mxu0 }
0x3aeb   :  { %v2885_v43 = vcombine.high %v2877_v28, %v2877_v28 }
0x3aec   :  { %v5081_v45 = vunpack.c.l.b16 %v5077_v47  ;;  %v2297_v47 = vrot.slane %v2283_v2, %v6835_v44 }
0x3aee   :  { %v5082_v22 = vrot.slane %v5081_v45, 7  ;;  %v2305_v45 = vrot.slane %v2297_v47, %v6829_v40 }
0x3af0   :  { %v5083_v61 = vsel %vm692_vm3, %v5082_v22, %v5080_v48  ;;  %v3459_v48 = vrot.slane %v7745_v38, %v6835_v44  ;;  %v4044_v22 = vrot.slane %v7749_v13, %v6835_v44 }
0x3af1   :  { %v5084_v56 = vpack.c.b16 %v5083_v61, %v5083_v61  ;;  %v5166_v62 = vpop.f32.mrb[68].mxu0  ;;  %v5256_v0 = vld [vmem:[#allocation3 + $0x8] sm:$0xff]  ;;  %v2890_v61 = vrot.slane %v2885_v43, %v6829_v40 }
0x3af2   :  { %v5879_v26 = vpop.f32.mrb[69].mxu0  ;;  %v5257_v17 = vpack.c.bf16 %v5256_v0, %v5255_v9  ;;  %v5173_v16 = vrot.slane %v5166_v62, 2  ;;  %v3470_v52 = vrot.slane %v3459_v48, %v6829_v40  ;;  %v4633_v62 = vrot.slane %v7762_v6, %v6835_v44  ;;  %v5996_v0 = vld [vmem:[#allocation17 + $0x8] sm:$0xff]  }
0x3af3   :  { %v5169_v37 = vpop.f32.mrb[70].mxu0  ;;  %5870 = vmatmul.mubr.msk.bf16.vlgmr.msra.gmra.mrb[72].mxu1 %vm305_vm1, %v5084_v56 }
0x3af4   :  { %v5880_v34 = vpop.f32.mrb[71].mxu0  ;;  %5882 = vmatpush3.bf16.msra.mxu1 %v5993_v24  ;;  %5885 = vmatprep.mubr.msk.bf16.mxu1 %vm6534_vm5, %v6535_v57  ;;  %v4052_v24 = vcombine.high %v4044_v22, %v4044_v22  ;;  %v4644_v38 = vrot.slane %v4633_v62, %v6829_v40  ;;  %v5995_v37 = vld [vmem:[#allocation17] sm:$0xff]  }
0x3af5   :  { %5883 = vmatprep.subr.bf16.mxu1 %v6535_v57  ;;  %5890 = vmatpush3.bf16.msra.mxu0 %v5995_v37 }
0x3af6   :  { %v4057_v56 = vrot.slane %v4052_v24, %v6829_v40  ;;  %5891 = vmatprep.subr.bf16.mxu0 %v6535_v57 }
0x3af8   :  { %5884 = vmatpush3.bf16.msra.mxu1 %v5994_v8 }
0x3af9   :  { %5892 = vmatpush3.bf16.msra.mxu0 %v5996_v0 }
0x3afb   :  { %5886 = vmatmul.mubr.msk.bf16.vlgmr.msra.gmra.mrb[76].mxu1 %vm305_vm1, %v5257_v17 }
0x3bc6   :  { %v5122_v14 = vpop.f32.mrb[72].mxu1 }
0x3bc7   :  { %v5129_v15 = vrot.slane %v5122_v14, 2  ;;  %v5871_v25 = vpop.f32.mrb[73].mxu1 }
0x3bc8   :  { %v5125_v49 = vpop.f32.mrb[74].mxu1 }
0x3bc9   :  { %v5131_v63 = vadd.f32 %v5129_v15, %v6981_v20  ;;  %v5872_v29 = vpop.f32.mrb[75].mxu1 }
0x3bcb   :  { %v5175_v27 = vadd.f32 %v5173_v16, %v5131_v63 }
0x3bcd   :  { %v5176_v32 = vadd.f32 %v7654_v33, %v5175_v27  ;;  %v5185_v33 = vrot.slane %v7660_v23, 6  ;;  %v1708_v23 = vrot.slane %v1694_v55, %v6835_v44 }
0x3bce   :  { %v7827_v4 = vpop.f32.mrb[76].mxu1 }
0x3bcf   :  { %6261 = vtanh.f32 %v5176_v32  ;;  %v5887_v10 = vpop.f32.mrb[77].mxu1  ;;  %v5502_v19 = vmul.f32 -1.442695, %v5176_v32  ;;  %v1710_v31 = vcombine.high %v1708_v23, %v1708_v23 }
0x3bd0   :  { %v7829_v18 = vpop.f32.mrb[78].mxu1 }
0x3bd1   :  { %v5888_v30 = vpop.f32.mrb[79].mxu1  ;;  %6263 = vpow2.f32 %v5502_v19  ;;  %v1718_v51 = vrot.slane %v1710_v31, %v6829_v40 }
0x3bd9   :  { %v6262_v58 = vpop.eup %6261 }
0x3bda   :  { %5189 = vrot.lane.b32.xlu0 %v6262_v58, %s6525_s21 }
0x3bdb   :  { %v6264_v60 = vpop.eup %6263 }
0x3bdc   :  { %v5180_v1 = vadd.f32 1.0, %v6264_v60 }
0x3bde   :  { %6265 = vrcp.f32 %v5180_v1 }
0x3be8   :  { %v6266_v20 = vpop.eup %6265 }
0x3be9   :  { %v5187_v41 = vmul.f32 %v6266_v20, %v5185_v33 }
0x3c4c   :  { %v5190_v46 = vpop.permute.xlu0 %5189 }
0x3c4d   :  { %v5192_v3 = vmul.f32 %v6266_v20, %v5190_v46 }
0x3c4f   :  { %5194 = vrot.lane.b32.xlu0 %v5192_v3, %s6536_s19 }
0x3cc1   :  { %v5195_v11 = vpop.permute.xlu0 %5194 }
0x3cc2   :  { %v5197_v5 = vadd.f32 %v5195_v11, %v5187_v41 }
0x3cc4   :  { %6267 = vtanh.f32 %v5197_v5 }
0x3cce   :  { %v6268_v59 = vpop.eup %6267 }
0x3ccf   :  { %5200 = vrot.lane.b32.xlu0 %v6268_v59, %s6525_s21  ;;  %s5410_s21 = sshll.u32 %s6537_s13, 4  ;;  %s5411_s21 = int_to_ptr.vmem [resolvable:$true] %s5410_s21 }
0x3cd0   :  { %s6461_s29 = scalar_lea.vmem %s5411_s21, 256  ;;  %p6466_p9 = scmp.lt.s32.totalorder %s5411_s21, %s5411_s21 }
0x3cd1   :  { %p6462_p8 = scmp.ne.s32.totalorder %s5411_s21, %s6461_s29  ;;  %p6467_p10 = scmp.lt.s32.totalorder %s6461_s29, %s6461_s29 }
0x3cd3   :  { %1130 = vrot.lane.b32.xlu0 %v1125_v36, %s6536_s19  ;;  %p6468_p11 = por %p6467_p10, %p6466_p9 }
0x3cd5   :  { %p6469_p12 = pnand %p6468_p11, %p6462_p8 }
0x3cd7   :  { %1132 = vrot.lane.b32.xlu0 %v1129_v50, %s6536_s19 }
0x3cdb   :  { %1721 = vrot.lane.b32.xlu0 %v1718_v51, %s6536_s19 }
0x3cdf   :  { %2306 = vrot.lane.b32.xlu0 %v2301_v39, %s6536_s19 }
0x3ce3   :  { %2308 = vrot.lane.b32.xlu0 %v2305_v45, %s6536_s19 }
0x3ce7   :  { %2895 = vrot.lane.b32.xlu0 %v2890_v61, %s6536_s19 }
0x3ceb   :  { %3475 = vrot.lane.b32.xlu0 %v3470_v52, %s6536_s19 }
0x3cef   :  { %4062 = vrot.lane.b32.xlu0 %v4057_v56, %s6536_s19 }
0x3cf3   :  { %4649 = vrot.lane.b32.xlu0 %v4644_v38, %s6536_s19 }
0x3d41   :  { %v5201_v13 = vpop.permute.xlu0 %5200 }
0x3d42   :  { %v5203_v26 = vmul.f32 %v6266_v20, %v5201_v13 }
0x3d44   :  { %v5205_v34 = vcombine.high %v5203_v26, %v5203_v26 }
0x3d45   :  { %v1131_v8 = vpop.permute.xlu0 %1130 }
0x3d46   :  { %v5212_v9 = vrot.slane %v5205_v34, %v6835_v44  ;;  %1137 = vst.msk [vmem:[#allocation2] sm:$0x1] %vm1136_vm8, %v1131_v8 }
0x3d48   :  { %v5213_v6 = vcombine.high %v5212_v9, %v5212_v9  ;;  %v5220_v17 = vrot.slane %v5212_v9, %v6835_v44 }
0x3d49   :  { %v1133_v14 = vpop.permute.xlu0 %1132 }
0x3d4a   :  { %v5227_v15 = vrot.slane %v5213_v6, %v6835_v44  ;;  %v5228_v25 = vcombine.high %v5220_v17, %v5220_v17  ;;  %1138 = vst.msk [vmem:[#allocation2 + $0x8] sm:$0x1] %vm1136_vm8, %v1133_v14 }
0x3d4c   :  { %v5229_v49 = vcombine.high %v5227_v15, %v5227_v15  ;;  %v5233_v16 = vrot.slane %v5228_v25, %v6829_v40 }
0x3d4d   :  { %v1722_v63 = vpop.permute.xlu0 %1721 }
0x3d4e   :  { %1726 = vst.msk [vmem:[#allocation2 + $0x9] sm:$0x1] %vm1136_vm8, %v1722_v63  ;;  %5238 = vrot.lane.b32.xlu0 %v5233_v16, %s6536_s19  ;;  %v5237_v57 = vrot.slane %v5229_v49, %v6829_v40 }
0x3d50   :  { %5240 = vrot.lane.b32.xlu1 %v5237_v57, %s6536_s19 }
0x3d51   :  { %v2307_v29 = vpop.permute.xlu0 %2306 }
0x3d52   :  { %2312 = vst.msk [vmem:[#allocation2 + $0x2] sm:$0x1] %vm1136_vm8, %v2307_v29 }
0x3d55   :  { %v2309_v27 = vpop.permute.xlu0 %2308 }
0x3d56   :  { %2313 = vst.msk [vmem:[#allocation2 + $0xa] sm:$0x1] %vm1136_vm8, %v2309_v27 }
0x3d59   :  { %v2896_v44 = vpop.permute.xlu0 %2895 }
0x3d5a   :  { %2901 = vst.msk [vmem:[#allocation2 + $0x3] sm:$0x1] %vm1136_vm8, %v2896_v44 }
0x3d5d   :  { %v3476_v32 = vpop.permute.xlu0 %3475 }
0x3d5e   :  { %3481 = vst.msk [vmem:[#allocation2 + $0x4] sm:$0x1] %vm1136_vm8, %v3476_v32 }
0x3d61   :  { %v4063_v10 = vpop.permute.xlu0 %4062 }
0x3d62   :  { %4068 = vst.msk [vmem:[#allocation2 + $0x5] sm:$0x1] %vm1136_vm8, %v4063_v10 }
0x3d65   :  { %v4650_v30 = vpop.permute.xlu0 %4649 }
0x3d66   :  { %4655 = vst.msk [vmem:[#allocation2 + $0x6] sm:$0x1] %vm1136_vm8, %v4650_v30 }
0x3dc0   :  { %v5239_v40 = vpop.permute.xlu0 %5238 }
0x3dc1   :  { %5244 = vst.msk [vmem:[#allocation2 + $0x7] sm:$0x1] %vm1136_vm8, %v5239_v40 }
0x3dc2   :  { %v5241_v58 = vpop.permute.xlu1 %5240 }
0x3dc3   :  { %5245 = vst.msk [vmem:[#allocation2 + $0xf] sm:$0x1] %vm1136_vm8, %v5241_v58 }
0x3dc8   :  { %v5252_v19 = vld [vmem:[#allocation2] sm:$0xff] }
0x3dca   :  { %v5253_v60 = vld [vmem:[#allocation2 + $0x8] sm:$0xff] }
0x3dcb   :  { %v5254_v1 = vpack.c.bf16 %v5253_v60, %v5252_v19 }
0x3dcd   :  { %5894 = vmatmul.mubr.msk.bf16.vlgmr.msra.gmra.mrb[72].mxu0 %vm305_vm1, %v5254_v1 }
0x3dce   :  { %6472 = shalt.err (!%p6469_p12)
}
0x3dcf   :  { %s6473_s1 = scalar_lea.hbm %s7946_s16, 256 }
0x3dd0   :  { %p6474_p13 = scmp.ne.s32.totalorder %s7946_s16, %s6473_s1  ;;  %p6477_p0 = scmp.lt.u32.totalorder %s6473_s1, %s7946_s16 }
0x3dd2   :  { %p6479_p1 = pnand %p6477_p0, %p6474_p13 }
0x3dd4   :  { %6482 = shalt.err (!%p6479_p1)
}
0x3dd5   :  { %s6538_s6 = smov 128   ;;  %s6539_s7 = smov 8   ;;  %v5509_v46 = vld [vmem:[%s7944_s14] ss:$0 sm:$0xff] }
0x3dd6   :  { %5416 = dma.vmem_to_hbm [thread:$0]  %s5411_s21, 256, %s7946_s16, [#allocation21], %s6538_s6, %s6538_s6, %s6539_s7  }
0x3dd7   :  { %s6540_s9 = smov [#allocation19]  }
0x3dd8   :  { %s5398_s10 = sshll.u32 %s6540_s9, 4  ;;  %s5399_s10 = int_to_ptr.vmem [resolvable:$true] %s5398_s10 }
0x3dd9   :  { %s6483_s16 = scalar_lea.vmem %s5399_s10, 256  ;;  %p6488_p3 = scmp.lt.s32.totalorder %s5399_s10, %s5399_s10 }
0x3dda   :  { %p6484_p2 = scmp.ne.s32.totalorder %s5399_s10, %s6483_s16  ;;  %p6489_p4 = scmp.lt.s32.totalorder %s6483_s16, %s6483_s16 }
0x3ddc   :  { %p6490_p5 = por %p6489_p4, %p6488_p3 }
0x3dde   :  { %p6491_p6 = pnand %p6490_p5, %p6484_p2 }
0x3ea0   :  { %v5371_v20 = vpop.f32.mrb[72].mxu0 }
0x3ea1   :  { %v5372_v3 = vadd.f32 %v5371_v20, %v7827_v4  ;;  %v5895_v33 = vpop.f32.mrb[73].mxu0 }
0x3ea2   :  { %v5374_v41 = vpop.f32.mrb[74].mxu0 }
0x3ea3   :  { %v5385_v11 = vadd.f32 %v5509_v46, %v5372_v3  ;;  %v5375_v5 = vadd.f32 %v5374_v41, %v7829_v18  ;;  %v5896_v12 = vpop.f32.mrb[75].mxu0 }
0x3ea5   :  { %5387 = vst.msk [vmem:[#allocation19] sm:$0xff] %vm211_vm0, %v5385_v11  ;;  %v5386_v54 = vadd.f32 %v5509_v46, %v5375_v5 }
0x3ea7   :  { %5388 = vst.msk [vmem:[#allocation19 + $0x8] sm:$0xff] %vm211_vm0, %v5386_v54 }
0x3ea8   :  { %6494 = shalt.err (!%p6491_p6)
}
0x3ea9   :  { %s6495_s11 = scalar_lea.hbm %s7945_s15, 256 }
0x3eaa   :  { %p6496_p7 = scmp.ne.s32.totalorder %s7945_s15, %s6495_s11  ;;  %p6499_p8 = scmp.lt.u32.totalorder %s6495_s11, %s7945_s15 }
0x3eac   :  { %p6501_p9 = pnand %p6499_p8, %p6496_p7 }
0x3eae   :  { %6504 = shalt.err (!%p6501_p9)
}
0x3eaf   :  { %5404 = dma.vmem_to_hbm [thread:$0]  %s5399_s10, 256, %s7945_s15, [#allocation7], %s6538_s6, %s6538_s6, %s6539_s7  }
0x3eb0   :  { %6515 = dma.done.wait [#allocation7], 256  }
0x3eb1   :  { %6516 = vsyncadd [#allocation7], 4294967040 }
0x3eb2   :  { %6517 = dma.done.wait [#allocation21], 256  }
0x3eb3   :  { %6518 = vsyncadd [#allocation21], 4294967040 }
0x3eb4   :  { %5423 = vsyncpa [#allocation6], 1 }
0x3eb5   :  { %5424 = vsyncpa [#allocation9], 1 }
0x3eb6   :  { %5425 = vsyncpa [#allocation12], 1 }
0x3eb7   :  { %5426 = vsyncpa [#allocation15], 1 }
0x3eb8   :  { %5427 = vsyncpa [#allocation18], 1 }
0x3eb9   :  { %5428 = vsyncpa [#allocation7], 1 }
0x3eba   :  { %5429 = vsyncpa [#allocation21], 1 }

</bundles_post_ra>
